<compile_context>
chip_gen: v7x
topology: tpu7x:2x2x1
jax: 0.10.0
libtpu: 0.0.40
codegen_flags: <defaults>
</compile_context>

<pallas_src>
import jax
import jax.numpy as jnp
from jax.experimental import pallas as pl
from jax.experimental.pallas import tpu as pltpu


# ---------------- problem sizes (consistent with the module config) ----------------
E_DIM = 16               # prod(e_space.shape)
X_DIM = 16               # prod(x_space.shape)
A_DIM = 4                # prod(a_space.shape)  (action size)
ENCODER_HIDDENS = (32, 32)
ENCODING_SIZE = 8
POLICY_HIDDENS = (64, 64)
NUM_OUTPUTS = 2 * A_DIM  # action mean and std

XA_DIM = X_DIM + A_DIM               # 20: leading rows of wp0 (concat order [x, a, enc])
IN_DIM = X_DIM + A_DIM + E_DIM       # 36: consolidated kernel input [x | a | e]
IN_PAD = 40                          # pad to a multiple of 8 sublanes (zero columns)

B_TILE = 512             # rows per grid step (review: sweep 256-1024; 512 amortizes
                         # step overhead ~4x vs 128, working set still ~1 MiB VMEM)


# ---------------- Pallas kernel: one batch tile of the full forward -----------------
def oracle_policy_kernel(
    in_ref,
    we0_ref, be0_ref, we1_ref, be1_ref, wel_ref, bel_ref,
    wp0xa_ref, wp0e_ref, bp0_ref, wp1_ref, bp1_ref, wpl_ref, bpl_ref,
    out_ref,
):
    act = jnp.tanh  # model_config['fcnet_activation']
    f32 = jnp.float32

    xae = in_ref[...]  # (B_TILE, 40) = [x(16) | a(4) | e(16) | zeros(4)]

    # ---- environment (oracle) encoder ----
    # we0_ref rows for the x/a/pad columns are zero, so this equals e_t @ we0 exactly.
    h = act(jnp.dot(xae, we0_ref[...], preferred_element_type=f32) + be0_ref[...])
    h = act(jnp.dot(h, we1_ref[...], preferred_element_type=f32) + be1_ref[...])
    enc = jnp.tanh(jnp.dot(h, wel_ref[...], preferred_element_type=f32) + bel_ref[...])

    # ---- policy trunk: concat([x_t, a_t, enc]) @ wp0 expressed as 2 accumulated
    #      matmuls; wp0xa_ref has zero rows over the e/pad columns (no lane slicing) ----
    pre = (jnp.dot(xae, wp0xa_ref[...], preferred_element_type=f32)
           + jnp.dot(enc, wp0e_ref[...], preferred_element_type=f32)
           + bp0_ref[...])
    f = act(pre)
    f = act(jnp.dot(f, wp1_ref[...], preferred_element_type=f32) + bp1_ref[...])

    # ---- policy logits (no activation), narrow (B_TILE, NUM_OUTPUTS) store ----
    out_ref[...] = jnp.dot(f, wpl_ref[...], preferred_element_type=f32) + bpl_ref[...]


# ---------------- wrapper-side parameter preparation (done once) -------------------
def prepare_params(params):
    """Split wp0 by concat order [x, a, enc] and zero-row-extend we0 / wp0_xa so the
    kernel can feed the consolidated 40-wide input tile straight into the MXU.

    Zero rows contribute exactly 0 to the f32 accumulation, so semantics are preserved.
    """
    we0, be0, we1, be1, wel, bel, wp0, bp0, wp1, bp1, wpl, bpl = params
    he0 = we0.shape[1]
    hp0 = wp0.shape[1]

    # rows laid out to match input columns [x(16) | a(4) | e(16) | pad(4)]
    we0_ext = jnp.concatenate(
        [jnp.zeros((XA_DIM, he0), we0.dtype),
         we0,
         jnp.zeros((IN_PAD - IN_DIM, he0), we0.dtype)], axis=0)            # (40, 32)
    wp0_xa_ext = jnp.concatenate(
        [wp0[:XA_DIM],
         jnp.zeros((IN_PAD - XA_DIM, hp0), wp0.dtype)], axis=0)            # (40, 64)
    wp0_e = wp0[XA_DIM:]                                                   # (8, 64)

    return (we0_ext, be0, we1, be1, wel, bel,
            wp0_xa_ext, wp0_e, bp0, wp1, bp1, wpl, bpl)


# ---------------- jitted forward: grid over batch tiles ----------------------------
@jax.jit
def oracle_policy_forward(e_t, x_t, a_t, prepared_params):
    """Full OraclePolicyModel forward; batch tiled over a parallel grid axis."""
    batch = e_t.shape[0]

    # one consolidated input array -> one DMA per grid step (concat order of wp0)
    xae = jnp.concatenate([x_t, a_t, e_t], axis=1)                  # (B, 36)
    b_pad = (-batch) % B_TILE
    xae = jnp.pad(xae, ((0, b_pad), (0, IN_PAD - IN_DIM)))          # (bp, 40)
    bp = batch + b_pad
    n_tiles = bp // B_TILE

    in_specs = [pl.BlockSpec((B_TILE, IN_PAD), lambda i: (i, 0))]
    for p in prepared_params:
        # constant block index -> each weight/bias is DMA'd once and stays VMEM-resident
        in_specs.append(pl.BlockSpec(p.shape, lambda i: (0, 0)))
    out_spec = pl.BlockSpec((B_TILE, NUM_OUTPUTS), lambda i: (i, 0))

    param_elems = sum(int(p.size) for p in prepared_params)
    flops_per_row = 2 * (IN_PAD * ENCODER_HIDDENS[0]
                         + ENCODER_HIDDENS[0] * ENCODER_HIDDENS[1]
                         + ENCODER_HIDDENS[1] * ENCODING_SIZE
                         + IN_PAD * POLICY_HIDDENS[0]
                         + ENCODING_SIZE * POLICY_HIDDENS[0]
                         + POLICY_HIDDENS[0] * POLICY_HIDDENS[1]
                         + POLICY_HIDDENS[1] * NUM_OUTPUTS)
    trans_per_row = (ENCODER_HIDDENS[0] + ENCODER_HIDDENS[1] + ENCODING_SIZE
                     + POLICY_HIDDENS[0] + POLICY_HIDDENS[1])
    cost = pl.CostEstimate(
        flops=bp * flops_per_row,
        transcendentals=bp * trans_per_row,
        bytes_accessed=4 * (bp * IN_PAD + param_elems + bp * NUM_OUTPUTS),
    )

    out = pl.pallas_call(
        oracle_policy_kernel,
        out_shape=jax.ShapeDtypeStruct((bp, NUM_OUTPUTS), jnp.float32),
        grid_spec=pltpu.PrefetchScalarGridSpec(
            num_scalar_prefetch=0,
            grid=(n_tiles,),
            in_specs=in_specs,
            out_specs=out_spec,
        ),
        # batch tiles are independent -> shard across v7x's 2 TCs; near-neutral on v5e/v6e.
        compiler_params=pltpu.CompilerParams(
            dimension_semantics=("parallel",)),
        cost_estimate=cost,
    )(xae, *prepared_params)

    return out[:batch]   # drop batch padding; columns are already exactly NUM_OUTPUTS


# ---------------- deterministic parameter construction -----------------------------
def make_params(key):
    def linear(key, fan_in, fan_out):
        kw, _ = jax.random.split(key)
        limit = (6.0 / (fan_in + fan_out)) ** 0.5     # xavier-uniform-ish
        w = jax.random.uniform(kw, (fan_in, fan_out), jnp.float32, -limit, limit)
        b = jnp.zeros((1, fan_out), jnp.float32)      # SlimFC default bias init is 0
        return w, b

    keys = jax.random.split(key, 6)
    we0, be0 = linear(keys[0], E_DIM, ENCODER_HIDDENS[0])
    we1, be1 = linear(keys[1], ENCODER_HIDDENS[0], ENCODER_HIDDENS[1])
    wel, bel = linear(keys[2], ENCODER_HIDDENS[1], ENCODING_SIZE)

    pin_dim = X_DIM + A_DIM + ENCODING_SIZE
    wp0, bp0 = linear(keys[3], pin_dim, POLICY_HIDDENS[0])
    wp1, bp1 = linear(keys[4], POLICY_HIDDENS[0], POLICY_HIDDENS[1])
    wpl, bpl = linear(keys[5], POLICY_HIDDENS[1], NUM_OUTPUTS)

    return (we0, be0, we1, be1, wel, bel, wp0, bp0, wp1, bp1, wpl, bpl)


# ---------------- plain-JAX reference (sanity check) -------------------------------
def reference_forward(e_t, x_t, a_t, params):
    we0, be0, we1, be1, wel, bel, wp0, bp0, wp1, bp1, wpl, bpl = params
    h = jnp.tanh(e_t @ we0 + be0)
    h = jnp.tanh(h @ we1 + be1)
    enc = jnp.tanh(h @ wel + bel)
    pin = jnp.concatenate([x_t, a_t, enc], axis=1)
    f = jnp.tanh(pin @ wp0 + bp0)
    f = jnp.tanh(f @ wp1 + bp1)
    return f @ wpl + bpl


if __name__ == "__main__":
    key = jax.random.PRNGKey(0)
    k_e, k_x, k_a, k_p = jax.random.split(key, 4)

    # Batch of 1000: pads to 1024 = 2 grid tiles of B_TILE=512, so the batch-padding
    # path is exercised and both v7x TensorCores get a tile. Feature dims stay at the
    # module's native small sizes.
    B = 1000
    e_t = jax.random.normal(k_e, (B, E_DIM), jnp.float32)
    x_t = jax.random.normal(k_x, (B, X_DIM), jnp.float32)
    a_t = jax.random.normal(k_a, (B, A_DIM), jnp.float32)

    params = make_params(k_p)
    prepared = prepare_params(params)   # split / zero-extend once, outside the hot path

    logits = oracle_policy_forward(e_t, x_t, a_t, prepared)
    jax.block_until_ready(logits)

    ref = reference_forward(e_t, x_t, a_t, params)
    assert logits.shape == (B, NUM_OUTPUTS)
    assert jnp.allclose(logits, ref, atol=1e-4, rtol=1e-4)

    print("KERNEL_OK")
</pallas_src>

<mosaic_0001>
module attributes {stable_mosaic.version = 11 : i64} {
  func.func @oracle_policy_kernel(%arg0: i32, %arg1: memref<512x40xf32, #tpu.memory_space<vmem>>, %arg2: memref<40x32xf32, #tpu.memory_space<vmem>>, %arg3: memref<1x32xf32, #tpu.memory_space<vmem>>, %arg4: memref<32x32xf32, #tpu.memory_space<vmem>>, %arg5: memref<1x32xf32, #tpu.memory_space<vmem>>, %arg6: memref<32x8xf32, #tpu.memory_space<vmem>>, %arg7: memref<1x8xf32, #tpu.memory_space<vmem>>, %arg8: memref<40x64xf32, #tpu.memory_space<vmem>>, %arg9: memref<8x64xf32, #tpu.memory_space<vmem>>, %arg10: memref<1x64xf32, #tpu.memory_space<vmem>>, %arg11: memref<64x64xf32, #tpu.memory_space<vmem>>, %arg12: memref<1x64xf32, #tpu.memory_space<vmem>>, %arg13: memref<64x8xf32, #tpu.memory_space<vmem>>, %arg14: memref<1x8xf32, #tpu.memory_space<vmem>>, %arg15: memref<512x8xf32, #tpu.memory_space<vmem>>) attributes {dimension_semantics = [#tpu.dimension_semantics<parallel>], iteration_bounds = array<i64: 2>, scalar_prefetch = 0 : i64, scratch_operands = 0 : i64, tpu.core_type = #tpu.core_type<tc>, window_params = [{transform_indices = @transform_0, window_bounds = array<i64: 512, 40>}, {pipeline_mode = #tpu.pipeline_mode<synchronous>, transform_indices = @transform_1, window_bounds = array<i64: 40, 32>}, {pipeline_mode = #tpu.pipeline_mode<synchronous>, transform_indices = @transform_2, window_bounds = array<i64: 1, 32>}, {pipeline_mode = #tpu.pipeline_mode<synchronous>, transform_indices = @transform_3, window_bounds = array<i64: 32, 32>}, {pipeline_mode = #tpu.pipeline_mode<synchronous>, transform_indices = @transform_4, window_bounds = array<i64: 1, 32>}, {pipeline_mode = #tpu.pipeline_mode<synchronous>, transform_indices = @transform_5, window_bounds = array<i64: 32, 8>}, {pipeline_mode = #tpu.pipeline_mode<synchronous>, transform_indices = @transform_6, window_bounds = array<i64: 1, 8>}, {pipeline_mode = #tpu.pipeline_mode<synchronous>, transform_indices = @transform_7, window_bounds = array<i64: 40, 64>}, {pipeline_mode = #tpu.pipeline_mode<synchronous>, transform_indices = @transform_8, window_bounds = array<i64: 8, 64>}, {pipeline_mode = #tpu.pipeline_mode<synchronous>, transform_indices = @transform_9, window_bounds = array<i64: 1, 64>}, {pipeline_mode = #tpu.pipeline_mode<synchronous>, transform_indices = @transform_10, window_bounds = array<i64: 64, 64>}, {pipeline_mode = #tpu.pipeline_mode<synchronous>, transform_indices = @transform_11, window_bounds = array<i64: 1, 64>}, {pipeline_mode = #tpu.pipeline_mode<synchronous>, transform_indices = @transform_12, window_bounds = array<i64: 64, 8>}, {pipeline_mode = #tpu.pipeline_mode<synchronous>, transform_indices = @transform_13, window_bounds = array<i64: 1, 8>}, {transform_indices = @transform_14, window_bounds = array<i64: 512, 8>}]} {
    %c0 = arith.constant 0 : index
    %c0_0 = arith.constant 0 : index
    %0 = vector.load %arg1[%c0, %c0_0] : memref<512x40xf32, #tpu.memory_space<vmem>>, vector<512x40xf32>
    %c0_1 = arith.constant 0 : index
    %c0_2 = arith.constant 0 : index
    %1 = vector.load %arg2[%c0_1, %c0_2] : memref<40x32xf32, #tpu.memory_space<vmem>>, vector<40x32xf32>
    %cst = arith.constant dense<0.000000e+00> : vector<512x32xf32>
    %2 = tpu.matmul %0, %1, %cst {dimension_numbers = #tpu.dot_dimension_numbers<[1], [0], [0], [1], [0, 0, 1, 1], [], []>} : vector<512x40xf32>, vector<40x32xf32>, vector<512x32xf32> -> vector<512x32xf32>
    %c0_3 = arith.constant 0 : index
    %c0_4 = arith.constant 0 : index
    %3 = vector.load %arg3[%c0_3, %c0_4] : memref<1x32xf32, #tpu.memory_space<vmem>>, vector<1x32xf32>
    %4 = vector.broadcast %3 : vector<1x32xf32> to vector<512x32xf32>
    %5 = arith.addf %2, %4 : vector<512x32xf32>
    %6 = math.tanh %5 : vector<512x32xf32>
    %c0_5 = arith.constant 0 : index
    %c0_6 = arith.constant 0 : index
    %7 = vector.load %arg4[%c0_5, %c0_6] : memref<32x32xf32, #tpu.memory_space<vmem>>, vector<32x32xf32>
    %cst_7 = arith.constant dense<0.000000e+00> : vector<512x32xf32>
    %8 = tpu.matmul %6, %7, %cst_7 {dimension_numbers = #tpu.dot_dimension_numbers<[1], [0], [0], [1], [0, 0, 1, 1], [], []>} : vector<512x32xf32>, vector<32x32xf32>, vector<512x32xf32> -> vector<512x32xf32>
    %c0_8 = arith.constant 0 : index
    %c0_9 = arith.constant 0 : index
    %9 = vector.load %arg5[%c0_8, %c0_9] : memref<1x32xf32, #tpu.memory_space<vmem>>, vector<1x32xf32>
    %10 = vector.broadcast %9 : vector<1x32xf32> to vector<512x32xf32>
    %11 = arith.addf %8, %10 : vector<512x32xf32>
    %12 = math.tanh %11 : vector<512x32xf32>
    %c0_10 = arith.constant 0 : index
    %c0_11 = arith.constant 0 : index
    %13 = vector.load %arg6[%c0_10, %c0_11] : memref<32x8xf32, #tpu.memory_space<vmem>>, vector<32x8xf32>
    %cst_12 = arith.constant dense<0.000000e+00> : vector<512x8xf32>
    %14 = tpu.matmul %12, %13, %cst_12 {dimension_numbers = #tpu.dot_dimension_numbers<[1], [0], [0], [1], [0, 0, 1, 1], [], []>} : vector<512x32xf32>, vector<32x8xf32>, vector<512x8xf32> -> vector<512x8xf32>
    %c0_13 = arith.constant 0 : index
    %c0_14 = arith.constant 0 : index
    %15 = vector.load %arg7[%c0_13, %c0_14] : memref<1x8xf32, #tpu.memory_space<vmem>>, vector<1x8xf32>
    %16 = vector.broadcast %15 : vector<1x8xf32> to vector<512x8xf32>
    %17 = arith.addf %14, %16 : vector<512x8xf32>
    %18 = math.tanh %17 : vector<512x8xf32>
    %c0_15 = arith.constant 0 : index
    %c0_16 = arith.constant 0 : index
    %19 = vector.load %arg8[%c0_15, %c0_16] : memref<40x64xf32, #tpu.memory_space<vmem>>, vector<40x64xf32>
    %cst_17 = arith.constant dense<0.000000e+00> : vector<512x64xf32>
    %20 = tpu.matmul %0, %19, %cst_17 {dimension_numbers = #tpu.dot_dimension_numbers<[1], [0], [0], [1], [0, 0, 1, 1], [], []>} : vector<512x40xf32>, vector<40x64xf32>, vector<512x64xf32> -> vector<512x64xf32>
    %c0_18 = arith.constant 0 : index
    %c0_19 = arith.constant 0 : index
    %21 = vector.load %arg9[%c0_18, %c0_19] : memref<8x64xf32, #tpu.memory_space<vmem>>, vector<8x64xf32>
    %cst_20 = arith.constant dense<0.000000e+00> : vector<512x64xf32>
    %22 = tpu.matmul %18, %21, %cst_20 {dimension_numbers = #tpu.dot_dimension_numbers<[1], [0], [0], [1], [0, 0, 1, 1], [], []>} : vector<512x8xf32>, vector<8x64xf32>, vector<512x64xf32> -> vector<512x64xf32>
    %23 = arith.addf %20, %22 : vector<512x64xf32>
    %c0_21 = arith.constant 0 : index
    %c0_22 = arith.constant 0 : index
    %24 = vector.load %arg10[%c0_21, %c0_22] : memref<1x64xf32, #tpu.memory_space<vmem>>, vector<1x64xf32>
    %25 = vector.broadcast %24 : vector<1x64xf32> to vector<512x64xf32>
    %26 = arith.addf %23, %25 : vector<512x64xf32>
    %27 = math.tanh %26 : vector<512x64xf32>
    %c0_23 = arith.constant 0 : index
    %c0_24 = arith.constant 0 : index
    %28 = vector.load %arg11[%c0_23, %c0_24] : memref<64x64xf32, #tpu.memory_space<vmem>>, vector<64x64xf32>
    %cst_25 = arith.constant dense<0.000000e+00> : vector<512x64xf32>
    %29 = tpu.matmul %27, %28, %cst_25 {dimension_numbers = #tpu.dot_dimension_numbers<[1], [0], [0], [1], [0, 0, 1, 1], [], []>} : vector<512x64xf32>, vector<64x64xf32>, vector<512x64xf32> -> vector<512x64xf32>
    %c0_26 = arith.constant 0 : index
    %c0_27 = arith.constant 0 : index
    %30 = vector.load %arg12[%c0_26, %c0_27] : memref<1x64xf32, #tpu.memory_space<vmem>>, vector<1x64xf32>
    %31 = vector.broadcast %30 : vector<1x64xf32> to vector<512x64xf32>
    %32 = arith.addf %29, %31 : vector<512x64xf32>
    %33 = math.tanh %32 : vector<512x64xf32>
    %c0_28 = arith.constant 0 : index
    %c0_29 = arith.constant 0 : index
    %34 = vector.load %arg13[%c0_28, %c0_29] : memref<64x8xf32, #tpu.memory_space<vmem>>, vector<64x8xf32>
    %cst_30 = arith.constant dense<0.000000e+00> : vector<512x8xf32>
    %35 = tpu.matmul %33, %34, %cst_30 {dimension_numbers = #tpu.dot_dimension_numbers<[1], [0], [0], [1], [0, 0, 1, 1], [], []>} : vector<512x64xf32>, vector<64x8xf32>, vector<512x8xf32> -> vector<512x8xf32>
    %c0_31 = arith.constant 0 : index
    %c0_32 = arith.constant 0 : index
    %36 = vector.load %arg14[%c0_31, %c0_32] : memref<1x8xf32, #tpu.memory_space<vmem>>, vector<1x8xf32>
    %37 = vector.broadcast %36 : vector<1x8xf32> to vector<512x8xf32>
    %38 = arith.addf %35, %37 : vector<512x8xf32>
    %c0_33 = arith.constant 0 : index
    %c0_34 = arith.constant 0 : index
    %39 = vector.load %arg15[%c0_33, %c0_34] : memref<512x8xf32, #tpu.memory_space<vmem>>, vector<512x8xf32>
    tpu.vector_store %arg15[%c0_33, %c0_34], %38 {strides = array<i32>} : memref<512x8xf32, #tpu.memory_space<vmem>>, vector<512x8xf32>,
    return
  }
  func.func @transform_0(%arg0: i32) -> (i32, i32) {
    %c0_i32 = arith.constant 0 : i32
    %c0_i32_0 = arith.constant 0 : i32
    return %arg0, %c0_i32 : i32, i32
  }
  func.func @transform_1(%arg0: i32) -> (i32, i32) {
    %c0_i32 = arith.constant 0 : i32
    %c0_i32_0 = arith.constant 0 : i32
    %c0_i32_1 = arith.constant 0 : i32
    return %c0_i32, %c0_i32_0 : i32, i32
  }
  func.func @transform_2(%arg0: i32) -> (i32, i32) {
    %c0_i32 = arith.constant 0 : i32
    %c0_i32_0 = arith.constant 0 : i32
    %c0_i32_1 = arith.constant 0 : i32
    return %c0_i32, %c0_i32_0 : i32, i32
  }
  func.func @transform_3(%arg0: i32) -> (i32, i32) {
    %c0_i32 = arith.constant 0 : i32
    %c0_i32_0 = arith.constant 0 : i32
    %c0_i32_1 = arith.constant 0 : i32
    return %c0_i32, %c0_i32_0 : i32, i32
  }
  func.func @transform_4(%arg0: i32) -> (i32, i32) {
    %c0_i32 = arith.constant 0 : i32
    %c0_i32_0 = arith.constant 0 : i32
    %c0_i32_1 = arith.constant 0 : i32
    return %c0_i32, %c0_i32_0 : i32, i32
  }
  func.func @transform_5(%arg0: i32) -> (i32, i32) {
    %c0_i32 = arith.constant 0 : i32
    %c0_i32_0 = arith.constant 0 : i32
    %c0_i32_1 = arith.constant 0 : i32
    return %c0_i32, %c0_i32_0 : i32, i32
  }
  func.func @transform_6(%arg0: i32) -> (i32, i32) {
    %c0_i32 = arith.constant 0 : i32
    %c0_i32_0 = arith.constant 0 : i32
    %c0_i32_1 = arith.constant 0 : i32
    return %c0_i32, %c0_i32_0 : i32, i32
  }
  func.func @transform_7(%arg0: i32) -> (i32, i32) {
    %c0_i32 = arith.constant 0 : i32
    %c0_i32_0 = arith.constant 0 : i32
    %c0_i32_1 = arith.constant 0 : i32
    return %c0_i32, %c0_i32_0 : i32, i32
  }
  func.func @transform_8(%arg0: i32) -> (i32, i32) {
    %c0_i32 = arith.constant 0 : i32
    %c0_i32_0 = arith.constant 0 : i32
    %c0_i32_1 = arith.constant 0 : i32
    return %c0_i32, %c0_i32_0 : i32, i32
  }
  func.func @transform_9(%arg0: i32) -> (i32, i32) {
    %c0_i32 = arith.constant 0 : i32
    %c0_i32_0 = arith.constant 0 : i32
    %c0_i32_1 = arith.constant 0 : i32
    return %c0_i32, %c0_i32_0 : i32, i32
  }
  func.func @transform_10(%arg0: i32) -> (i32, i32) {
    %c0_i32 = arith.constant 0 : i32
    %c0_i32_0 = arith.constant 0 : i32
    %c0_i32_1 = arith.constant 0 : i32
    return %c0_i32, %c0_i32_0 : i32, i32
  }
  func.func @transform_11(%arg0: i32) -> (i32, i32) {
    %c0_i32 = arith.constant 0 : i32
    %c0_i32_0 = arith.constant 0 : i32
    %c0_i32_1 = arith.constant 0 : i32
    return %c0_i32, %c0_i32_0 : i32, i32
  }
  func.func @transform_12(%arg0: i32) -> (i32, i32) {
    %c0_i32 = arith.constant 0 : i32
    %c0_i32_0 = arith.constant 0 : i32
    %c0_i32_1 = arith.constant 0 : i32
    return %c0_i32, %c0_i32_0 : i32, i32
  }
  func.func @transform_13(%arg0: i32) -> (i32, i32) {
    %c0_i32 = arith.constant 0 : i32
    %c0_i32_0 = arith.constant 0 : i32
    %c0_i32_1 = arith.constant 0 : i32
    return %c0_i32, %c0_i32_0 : i32, i32
  }
  func.func @transform_14(%arg0: i32) -> (i32, i32) {
    %c0_i32 = arith.constant 0 : i32
    %c0_i32_0 = arith.constant 0 : i32
    return %arg0, %c0_i32 : i32, i32
  }
}

</mosaic_0001>

<bundles_post_ra>
// kernel: oracle_policy_forward.1
= control target key start
LH: loop header
LB: loop body
LE: loop exit
PB: predicated region body
PF: predicated region fallthrough
CT: control target
= control target key end

     0   :  { %s7584_s29 = smov 0   ;;  %s8843_s0 = inlined_call_operand.vmem [shape: f32[1024,40], index: 0, kind: input, shape index: {}]   ;;  %s8844_s1 = inlined_call_operand.vmem [shape: f32[40,32], index: 1, kind: input, shape index: {}]   ;;  %s8845_s2 = inlined_call_operand.vmem [shape: f32[1,32], index: 2, kind: input, shape index: {}]   ;;  %s8846_s3 = inlined_call_operand.vmem [shape: f32[32,32], index: 3, kind: input, shape index: {}]   ;;  %s8847_s4 = inlined_call_operand.vmem [shape: f32[1,32], index: 4, kind: input, shape index: {}]   ;;  %s8848_s5 = inlined_call_operand.vmem [shape: f32[32,8], index: 5, kind: input, shape index: {}]   ;;  %s8849_s6 = inlined_call_operand.vmem [shape: f32[1,8], index: 6, kind: input, shape index: {}]   ;;  %s8850_s7 = inlined_call_operand.vmem [shape: f32[40,64], index: 7, kind: input, shape index: {}]   ;;  %s8851_s8 = inlined_call_operand.vmem [shape: f32[8,64], index: 8, kind: input, shape index: {}]   ;;  %s8852_s9 = inlined_call_operand.vmem [shape: f32[1,64], index: 9, kind: input, shape index: {}]   ;;  %s8853_s10 = inlined_call_operand.vmem [shape: f32[64,64], index: 10, kind: input, shape index: {}]   ;;  %s8854_s11 = inlined_call_operand.vmem [shape: f32[1,64], index: 11, kind: input, shape index: {}]   ;;  %s8855_s12 = inlined_call_operand.vmem [shape: f32[64,8], index: 12, kind: input, shape index: {}]   ;;  %s8856_s13 = inlined_call_operand.vmem [shape: f32[1,8], index: 13, kind: input, shape index: {}]   ;;  %s8857_s14 = inlined_call_operand.vmem [shape: f32[1024,8], index: 14, kind: output, shape index: {}]  }
   0x1 LB: > { %s4967_s30 = sadd.s32 4294967295, %s7507_s29   ;;  %p4971_p0 = scmp.ge.s32.totalorder %s7507_s29, 1  ;;  %s7507_s29 = sphi %s7584_s29, %s24_s29  }
   0x2   : > { %p413_p1 = scmp.lt.s32.totalorder %s7507_s29, 3 }
   0x4   : > { %p414_p2 = pnand %p4971_p0, %p413_p1 }
   0x5   : > { %v535_v0 = vld [vmem:[%s8844_s1] sm:$0xff] (!%p414_p2)  ;;  %v536_v1 = vld [vmem:[%s8844_s1 + $0x8] sm:$0xff] (!%p414_p2)  ;;  %v537_v2 = vld [vmem:[%s8844_s1 + $0x10] sm:$0xff] (!%p414_p2)  ;;  %s4972_s21 = sshll.u32 (!%p414_p2), %s4967_s30, 6  ;;  %vm547_vm0 = vcmask (!%p414_p2), 326656   ;;  %vm1200_vm1 = vcmask (!%p414_p2), 261120  }
   0x6   : > { %417 = sbr.rel (%p414_p2) target bundleno = 1621 (0x655), region = 76  ;;  %v6657_v3 = vpack.c.bf16 (!%p414_p2), %v536_v1, %v535_v0  ;;  %v538_v4 = vld [vmem:[%s8844_s1 + $0x18] sm:$0xff] (!%p414_p2)  ;;  %p460_p3 = scmp.lt.s32.totalorder (!%p414_p2), %s4972_s21, 127  ;;  %v1189_v5 = vld [vmem:[%s8846_s3] sm:$0xff] (!%p414_p2)  ;;  %v1190_v7 = vld [vmem:[%s8846_s3 + $0x8] sm:$0xff] (!%p414_p2)  ;;  %vm2500_vm2 = vcmask (!%p414_p2), 64512  }
   0x7   : > { %v6661_v6 = vpack.c.bf16 (!%p414_p2), %v538_v4, %v537_v2  ;;  %v6665_v8 = vpack.c.bf16 (!%p414_p2), %v1190_v7, %v1189_v5  ;;  %v539_v9 = vld [vmem:[%s8844_s1 + $0x20] sm:$0xff] (!%p414_p2)  ;;  %v1191_v21 = vld [vmem:[%s8846_s3 + $0x10] sm:$0xff] (!%p414_p2)  ;;  %v1192_v22 = vld [vmem:[%s8846_s3 + $0x18] sm:$0xff] (!%p414_p2)  ;;  %vm3613_vm3 = vcmask (!%p414_p2), 523264  }
   0x8   : > { %6658 = vmatprep.subr.bf16.mxu0 (!%p414_p2), %v6657_v3  ;;  %v6669_v23 = vpack.c.bf16 (!%p414_p2), %v1192_v22, %v1191_v21 }
   0x9   : > { %6660 = vmatpush3.bf16.msra.mxu0 (!%p414_p2), %v6657_v3  ;;  %6721 = vmatprep.subr.bf16.mxu1 (!%p414_p2), %v6665_v8 }
   0xa   : > { %6662 = vmatprep.subr.bf16.mxu0 (!%p414_p2), %v6661_v6  ;;  %6723 = vmatpush3.bf16.msra.mxu1 (!%p414_p2), %v6665_v8 }
   0xb   : > { %6722 = vmatprep.subr.bf16.mxu1 (!%p414_p2), %v6669_v23 }
   0xd   : > { %s8859_s21 = smov (!%p460_p3, %s4972_s21), 127  ;;  %6664 = vmatpush3.bf16.msra.mxu0 %v6661_v6 }
   0xe   : > { %s4973_s28 = sshll.u32 %s8859_s21, 3  ;;  %5923 = vmatprep.subr.mxu0 %v539_v9  ;;  %6724 = vmatpush3.bf16.msra.mxu1 %v6669_v23 }
   0xf   : > { %s7621_s18 = scalar_lea.vmem %s8843_s0, %s4973_s28  ;;  %s8646_s30 = scalar_lea.vmem %s8857_s14, %s4973_s28 }
  0x10   : > { %v471_v10 = vld [vmem:[%s7621_s18] sm:$0xff]  ;;  %v472_v11 = vld [vmem:[%s7621_s18 + $0x8] sm:$0xff]  ;;  %v473_v12 = vld [vmem:[%s7621_s18 + $0x10] sm:$0xff] }
  0x11   : > { %5925 = vmatprep.mubr.msk.f32.mxu0 %vm547_vm0, %v471_v10  ;;  %5924 = vmatpush3.msra.mxu0 %v539_v9  ;;  %v474_v13 = vld [vmem:[%s7621_s18 + $0x18] sm:$0xff]  ;;  %v475_v14 = vld [vmem:[%s7621_s18 + $0x20] sm:$0xff]  ;;  %v476_v15 = vld [vmem:[%s7621_s18 + $0x28] sm:$0xff] }
  0x12   : > { %5926 = vmatmul.mubr.msk.f32.vlgmr.msra.gmra.mrb[0].mxu0 %vm547_vm0, %v472_v11  ;;  %6666 = vmatprep.subr.bf16.mxu0 %v6665_v8  ;;  %v477_v16 = vld [vmem:[%s7621_s18 + $0x30] sm:$0xff]  ;;  %v478_v17 = vld [vmem:[%s7621_s18 + $0x38] sm:$0xff]  ;;  %v479_v18 = vld [vmem:[%s7621_s18 + $0x40] sm:$0xff] }
  0x13   : > { %5928 = vmatprep.mubr.msk.f32.mxu0 %vm547_vm0, %v473_v12  ;;  %6668 = vmatpush3.bf16.msra.mxu0 %v6665_v8  ;;  %v480_v19 = vld [vmem:[%s7621_s18 + $0x48] sm:$0xff]  ;;  %v481_v20 = vld [vmem:[%s7621_s18 + $0x50] sm:$0xff]  ;;  %v482_v24 = vld [vmem:[%s7621_s18 + $0x58] sm:$0xff] }
  0x14   : > { %v483_v25 = vld [vmem:[%s7621_s18 + $0x60] sm:$0xff]  ;;  %6670 = vmatprep.subr.bf16.mxu0 %v6669_v23  ;;  %v484_v26 = vld [vmem:[%s7621_s18 + $0x68] sm:$0xff]  ;;  %v485_v27 = vld [vmem:[%s7621_s18 + $0x70] sm:$0xff] }
  0x15   : > { %v486_v28 = vld [vmem:[%s7621_s18 + $0x78] sm:$0xff]  ;;  %v487_v29 = vld [vmem:[%s7621_s18 + $0x80] sm:$0xff]  ;;  %v488_v30 = vld [vmem:[%s7621_s18 + $0x88] sm:$0xff] }
  0x16   : > { %5929 = vmatmul.mubr.msk.f32.gmra.mrb[2].mxu0 %vm547_vm0, %v474_v13  ;;  %v489_v31 = vld [vmem:[%s7621_s18 + $0x90] sm:$0xff]  ;;  %v490_v32 = vld [vmem:[%s7621_s18 + $0x98] sm:$0xff]  ;;  %v491_v33 = vld [vmem:[%s7621_s18 + $0xa0] sm:$0xff] }
  0x17   : > { %5931 = vmatprep.mubr.msk.f32.mxu0 %vm547_vm0, %v475_v14  ;;  %6672 = vmatpush3.bf16.msra.mxu0 %v6669_v23  ;;  %v492_v34 = vld [vmem:[%s7621_s18 + $0xa8] sm:$0xff]  ;;  %v493_v35 = vld [vmem:[%s7621_s18 + $0xb0] sm:$0xff]  ;;  %v494_v36 = vld [vmem:[%s7621_s18 + $0xb8] sm:$0xff] }
  0x18   : > { %v495_v37 = vld [vmem:[%s7621_s18 + $0xc0] sm:$0xff]  ;;  %v496_v38 = vld [vmem:[%s7621_s18 + $0xc8] sm:$0xff]  ;;  %v497_v39 = vld [vmem:[%s7621_s18 + $0xd0] sm:$0xff] }
  0x19   : > { %v498_v40 = vld [vmem:[%s7621_s18 + $0xd8] sm:$0xff]  ;;  %v499_v41 = vld [vmem:[%s7621_s18 + $0xe0] sm:$0xff]  ;;  %v500_v42 = vld [vmem:[%s7621_s18 + $0xe8] sm:$0xff] }
  0x1a   : > { %5932 = vmatmul.mubr.msk.f32.gmra.mrb[4].mxu0 %vm547_vm0, %v476_v15  ;;  %v501_v43 = vld [vmem:[%s7621_s18 + $0xf0] sm:$0xff]  ;;  %v502_v44 = vld [vmem:[%s7621_s18 + $0xf8] sm:$0xff]  ;;  %v503_v45 = vld [vmem:[%s7621_s18 + $0x100] sm:$0xff] }
  0x1b   : > { %5934 = vmatprep.mubr.msk.f32.mxu0 %vm547_vm0, %v477_v16  ;;  %v504_v46 = vld [vmem:[%s7621_s18 + $0x108] sm:$0xff]  ;;  %v505_v47 = vld [vmem:[%s7621_s18 + $0x110] sm:$0xff]  ;;  %v506_v48 = vld [vmem:[%s7621_s18 + $0x118] sm:$0xff] }
  0x1c   : > { %v507_v49 = vld [vmem:[%s7621_s18 + $0x120] sm:$0xff]  ;;  %v508_v50 = vld [vmem:[%s7621_s18 + $0x128] sm:$0xff]  ;;  %v509_v51 = vld [vmem:[%s7621_s18 + $0x130] sm:$0xff] }
  0x1d   : > { %v510_v52 = vld [vmem:[%s7621_s18 + $0x138] sm:$0xff]  ;;  %v511_v53 = vld [vmem:[%s7621_s18 + $0x140] sm:$0xff]  ;;  %v512_v54 = vld [vmem:[%s7621_s18 + $0x148] sm:$0xff] }
  0x1e   : > { %5935 = vmatmul.mubr.msk.f32.gmra.mrb[6].mxu0 %vm547_vm0, %v478_v17  ;;  %v513_v55 = vld [vmem:[%s7621_s18 + $0x150] sm:$0xff]  ;;  %v514_v56 = vld [vmem:[%s7621_s18 + $0x158] sm:$0xff]  ;;  %v515_v57 = vld [vmem:[%s7621_s18 + $0x160] sm:$0xff] }
  0x1f   : > { %5937 = vmatprep.mubr.msk.f32.mxu0 %vm547_vm0, %v479_v18  ;;  %v516_v58 = vld [vmem:[%s7621_s18 + $0x168] sm:$0xff]  ;;  %v517_v59 = vld [vmem:[%s7621_s18 + $0x170] sm:$0xff]  ;;  %v518_v60 = vld [vmem:[%s7621_s18 + $0x178] sm:$0xff] }
  0x20   : > { %v519_v61 = vld [vmem:[%s7621_s18 + $0x180] sm:$0xff]  ;;  %v520_v62 = vld [vmem:[%s7621_s18 + $0x188] sm:$0xff]  ;;  %v521_v63 = vld [vmem:[%s7621_s18 + $0x190] sm:$0xff] }
  0x21   : > { %v522_v0 = vld [vmem:[%s7621_s18 + $0x198] sm:$0xff]  ;;  %v523_v1 = vld [vmem:[%s7621_s18 + $0x1a0] sm:$0xff]  ;;  %v524_v2 = vld [vmem:[%s7621_s18 + $0x1a8] sm:$0xff] }
  0x22   : > { %5938 = vmatmul.mubr.msk.f32.gmra.mrb[8].mxu0 %vm547_vm0, %v480_v19  ;;  %v525_v3 = vld [vmem:[%s7621_s18 + $0x1b0] sm:$0xff]  ;;  %v526_v4 = vld [vmem:[%s7621_s18 + $0x1b8] sm:$0xff]  ;;  %v527_v5 = vld [vmem:[%s7621_s18 + $0x1c0] sm:$0xff] }
  0x23   : > { %5940 = vmatprep.mubr.msk.f32.mxu0 %vm547_vm0, %v481_v20  ;;  %v528_v6 = vld [vmem:[%s7621_s18 + $0x1c8] sm:$0xff]  ;;  %v529_v7 = vld [vmem:[%s7621_s18 + $0x1d0] sm:$0xff]  ;;  %v530_v8 = vld [vmem:[%s7621_s18 + $0x1d8] sm:$0xff] }
  0x24   : > { %v531_v9 = vld [vmem:[%s7621_s18 + $0x1e0] sm:$0xff]  ;;  %v532_v10 = vld [vmem:[%s7621_s18 + $0x1e8] sm:$0xff]  ;;  %v533_v11 = vld [vmem:[%s7621_s18 + $0x1f0] sm:$0xff] }
  0x25   : > { %v534_v12 = vld [vmem:[%s7621_s18 + $0x1f8] sm:$0xff]  ;;  %v7760_v13 = vld [vmem:[%s8845_s2] ss:$0 sm:$0xff] }
  0x26   : > { %5941 = vmatmul.mubr.msk.f32.gmra.mrb[10].mxu0 %vm547_vm0, %v482_v24 }
  0x27   : > { %5943 = vmatprep.mubr.msk.f32.mxu0 %vm547_vm0, %v483_v25 }
  0x2a   : > { %5944 = vmatmul.mubr.msk.f32.gmra.mrb[12].mxu0 %vm547_vm0, %v484_v26 }
  0x2b   : > { %5946 = vmatprep.mubr.msk.f32.mxu0 %vm547_vm0, %v485_v27  ;;  %v1842_v27 = vld [vmem:[%s8848_s5] sm:$0xff] }
  0x2e   : > { %5947 = vmatmul.mubr.msk.f32.gmra.mrb[14].mxu0 %vm547_vm0, %v486_v28  ;;  %v1843_v28 = vld [vmem:[%s8848_s5 + $0x8] sm:$0xff] }
  0x2f   : > { %5949 = vmatprep.mubr.msk.f32.mxu0 %vm547_vm0, %v487_v29 }
  0x32   : > { %5950 = vmatmul.mubr.msk.f32.gmra.mrb[16].mxu0 %vm547_vm0, %v488_v30 }
  0x33   : > { %5952 = vmatprep.mubr.msk.f32.mxu0 %vm547_vm0, %v489_v31  ;;  %v7775_v31 = vpack.c.bf16 %v1843_v28, %v1842_v27 }
  0x35   : > { %6674 = vmatprep.subr.bf16.mxu1 %v7775_v31 }
  0x36   : > { %5953 = vmatmul.mubr.msk.f32.gmra.mrb[18].mxu0 %vm547_vm0, %v490_v32 }
  0x37   : > { %5955 = vmatprep.mubr.msk.f32.mxu0 %vm547_vm0, %v491_v33 }
  0x3a   : > { %5956 = vmatmul.mubr.msk.f32.gmra.mrb[20].mxu0 %vm547_vm0, %v492_v34 }
  0x3b   : > { %5958 = vmatprep.mubr.msk.f32.mxu0 %vm547_vm0, %v493_v35 }
  0x3e   : > { %5959 = vmatmul.mubr.msk.f32.gmra.mrb[22].mxu0 %vm547_vm0, %v494_v36 }
  0x3f   : > { %5961 = vmatprep.mubr.msk.f32.mxu0 %vm547_vm0, %v495_v37 }
  0x42   : > { %5962 = vmatmul.mubr.msk.f32.gmra.mrb[24].mxu0 %vm547_vm0, %v496_v38 }
  0x43   : > { %5964 = vmatprep.mubr.msk.f32.mxu0 %vm547_vm0, %v497_v39 }
  0x46   : > { %5965 = vmatmul.mubr.msk.f32.gmra.mrb[26].mxu0 %vm547_vm0, %v498_v40 }
  0x47   : > { %5967 = vmatprep.mubr.msk.f32.mxu0 %vm547_vm0, %v499_v41 }
  0x4a   : > { %5968 = vmatmul.mubr.msk.f32.gmra.mrb[28].mxu0 %vm547_vm0, %v500_v42 }
  0x4b   : > { %5970 = vmatprep.mubr.msk.f32.mxu0 %vm547_vm0, %v501_v43 }
  0x4e   : > { %5971 = vmatmul.mubr.msk.f32.gmra.mrb[30].mxu0 %vm547_vm0, %v502_v44 }
  0x4f   : > { %5973 = vmatprep.mubr.msk.f32.mxu0 %vm547_vm0, %v503_v45 }
  0x52   : > { %5974 = vmatmul.mubr.msk.f32.gmra.mrb[32].mxu0 %vm547_vm0, %v504_v46 }
  0x53   : > { %5976 = vmatprep.mubr.msk.f32.mxu0 %vm547_vm0, %v505_v47 }
  0x56   : > { %5977 = vmatmul.mubr.msk.f32.gmra.mrb[34].mxu0 %vm547_vm0, %v506_v48 }
  0x57   : > { %5979 = vmatprep.mubr.msk.f32.mxu0 %vm547_vm0, %v507_v49 }
  0x5a   : > { %5980 = vmatmul.mubr.msk.f32.gmra.mrb[36].mxu0 %vm547_vm0, %v508_v50 }
  0x5b   : > { %5982 = vmatprep.mubr.msk.f32.mxu0 %vm547_vm0, %v509_v51 }
  0x5e   : > { %5983 = vmatmul.mubr.msk.f32.gmra.mrb[38].mxu0 %vm547_vm0, %v510_v52 }
  0x5f   : > { %5985 = vmatprep.mubr.msk.f32.mxu0 %vm547_vm0, %v511_v53 }
  0x62   : > { %5986 = vmatmul.mubr.msk.f32.gmra.mrb[40].mxu0 %vm547_vm0, %v512_v54 }
  0x63   : > { %5988 = vmatprep.mubr.msk.f32.mxu0 %vm547_vm0, %v513_v55 }
  0x66   : > { %5989 = vmatmul.mubr.msk.f32.gmra.mrb[42].mxu0 %vm547_vm0, %v514_v56 }
  0x67   : > { %5991 = vmatprep.mubr.msk.f32.mxu0 %vm547_vm0, %v515_v57 }
  0x6a   : > { %5992 = vmatmul.mubr.msk.f32.gmra.mrb[44].mxu0 %vm547_vm0, %v516_v58 }
  0x6b   : > { %5994 = vmatprep.mubr.msk.f32.mxu0 %vm547_vm0, %v517_v59 }
  0x6e   : > { %5995 = vmatmul.mubr.msk.f32.gmra.mrb[46].mxu0 %vm547_vm0, %v518_v60 }
  0x6f   : > { %5997 = vmatprep.mubr.msk.f32.mxu0 %vm547_vm0, %v519_v61 }
  0x72   : > { %5998 = vmatmul.mubr.msk.f32.gmra.mrb[48].mxu0 %vm547_vm0, %v520_v62 }
  0x73   : > { %6000 = vmatprep.mubr.msk.f32.mxu0 %vm547_vm0, %v521_v63 }
  0x76   : > { %6001 = vmatmul.mubr.msk.f32.gmra.mrb[50].mxu0 %vm547_vm0, %v522_v0 }
  0x77   : > { %6003 = vmatprep.mubr.msk.f32.mxu0 %vm547_vm0, %v523_v1 }
  0x7a   : > { %6004 = vmatmul.mubr.msk.f32.gmra.mrb[52].mxu0 %vm547_vm0, %v524_v2 }
  0x7b   : > { %6006 = vmatprep.mubr.msk.f32.mxu0 %vm547_vm0, %v525_v3 }
  0x7e   : > { %6007 = vmatmul.mubr.msk.f32.gmra.mrb[54].mxu0 %vm547_vm0, %v526_v4 }
  0x7f   : > { %6009 = vmatprep.mubr.msk.f32.mxu0 %vm547_vm0, %v527_v5 }
  0x82   : > { %6010 = vmatmul.mubr.msk.f32.gmra.mrb[56].mxu0 %vm547_vm0, %v528_v6 }
  0x83   : > { %6012 = vmatprep.mubr.msk.f32.mxu0 %vm547_vm0, %v529_v7 }
  0x86   : > { %6013 = vmatmul.mubr.msk.f32.gmra.mrb[58].mxu0 %vm547_vm0, %v530_v8 }
  0x87   : > { %6015 = vmatprep.mubr.msk.f32.mxu0 %vm547_vm0, %v531_v9 }
  0x8a   : > { %6016 = vmatmul.mubr.msk.f32.gmra.mrb[60].mxu0 %vm547_vm0, %v532_v10 }
  0x8b   : > { %6018 = vmatprep.mubr.msk.f32.mxu0 %vm547_vm0, %v533_v11 }
  0x8e   : > { %6019 = vmatmul.mubr.msk.f32.gmra.mrb[62].mxu0 %vm547_vm0, %v534_v12 }
  0xe5   : > { %v5927_v14 = vpop.f32.mrb[0].mxu0 }
  0xe6   : > { %v812_v15 = vadd.f32 %v5927_v14, %v7760_v13  ;;  %v806_v16 = vpop.f32.mrb[1].mxu0 }
  0xe7   : > { %v807_v17 = vadd.f32 %v7760_v13, %v806_v16 }
  0xe9   : > { %6797 = vtanh.f32 %v807_v17  ;;  %v5930_v18 = vpop.f32.mrb[2].mxu0 }
  0xea   : > { %6799 = vtanh.f32 %v812_v15  ;;  %v822_v19 = vadd.f32 %v5930_v18, %v7760_v13  ;;  %v816_v20 = vpop.f32.mrb[3].mxu0 }
  0xeb   : > { %v817_v21 = vadd.f32 %v7760_v13, %v816_v20 }
  0xed   : > { %6801 = vtanh.f32 %v817_v21  ;;  %v5933_v22 = vpop.f32.mrb[4].mxu0 }
  0xee   : > { %6803 = vtanh.f32 %v822_v19  ;;  %v832_v23 = vadd.f32 %v5933_v22, %v7760_v13  ;;  %v826_v24 = vpop.f32.mrb[5].mxu0 }
  0xef   : > { %v827_v25 = vadd.f32 %v7760_v13, %v826_v24 }
  0xf1   : > { %6805 = vtanh.f32 %v827_v25  ;;  %v5936_v26 = vpop.f32.mrb[6].mxu0 }
  0xf2   : > { %6807 = vtanh.f32 %v832_v23  ;;  %v842_v29 = vadd.f32 %v5936_v26, %v7760_v13  ;;  %v836_v30 = vpop.f32.mrb[7].mxu0 }
  0xf3   : > { %v6798_v32 = vpop.eup %6797  ;;  %v837_v33 = vadd.f32 %v7760_v13, %v836_v30 }
  0xf4   : > { %v6800_v34 = vpop.eup %6799  ;;  %6029 = vmatprep.mubr.msk.f32.mxu0 %vm1200_vm1, %v6798_v32 }
  0xf5   : > { %6809 = vtanh.f32 %v837_v33  ;;  %v5939_v35 = vpop.f32.mrb[8].mxu0  ;;  %6030 = vmatmul.mubr.msk.f32.vlgmr.msra.gmra.mrb[64].mxu0 %vm1200_vm1, %v6800_v34 }
  0xf6   : > { %6811 = vtanh.f32 %v842_v29  ;;  %v852_v36 = vadd.f32 %v5939_v35, %v7760_v13  ;;  %v846_v37 = vpop.f32.mrb[9].mxu0 }
  0xf7   : > { %v6802_v38 = vpop.eup %6801  ;;  %v847_v39 = vadd.f32 %v7760_v13, %v846_v37 }
  0xf8   : > { %v6804_v40 = vpop.eup %6803  ;;  %6032 = vmatprep.mubr.msk.f32.mxu0 %vm1200_vm1, %v6802_v38 }
  0xf9   : > { %6813 = vtanh.f32 %v847_v39  ;;  %v5942_v41 = vpop.f32.mrb[10].mxu0  ;;  %6033 = vmatmul.mubr.msk.f32.gmra.mrb[66].mxu0 %vm1200_vm1, %v6804_v40 }
  0xfa   : > { %6815 = vtanh.f32 %v852_v36  ;;  %v862_v42 = vadd.f32 %v5942_v41, %v7760_v13  ;;  %v856_v43 = vpop.f32.mrb[11].mxu0 }
  0xfb   : > { %v6806_v44 = vpop.eup %6805  ;;  %v857_v45 = vadd.f32 %v7760_v13, %v856_v43 }
  0xfc   : > { %v6808_v46 = vpop.eup %6807  ;;  %6035 = vmatprep.mubr.msk.f32.mxu0 %vm1200_vm1, %v6806_v44 }
  0xfd   : > { %6817 = vtanh.f32 %v857_v45  ;;  %v5945_v47 = vpop.f32.mrb[12].mxu0  ;;  %6036 = vmatmul.mubr.msk.f32.gmra.mrb[68].mxu0 %vm1200_vm1, %v6808_v46 }
  0xfe   : > { %6819 = vtanh.f32 %v862_v42  ;;  %v872_v48 = vadd.f32 %v5945_v47, %v7760_v13  ;;  %v866_v49 = vpop.f32.mrb[13].mxu0 }
  0xff   : > { %v6810_v50 = vpop.eup %6809  ;;  %v867_v51 = vadd.f32 %v7760_v13, %v866_v49 }
 0x100   : > { %v6812_v52 = vpop.eup %6811  ;;  %6038 = vmatprep.mubr.msk.f32.mxu0 %vm1200_vm1, %v6810_v50 }
 0x101   : > { %6821 = vtanh.f32 %v867_v51  ;;  %v5948_v53 = vpop.f32.mrb[14].mxu0  ;;  %6039 = vmatmul.mubr.msk.f32.gmra.mrb[70].mxu0 %vm1200_vm1, %v6812_v52 }
 0x102   : > { %6823 = vtanh.f32 %v872_v48  ;;  %v882_v54 = vadd.f32 %v5948_v53, %v7760_v13  ;;  %v876_v55 = vpop.f32.mrb[15].mxu0 }
 0x103   : > { %v6814_v56 = vpop.eup %6813  ;;  %v877_v57 = vadd.f32 %v7760_v13, %v876_v55 }
 0x104   : > { %v6816_v58 = vpop.eup %6815  ;;  %6041 = vmatprep.mubr.msk.f32.mxu0 %vm1200_vm1, %v6814_v56 }
 0x105   : > { %6825 = vtanh.f32 %v877_v57  ;;  %v5951_v59 = vpop.f32.mrb[16].mxu0  ;;  %6042 = vmatmul.mubr.msk.f32.gmra.mrb[72].mxu0 %vm1200_vm1, %v6816_v58  ;;  %v1844_v57 = vld [vmem:[%s8848_s5 + $0x10] sm:$0xff]  ;;  %v1845_v58 = vld [vmem:[%s8848_s5 + $0x18] sm:$0xff] }
 0x106   : > { %6827 = vtanh.f32 %v882_v54  ;;  %v892_v60 = vadd.f32 %v5951_v59, %v7760_v13  ;;  %v886_v61 = vpop.f32.mrb[17].mxu0 }
 0x107   : > { %v6818_v62 = vpop.eup %6817  ;;  %v887_v63 = vadd.f32 %v7760_v13, %v886_v61 }
 0x108   : > { %v6820_v0 = vpop.eup %6819  ;;  %6044 = vmatprep.mubr.msk.f32.mxu0 %vm1200_vm1, %v6818_v62 }
 0x109   : > { %6829 = vtanh.f32 %v887_v63  ;;  %v5954_v1 = vpop.f32.mrb[18].mxu0  ;;  %6045 = vmatmul.mubr.msk.f32.gmra.mrb[74].mxu0 %vm1200_vm1, %v6820_v0  ;;  %v6677_v0 = vpack.c.bf16 %v1845_v58, %v1844_v57 }
 0x10a   : > { %6831 = vtanh.f32 %v892_v60  ;;  %v902_v2 = vadd.f32 %v5954_v1, %v7760_v13  ;;  %v896_v3 = vpop.f32.mrb[19].mxu0 }
 0x10b   : > { %v6822_v4 = vpop.eup %6821  ;;  %v897_v5 = vadd.f32 %v7760_v13, %v896_v3 }
 0x10c   : > { %v6824_v6 = vpop.eup %6823  ;;  %6047 = vmatprep.mubr.msk.f32.mxu0 %vm1200_vm1, %v6822_v4 }
 0x10d   : > { %6833 = vtanh.f32 %v897_v5  ;;  %v5957_v7 = vpop.f32.mrb[20].mxu0  ;;  %6048 = vmatmul.mubr.msk.f32.gmra.mrb[76].mxu0 %vm1200_vm1, %v6824_v6 }
 0x10e   : > { %6835 = vtanh.f32 %v902_v2  ;;  %v912_v8 = vadd.f32 %v5957_v7, %v7760_v13  ;;  %v906_v9 = vpop.f32.mrb[21].mxu0 }
 0x10f   : > { %v6826_v10 = vpop.eup %6825  ;;  %v907_v11 = vadd.f32 %v7760_v13, %v906_v9 }
 0x110   : > { %v6828_v12 = vpop.eup %6827  ;;  %6050 = vmatprep.mubr.msk.f32.mxu0 %vm1200_vm1, %v6826_v10 }
 0x111   : > { %6837 = vtanh.f32 %v907_v11  ;;  %v5960_v14 = vpop.f32.mrb[22].mxu0  ;;  %6051 = vmatmul.mubr.msk.f32.gmra.mrb[78].mxu0 %vm1200_vm1, %v6828_v12 }
 0x112   : > { %6839 = vtanh.f32 %v912_v8  ;;  %v922_v15 = vadd.f32 %v5960_v14, %v7760_v13  ;;  %v916_v16 = vpop.f32.mrb[23].mxu0 }
 0x113   : > { %v6830_v17 = vpop.eup %6829  ;;  %v917_v18 = vadd.f32 %v7760_v13, %v916_v16 }
 0x114   : > { %v6832_v19 = vpop.eup %6831  ;;  %6053 = vmatprep.mubr.msk.f32.mxu0 %vm1200_vm1, %v6830_v17 }
 0x115   : > { %6841 = vtanh.f32 %v917_v18  ;;  %v5963_v20 = vpop.f32.mrb[24].mxu0  ;;  %6054 = vmatmul.mubr.msk.f32.gmra.mrb[80].mxu0 %vm1200_vm1, %v6832_v19 }
 0x116   : > { %6843 = vtanh.f32 %v922_v15  ;;  %v932_v21 = vadd.f32 %v5963_v20, %v7760_v13  ;;  %v926_v22 = vpop.f32.mrb[25].mxu0 }
 0x117   : > { %v6834_v23 = vpop.eup %6833  ;;  %v927_v24 = vadd.f32 %v7760_v13, %v926_v22 }
 0x118   : > { %v6836_v25 = vpop.eup %6835  ;;  %6056 = vmatprep.mubr.msk.f32.mxu0 %vm1200_vm1, %v6834_v23 }
 0x119   : > { %6845 = vtanh.f32 %v927_v24  ;;  %v5966_v26 = vpop.f32.mrb[26].mxu0  ;;  %6057 = vmatmul.mubr.msk.f32.gmra.mrb[82].mxu0 %vm1200_vm1, %v6836_v25 }
 0x11a   : > { %6847 = vtanh.f32 %v932_v21  ;;  %v942_v27 = vadd.f32 %v5966_v26, %v7760_v13  ;;  %v936_v28 = vpop.f32.mrb[27].mxu0 }
 0x11b   : > { %v6838_v29 = vpop.eup %6837  ;;  %v937_v30 = vadd.f32 %v7760_v13, %v936_v28 }
 0x11c   : > { %v6840_v32 = vpop.eup %6839  ;;  %6059 = vmatprep.mubr.msk.f32.mxu0 %vm1200_vm1, %v6838_v29 }
 0x11d   : > { %6849 = vtanh.f32 %v937_v30  ;;  %v5969_v33 = vpop.f32.mrb[28].mxu0  ;;  %6060 = vmatmul.mubr.msk.f32.gmra.mrb[84].mxu0 %vm1200_vm1, %v6840_v32 }
 0x11e   : > { %6851 = vtanh.f32 %v942_v27  ;;  %v952_v34 = vadd.f32 %v5969_v33, %v7760_v13  ;;  %v946_v35 = vpop.f32.mrb[29].mxu0 }
 0x11f   : > { %v6842_v36 = vpop.eup %6841  ;;  %v947_v37 = vadd.f32 %v7760_v13, %v946_v35 }
 0x120   : > { %v6844_v38 = vpop.eup %6843  ;;  %6062 = vmatprep.mubr.msk.f32.mxu0 %vm1200_vm1, %v6842_v36 }
 0x121   : > { %6853 = vtanh.f32 %v947_v37  ;;  %v5972_v39 = vpop.f32.mrb[30].mxu0  ;;  %6063 = vmatmul.mubr.msk.f32.gmra.mrb[86].mxu0 %vm1200_vm1, %v6844_v38 }
 0x122   : > { %6855 = vtanh.f32 %v952_v34  ;;  %v962_v40 = vadd.f32 %v5972_v39, %v7760_v13  ;;  %v956_v41 = vpop.f32.mrb[31].mxu0 }
 0x123   : > { %v6846_v42 = vpop.eup %6845  ;;  %v957_v43 = vadd.f32 %v7760_v13, %v956_v41 }
 0x124   : > { %v6848_v44 = vpop.eup %6847  ;;  %6065 = vmatprep.mubr.msk.f32.mxu0 %vm1200_vm1, %v6846_v42 }
 0x125   : > { %6857 = vtanh.f32 %v957_v43  ;;  %v5975_v45 = vpop.f32.mrb[32].mxu0  ;;  %6066 = vmatmul.mubr.msk.f32.gmra.mrb[88].mxu0 %vm1200_vm1, %v6848_v44 }
 0x126   : > { %6859 = vtanh.f32 %v962_v40  ;;  %v972_v46 = vadd.f32 %v5975_v45, %v7760_v13  ;;  %v966_v47 = vpop.f32.mrb[33].mxu0 }
 0x127   : > { %v6850_v48 = vpop.eup %6849  ;;  %v967_v49 = vadd.f32 %v7760_v13, %v966_v47 }
 0x128   : > { %v6852_v50 = vpop.eup %6851  ;;  %6068 = vmatprep.mubr.msk.f32.mxu0 %vm1200_vm1, %v6850_v48 }
 0x129   : > { %6861 = vtanh.f32 %v967_v49  ;;  %v5978_v51 = vpop.f32.mrb[34].mxu0  ;;  %6069 = vmatmul.mubr.msk.f32.gmra.mrb[90].mxu0 %vm1200_vm1, %v6852_v50 }
 0x12a   : > { %6863 = vtanh.f32 %v972_v46  ;;  %v982_v52 = vadd.f32 %v5978_v51, %v7760_v13  ;;  %v976_v53 = vpop.f32.mrb[35].mxu0 }
 0x12b   : > { %v6854_v54 = vpop.eup %6853  ;;  %v977_v55 = vadd.f32 %v7760_v13, %v976_v53 }
 0x12c   : > { %v6856_v56 = vpop.eup %6855  ;;  %6071 = vmatprep.mubr.msk.f32.mxu0 %vm1200_vm1, %v6854_v54 }
 0x12d   : > { %6865 = vtanh.f32 %v977_v55  ;;  %v5981_v59 = vpop.f32.mrb[36].mxu0  ;;  %6072 = vmatmul.mubr.msk.f32.gmra.mrb[92].mxu0 %vm1200_vm1, %v6856_v56 }
 0x12e   : > { %6867 = vtanh.f32 %v982_v52  ;;  %v992_v60 = vadd.f32 %v5981_v59, %v7760_v13  ;;  %v986_v61 = vpop.f32.mrb[37].mxu0 }
 0x12f   : > { %v6858_v62 = vpop.eup %6857  ;;  %v987_v63 = vadd.f32 %v7760_v13, %v986_v61 }
 0x130   : > { %v6860_v1 = vpop.eup %6859  ;;  %6074 = vmatprep.mubr.msk.f32.mxu1 %vm1200_vm1, %v6858_v62 }
 0x131   : > { %6869 = vtanh.f32 %v987_v63  ;;  %v5984_v2 = vpop.f32.mrb[38].mxu0  ;;  %6075 = vmatmul.mubr.msk.f32.vlgmr.msra.gmra.mrb[0].mxu1 %vm1200_vm1, %v6860_v1 }
 0x132   : > { %6871 = vtanh.f32 %v992_v60  ;;  %v1002_v3 = vadd.f32 %v5984_v2, %v7760_v13  ;;  %v996_v4 = vpop.f32.mrb[39].mxu0  ;;  %6676 = vmatpush3.bf16.msra.mxu1 %v7775_v31 }
 0x133   : > { %v6862_v5 = vpop.eup %6861  ;;  %v997_v6 = vadd.f32 %v7760_v13, %v996_v4  ;;  %6678 = vmatprep.subr.bf16.mxu1 %v6677_v0 }
 0x134   : > { %v6864_v7 = vpop.eup %6863  ;;  %6077 = vmatprep.mubr.msk.f32.mxu1 %vm1200_vm1, %v6862_v5 }
 0x135   : > { %6873 = vtanh.f32 %v997_v6  ;;  %v5987_v8 = vpop.f32.mrb[40].mxu0  ;;  %6078 = vmatmul.mubr.msk.f32.gmra.mrb[2].mxu1 %vm1200_vm1, %v6864_v7 }
 0x136   : > { %6875 = vtanh.f32 %v1002_v3  ;;  %v1012_v9 = vadd.f32 %v5987_v8, %v7760_v13  ;;  %v1006_v10 = vpop.f32.mrb[41].mxu0  ;;  %6680 = vmatpush3.bf16.msra.mxu1 %v6677_v0 }
 0x137   : > { %v6866_v11 = vpop.eup %6865  ;;  %v1007_v12 = vadd.f32 %v7760_v13, %v1006_v10 }
 0x138   : > { %v6868_v31 = vpop.eup %6867  ;;  %6080 = vmatprep.mubr.msk.f32.mxu1 %vm1200_vm1, %v6866_v11 }
 0x139   : > { %6877 = vtanh.f32 %v1007_v12  ;;  %v5990_v14 = vpop.f32.mrb[42].mxu0  ;;  %6081 = vmatmul.mubr.msk.f32.gmra.mrb[4].mxu1 %vm1200_vm1, %v6868_v31 }
 0x13a   : > { %6879 = vtanh.f32 %v1012_v9  ;;  %v1022_v15 = vadd.f32 %v5990_v14, %v7760_v13  ;;  %v1016_v16 = vpop.f32.mrb[43].mxu0 }
 0x13b   : > { %v6870_v17 = vpop.eup %6869  ;;  %v1017_v18 = vadd.f32 %v7760_v13, %v1016_v16 }
 0x13c   : > { %v6872_v19 = vpop.eup %6871  ;;  %6083 = vmatprep.mubr.msk.f32.mxu1 %vm1200_vm1, %v6870_v17 }
 0x13d   : > { %6881 = vtanh.f32 %v1017_v18  ;;  %v5993_v20 = vpop.f32.mrb[44].mxu0  ;;  %6084 = vmatmul.mubr.msk.f32.gmra.mrb[6].mxu1 %vm1200_vm1, %v6872_v19 }
 0x13e   : > { %6883 = vtanh.f32 %v1022_v15  ;;  %v1032_v21 = vadd.f32 %v5993_v20, %v7760_v13  ;;  %v1026_v22 = vpop.f32.mrb[45].mxu0 }
 0x13f   : > { %v6874_v23 = vpop.eup %6873  ;;  %v1027_v24 = vadd.f32 %v7760_v13, %v1026_v22  ;;  %v7909_v22 = vld [vmem:[%s8847_s4] ss:$0 sm:$0xff] }
 0x140   : > { %v6876_v25 = vpop.eup %6875  ;;  %6086 = vmatprep.mubr.msk.f32.mxu1 %vm1200_vm1, %v6874_v23 }
 0x141   : > { %6885 = vtanh.f32 %v1027_v24  ;;  %v5996_v26 = vpop.f32.mrb[46].mxu0  ;;  %6087 = vmatmul.mubr.msk.f32.gmra.mrb[8].mxu1 %vm1200_vm1, %v6876_v25 }
 0x142   : > { %6887 = vtanh.f32 %v1032_v21  ;;  %v1042_v27 = vadd.f32 %v5996_v26, %v7760_v13  ;;  %v1036_v28 = vpop.f32.mrb[47].mxu0 }
 0x143   : > { %v6878_v29 = vpop.eup %6877  ;;  %v1037_v30 = vadd.f32 %v7760_v13, %v1036_v28 }
 0x144   : > { %v6880_v32 = vpop.eup %6879  ;;  %6089 = vmatprep.mubr.msk.f32.mxu1 %vm1200_vm1, %v6878_v29 }
 0x145   : > { %6889 = vtanh.f32 %v1037_v30  ;;  %v5999_v33 = vpop.f32.mrb[48].mxu0  ;;  %6090 = vmatmul.mubr.msk.f32.gmra.mrb[10].mxu1 %vm1200_vm1, %v6880_v32 }
 0x146   : > { %6891 = vtanh.f32 %v1042_v27  ;;  %v1052_v34 = vadd.f32 %v5999_v33, %v7760_v13  ;;  %v1046_v35 = vpop.f32.mrb[49].mxu0 }
 0x147   : > { %v6882_v36 = vpop.eup %6881  ;;  %v1047_v37 = vadd.f32 %v7760_v13, %v1046_v35 }
 0x148   : > { %v6884_v38 = vpop.eup %6883  ;;  %6092 = vmatprep.mubr.msk.f32.mxu1 %vm1200_vm1, %v6882_v36 }
 0x149   : > { %6893 = vtanh.f32 %v1047_v37  ;;  %v6002_v39 = vpop.f32.mrb[50].mxu0  ;;  %6093 = vmatmul.mubr.msk.f32.gmra.mrb[12].mxu1 %vm1200_vm1, %v6884_v38  ;;  %v2499_v37 = vld [vmem:[%s8851_s8] sm:$0xff] }
 0x14a   : > { %6895 = vtanh.f32 %v1052_v34  ;;  %v1062_v40 = vadd.f32 %v6002_v39, %v7760_v13  ;;  %v1056_v41 = vpop.f32.mrb[51].mxu0  ;;  %6229 = vmatprep.subr.mxu0 %v2499_v37 }
 0x14b   : > { %v6886_v42 = vpop.eup %6885  ;;  %v1057_v43 = vadd.f32 %v7760_v13, %v1056_v41  ;;  %6230 = vmatpush3.msra.mxu0 %v2499_v37 }
 0x14c   : > { %v6888_v44 = vpop.eup %6887  ;;  %6095 = vmatprep.mubr.msk.f32.mxu1 %vm1200_vm1, %v6886_v42 }
 0x14d   : > { %6897 = vtanh.f32 %v1057_v43  ;;  %v6005_v45 = vpop.f32.mrb[52].mxu0  ;;  %6096 = vmatmul.mubr.msk.f32.gmra.mrb[14].mxu1 %vm1200_vm1, %v6888_v44 }
 0x14e   : > { %6899 = vtanh.f32 %v1062_v40  ;;  %v1072_v46 = vadd.f32 %v6005_v45, %v7760_v13  ;;  %v1066_v47 = vpop.f32.mrb[53].mxu0 }
 0x14f   : > { %v6890_v48 = vpop.eup %6889  ;;  %v1067_v49 = vadd.f32 %v7760_v13, %v1066_v47 }
 0x150   : > { %v6892_v50 = vpop.eup %6891  ;;  %6098 = vmatprep.mubr.msk.f32.mxu1 %vm1200_vm1, %v6890_v48 }
 0x151   : > { %6901 = vtanh.f32 %v1067_v49  ;;  %v6008_v51 = vpop.f32.mrb[54].mxu0  ;;  %6099 = vmatmul.mubr.msk.f32.gmra.mrb[16].mxu1 %vm1200_vm1, %v6892_v50 }
 0x152   : > { %6903 = vtanh.f32 %v1072_v46  ;;  %v1082_v52 = vadd.f32 %v6008_v51, %v7760_v13  ;;  %v1076_v53 = vpop.f32.mrb[55].mxu0 }
 0x153   : > { %v6894_v54 = vpop.eup %6893  ;;  %v1077_v55 = vadd.f32 %v7760_v13, %v1076_v53 }
 0x154   : > { %v6896_v56 = vpop.eup %6895  ;;  %6101 = vmatprep.mubr.msk.f32.mxu1 %vm1200_vm1, %v6894_v54 }
 0x155   : > { %6905 = vtanh.f32 %v1077_v55  ;;  %v6011_v57 = vpop.f32.mrb[56].mxu0  ;;  %6102 = vmatmul.mubr.msk.f32.gmra.mrb[18].mxu1 %vm1200_vm1, %v6896_v56 }
 0x156   : > { %6907 = vtanh.f32 %v1082_v52  ;;  %v1092_v58 = vadd.f32 %v6011_v57, %v7760_v13  ;;  %v1086_v59 = vpop.f32.mrb[57].mxu0 }
 0x157   : > { %v6898_v60 = vpop.eup %6897  ;;  %v1087_v61 = vadd.f32 %v7760_v13, %v1086_v59 }
 0x158   : > { %v6900_v62 = vpop.eup %6899  ;;  %6104 = vmatprep.mubr.msk.f32.mxu1 %vm1200_vm1, %v6898_v60 }
 0x159   : > { %6909 = vtanh.f32 %v1087_v61  ;;  %v6014_v63 = vpop.f32.mrb[58].mxu0  ;;  %6105 = vmatmul.mubr.msk.f32.gmra.mrb[20].mxu1 %vm1200_vm1, %v6900_v62 }
 0x15a   : > { %6911 = vtanh.f32 %v1092_v58  ;;  %v1102_v0 = vadd.f32 %v6014_v63, %v7760_v13  ;;  %v1096_v1 = vpop.f32.mrb[59].mxu0 }
 0x15b   : > { %v6902_v2 = vpop.eup %6901  ;;  %v1097_v3 = vadd.f32 %v7760_v13, %v1096_v1 }
 0x15c   : > { %v6904_v4 = vpop.eup %6903  ;;  %6107 = vmatprep.mubr.msk.f32.mxu1 %vm1200_vm1, %v6902_v2 }
 0x15d   : > { %6913 = vtanh.f32 %v1097_v3  ;;  %v6017_v5 = vpop.f32.mrb[60].mxu0  ;;  %6108 = vmatmul.mubr.msk.f32.gmra.mrb[22].mxu1 %vm1200_vm1, %v6904_v4 }
 0x15e   : > { %6915 = vtanh.f32 %v1102_v0  ;;  %v1112_v6 = vadd.f32 %v6017_v5, %v7760_v13  ;;  %v1106_v7 = vpop.f32.mrb[61].mxu0 }
 0x15f   : > { %v6906_v8 = vpop.eup %6905  ;;  %v1107_v9 = vadd.f32 %v7760_v13, %v1106_v7 }
 0x160   : > { %v6908_v10 = vpop.eup %6907  ;;  %6110 = vmatprep.mubr.msk.f32.mxu1 %vm1200_vm1, %v6906_v8 }
 0x161   : > { %6917 = vtanh.f32 %v1107_v9  ;;  %v6020_v11 = vpop.f32.mrb[62].mxu0  ;;  %6111 = vmatmul.mubr.msk.f32.gmra.mrb[24].mxu1 %vm1200_vm1, %v6908_v10 }
 0x162   : > { %6919 = vtanh.f32 %v1112_v6  ;;  %v1122_v12 = vadd.f32 %v6020_v11, %v7760_v13  ;;  %v1116_v31 = vpop.f32.mrb[63].mxu0 }
 0x163   : > { %v6910_v14 = vpop.eup %6909  ;;  %v1117_v15 = vadd.f32 %v7760_v13, %v1116_v31 }
 0x164   : > { %v6912_v16 = vpop.eup %6911  ;;  %6113 = vmatprep.mubr.msk.f32.mxu1 %vm1200_vm1, %v6910_v14 }
 0x165   : > { %6921 = vtanh.f32 %v1117_v15  ;;  %6114 = vmatmul.mubr.msk.f32.gmra.mrb[26].mxu1 %vm1200_vm1, %v6912_v16 }
 0x166   : > { %6923 = vtanh.f32 %v1122_v12 }
 0x167   : > { %v6914_v17 = vpop.eup %6913 }
 0x168   : > { %v6916_v18 = vpop.eup %6915  ;;  %6116 = vmatprep.mubr.msk.f32.mxu1 %vm1200_vm1, %v6914_v17 }
 0x169   : > { %6117 = vmatmul.mubr.msk.f32.gmra.mrb[28].mxu1 %vm1200_vm1, %v6916_v18 }
 0x16b   : > { %v6918_v19 = vpop.eup %6917 }
 0x16c   : > { %v6920_v20 = vpop.eup %6919  ;;  %6119 = vmatprep.mubr.msk.f32.mxu1 %vm1200_vm1, %v6918_v19 }
 0x16d   : > { %6120 = vmatmul.mubr.msk.f32.gmra.mrb[30].mxu1 %vm1200_vm1, %v6920_v20 }
 0x16f   : > { %v6922_v13 = vpop.eup %6921 }
 0x170   : > { %v6924_v21 = vpop.eup %6923  ;;  %6122 = vmatprep.mubr.msk.f32.mxu1 %vm1200_vm1, %v6922_v13 }
 0x171   : > { %6123 = vmatmul.mubr.msk.f32.gmra.mrb[32].mxu1 %vm1200_vm1, %v6924_v21 }
 0x1c8   : > { %v6031_v23 = vpop.f32.mrb[64].mxu0 }
 0x1c9   : > { %v1465_v24 = vadd.f32 %v6031_v23, %v7909_v22  ;;  %v1459_v25 = vpop.f32.mrb[65].mxu0 }
 0x1ca   : > { %v1460_v26 = vadd.f32 %v7909_v22, %v1459_v25 }
 0x1cc   : > { %6925 = vtanh.f32 %v1460_v26  ;;  %v6034_v27 = vpop.f32.mrb[66].mxu0 }
 0x1cd   : > { %6927 = vtanh.f32 %v1465_v24  ;;  %v1475_v28 = vadd.f32 %v6034_v27, %v7909_v22  ;;  %v1469_v29 = vpop.f32.mrb[67].mxu0 }
 0x1ce   : > { %v1470_v30 = vadd.f32 %v7909_v22, %v1469_v29 }
 0x1d0   : > { %6929 = vtanh.f32 %v1470_v30  ;;  %v6037_v32 = vpop.f32.mrb[68].mxu0 }
 0x1d1   : > { %6931 = vtanh.f32 %v1475_v28  ;;  %v1485_v33 = vadd.f32 %v6037_v32, %v7909_v22  ;;  %v1479_v34 = vpop.f32.mrb[69].mxu0 }
 0x1d2   : > { %v1480_v35 = vadd.f32 %v7909_v22, %v1479_v34 }
 0x1d4   : > { %6933 = vtanh.f32 %v1480_v35  ;;  %v6040_v36 = vpop.f32.mrb[70].mxu0 }
 0x1d5   : > { %6935 = vtanh.f32 %v1485_v33  ;;  %v1495_v38 = vadd.f32 %v6040_v36, %v7909_v22  ;;  %v1489_v39 = vpop.f32.mrb[71].mxu0 }
 0x1d6   : > { %v6926_v40 = vpop.eup %6925  ;;  %v1490_v41 = vadd.f32 %v7909_v22, %v1489_v39 }
 0x1d7   : > { %v6928_v42 = vpop.eup %6927  ;;  %6133 = vmatprep.mubr.msk.f32.mxu1 %vm1200_vm1, %v6926_v40 }
 0x1d8   : > { %6937 = vtanh.f32 %v1490_v41  ;;  %v6043_v43 = vpop.f32.mrb[72].mxu0  ;;  %6134 = vmatmul.mubr.msk.f32.vlgmr.msra.gmra.mrb[34].mxu1 %vm1200_vm1, %v6928_v42 }
 0x1d9   : > { %6939 = vtanh.f32 %v1495_v38  ;;  %v1505_v44 = vadd.f32 %v6043_v43, %v7909_v22  ;;  %v1499_v45 = vpop.f32.mrb[73].mxu0 }
 0x1da   : > { %v6930_v46 = vpop.eup %6929  ;;  %v1500_v47 = vadd.f32 %v7909_v22, %v1499_v45 }
 0x1db   : > { %v6932_v48 = vpop.eup %6931  ;;  %6136 = vmatprep.mubr.msk.f32.mxu1 %vm1200_vm1, %v6930_v46 }
 0x1dc   : > { %6941 = vtanh.f32 %v1500_v47  ;;  %v6046_v49 = vpop.f32.mrb[74].mxu0  ;;  %6137 = vmatmul.mubr.msk.f32.gmra.mrb[36].mxu1 %vm1200_vm1, %v6932_v48 }
 0x1dd   : > { %6943 = vtanh.f32 %v1505_v44  ;;  %v1515_v50 = vadd.f32 %v6046_v49, %v7909_v22  ;;  %v1509_v51 = vpop.f32.mrb[75].mxu0 }
 0x1de   : > { %v6934_v52 = vpop.eup %6933  ;;  %v1510_v53 = vadd.f32 %v7909_v22, %v1509_v51 }
 0x1df   : > { %v6936_v54 = vpop.eup %6935  ;;  %6139 = vmatprep.mubr.msk.f32.mxu1 %vm1200_vm1, %v6934_v52 }
 0x1e0   : > { %6945 = vtanh.f32 %v1510_v53  ;;  %v6049_v55 = vpop.f32.mrb[76].mxu0  ;;  %6140 = vmatmul.mubr.msk.f32.gmra.mrb[38].mxu1 %vm1200_vm1, %v6936_v54 }
 0x1e1   : > { %6947 = vtanh.f32 %v1515_v50  ;;  %v1525_v56 = vadd.f32 %v6049_v55, %v7909_v22  ;;  %v1519_v57 = vpop.f32.mrb[77].mxu0 }
 0x1e2   : > { %v6938_v58 = vpop.eup %6937  ;;  %v1520_v59 = vadd.f32 %v7909_v22, %v1519_v57 }
 0x1e3   : > { %v6940_v60 = vpop.eup %6939  ;;  %6142 = vmatprep.mubr.msk.f32.mxu1 %vm1200_vm1, %v6938_v58 }
 0x1e4   : > { %6949 = vtanh.f32 %v1520_v59  ;;  %v6052_v61 = vpop.f32.mrb[78].mxu0  ;;  %6143 = vmatmul.mubr.msk.f32.gmra.mrb[40].mxu1 %vm1200_vm1, %v6940_v60 }
 0x1e5   : > { %6951 = vtanh.f32 %v1525_v56  ;;  %v1535_v62 = vadd.f32 %v6052_v61, %v7909_v22  ;;  %v1529_v63 = vpop.f32.mrb[79].mxu0 }
 0x1e6   : > { %v6942_v0 = vpop.eup %6941  ;;  %v1530_v1 = vadd.f32 %v7909_v22, %v1529_v63 }
 0x1e7   : > { %v6944_v2 = vpop.eup %6943  ;;  %6145 = vmatprep.mubr.msk.f32.mxu1 %vm1200_vm1, %v6942_v0 }
 0x1e8   : > { %6953 = vtanh.f32 %v1530_v1  ;;  %v6055_v3 = vpop.f32.mrb[80].mxu0  ;;  %6146 = vmatmul.mubr.msk.f32.gmra.mrb[42].mxu1 %vm1200_vm1, %v6944_v2 }
 0x1e9   : > { %6955 = vtanh.f32 %v1535_v62  ;;  %v1545_v4 = vadd.f32 %v6055_v3, %v7909_v22  ;;  %v1539_v5 = vpop.f32.mrb[81].mxu0 }
 0x1ea   : > { %v6946_v6 = vpop.eup %6945  ;;  %v1540_v7 = vadd.f32 %v7909_v22, %v1539_v5 }
 0x1eb   : > { %v6948_v8 = vpop.eup %6947  ;;  %6148 = vmatprep.mubr.msk.f32.mxu1 %vm1200_vm1, %v6946_v6 }
 0x1ec   : > { %6957 = vtanh.f32 %v1540_v7  ;;  %v6058_v9 = vpop.f32.mrb[82].mxu0  ;;  %6149 = vmatmul.mubr.msk.f32.gmra.mrb[44].mxu1 %vm1200_vm1, %v6948_v8 }
 0x1ed   : > { %6959 = vtanh.f32 %v1545_v4  ;;  %v1555_v10 = vadd.f32 %v6058_v9, %v7909_v22  ;;  %v1549_v11 = vpop.f32.mrb[83].mxu0 }
 0x1ee   : > { %v6950_v12 = vpop.eup %6949  ;;  %v1550_v31 = vadd.f32 %v7909_v22, %v1549_v11 }
 0x1ef   : > { %v6952_v14 = vpop.eup %6951  ;;  %6151 = vmatprep.mubr.msk.f32.mxu1 %vm1200_vm1, %v6950_v12 }
 0x1f0   : > { %6961 = vtanh.f32 %v1550_v31  ;;  %v6061_v15 = vpop.f32.mrb[84].mxu0  ;;  %6152 = vmatmul.mubr.msk.f32.gmra.mrb[46].mxu1 %vm1200_vm1, %v6952_v14 }
 0x1f1   : > { %6963 = vtanh.f32 %v1555_v10  ;;  %v1565_v16 = vadd.f32 %v6061_v15, %v7909_v22  ;;  %v1559_v17 = vpop.f32.mrb[85].mxu0 }
 0x1f2   : > { %v6954_v18 = vpop.eup %6953  ;;  %v1560_v19 = vadd.f32 %v7909_v22, %v1559_v17 }
 0x1f3   : > { %v6956_v20 = vpop.eup %6955  ;;  %6154 = vmatprep.mubr.msk.f32.mxu1 %vm1200_vm1, %v6954_v18 }
 0x1f4   : > { %6965 = vtanh.f32 %v1560_v19  ;;  %v6064_v13 = vpop.f32.mrb[86].mxu0  ;;  %6155 = vmatmul.mubr.msk.f32.gmra.mrb[48].mxu1 %vm1200_vm1, %v6956_v20 }
 0x1f5   : > { %6967 = vtanh.f32 %v1565_v16  ;;  %v1575_v21 = vadd.f32 %v6064_v13, %v7909_v22  ;;  %v1569_v23 = vpop.f32.mrb[87].mxu0 }
 0x1f6   : > { %v6958_v24 = vpop.eup %6957  ;;  %v1570_v25 = vadd.f32 %v7909_v22, %v1569_v23 }
 0x1f7   : > { %v6960_v26 = vpop.eup %6959  ;;  %6157 = vmatprep.mubr.msk.f32.mxu1 %vm1200_vm1, %v6958_v24 }
 0x1f8   : > { %6969 = vtanh.f32 %v1570_v25  ;;  %v6067_v27 = vpop.f32.mrb[88].mxu0  ;;  %6158 = vmatmul.mubr.msk.f32.gmra.mrb[50].mxu1 %vm1200_vm1, %v6960_v26 }
 0x1f9   : > { %6971 = vtanh.f32 %v1575_v21  ;;  %v1585_v28 = vadd.f32 %v6067_v27, %v7909_v22  ;;  %v1579_v29 = vpop.f32.mrb[89].mxu0 }
 0x1fa   : > { %v6962_v30 = vpop.eup %6961  ;;  %v1580_v32 = vadd.f32 %v7909_v22, %v1579_v29 }
 0x1fb   : > { %v6964_v33 = vpop.eup %6963  ;;  %6160 = vmatprep.mubr.msk.f32.mxu1 %vm1200_vm1, %v6962_v30 }
 0x1fc   : > { %6973 = vtanh.f32 %v1580_v32  ;;  %v6070_v34 = vpop.f32.mrb[90].mxu0  ;;  %6161 = vmatmul.mubr.msk.f32.gmra.mrb[52].mxu1 %vm1200_vm1, %v6964_v33 }
 0x1fd   : > { %6975 = vtanh.f32 %v1585_v28  ;;  %v1595_v35 = vadd.f32 %v6070_v34, %v7909_v22  ;;  %v1589_v36 = vpop.f32.mrb[91].mxu0 }
 0x1fe   : > { %v6966_v37 = vpop.eup %6965  ;;  %v1590_v38 = vadd.f32 %v7909_v22, %v1589_v36 }
 0x1ff   : > { %v6968_v39 = vpop.eup %6967  ;;  %6163 = vmatprep.mubr.msk.f32.mxu1 %vm1200_vm1, %v6966_v37 }
 0x200   : > { %6977 = vtanh.f32 %v1590_v38  ;;  %v6073_v40 = vpop.f32.mrb[92].mxu0  ;;  %6164 = vmatmul.mubr.msk.f32.gmra.mrb[54].mxu1 %vm1200_vm1, %v6968_v39 }
 0x201   : > { %6979 = vtanh.f32 %v1595_v35  ;;  %v1605_v41 = vadd.f32 %v6073_v40, %v7909_v22  ;;  %v1599_v42 = vpop.f32.mrb[93].mxu0 }
 0x202   : > { %v6970_v43 = vpop.eup %6969  ;;  %v1600_v44 = vadd.f32 %v7909_v22, %v1599_v42 }
 0x203   : > { %v6972_v45 = vpop.eup %6971  ;;  %6166 = vmatprep.mubr.msk.f32.mxu1 %vm1200_vm1, %v6970_v43 }
 0x204   : > { %6981 = vtanh.f32 %v1600_v44  ;;  %v6076_v46 = vpop.f32.mrb[0].mxu1  ;;  %6167 = vmatmul.mubr.msk.f32.gmra.mrb[56].mxu1 %vm1200_vm1, %v6972_v45 }
 0x205   : > { %6983 = vtanh.f32 %v1605_v41  ;;  %v1615_v47 = vadd.f32 %v6076_v46, %v7909_v22  ;;  %v1609_v48 = vpop.f32.mrb[1].mxu1 }
 0x206   : > { %v6974_v49 = vpop.eup %6973  ;;  %v1610_v50 = vadd.f32 %v7909_v22, %v1609_v48 }
 0x207   : > { %v6976_v51 = vpop.eup %6975  ;;  %6169 = vmatprep.mubr.msk.f32.mxu1 %vm1200_vm1, %v6974_v49 }
 0x208   : > { %6985 = vtanh.f32 %v1610_v50  ;;  %v6079_v52 = vpop.f32.mrb[2].mxu1  ;;  %6170 = vmatmul.mubr.msk.f32.gmra.mrb[58].mxu1 %vm1200_vm1, %v6976_v51 }
 0x209   : > { %6987 = vtanh.f32 %v1615_v47  ;;  %v1625_v53 = vadd.f32 %v6079_v52, %v7909_v22  ;;  %v1619_v54 = vpop.f32.mrb[3].mxu1 }
 0x20a   : > { %v6978_v55 = vpop.eup %6977  ;;  %v1620_v56 = vadd.f32 %v7909_v22, %v1619_v54 }
 0x20b   : > { %v6980_v57 = vpop.eup %6979  ;;  %6172 = vmatprep.mubr.msk.f32.mxu1 %vm1200_vm1, %v6978_v55 }
 0x20c   : > { %6989 = vtanh.f32 %v1620_v56  ;;  %v6082_v58 = vpop.f32.mrb[4].mxu1  ;;  %6173 = vmatmul.mubr.msk.f32.gmra.mrb[60].mxu1 %vm1200_vm1, %v6980_v57 }
 0x20d   : > { %6991 = vtanh.f32 %v1625_v53  ;;  %v1635_v59 = vadd.f32 %v6082_v58, %v7909_v22  ;;  %v1629_v60 = vpop.f32.mrb[5].mxu1 }
 0x20e   : > { %v6982_v61 = vpop.eup %6981  ;;  %v1630_v62 = vadd.f32 %v7909_v22, %v1629_v60 }
 0x20f   : > { %v6984_v63 = vpop.eup %6983  ;;  %6175 = vmatprep.mubr.msk.f32.mxu1 %vm1200_vm1, %v6982_v61 }
 0x210   : > { %6993 = vtanh.f32 %v1630_v62  ;;  %v6085_v0 = vpop.f32.mrb[6].mxu1  ;;  %6176 = vmatmul.mubr.msk.f32.gmra.mrb[62].mxu1 %vm1200_vm1, %v6984_v63 }
 0x211   : > { %6995 = vtanh.f32 %v1635_v59  ;;  %v1645_v1 = vadd.f32 %v6085_v0, %v7909_v22  ;;  %v1639_v2 = vpop.f32.mrb[7].mxu1 }
 0x212   : > { %v6986_v3 = vpop.eup %6985  ;;  %v1640_v4 = vadd.f32 %v7909_v22, %v1639_v2 }
 0x213   : > { %v6988_v5 = vpop.eup %6987  ;;  %6178 = vmatprep.mubr.msk.f32.mxu1 %vm1200_vm1, %v6986_v3  ;;  %v2494_v3 = vld [vmem:[%s8850_s7] sm:$0xff] }
 0x214   : > { %6997 = vtanh.f32 %v1640_v4  ;;  %v6088_v6 = vpop.f32.mrb[8].mxu1  ;;  %6179 = vmatmul.mubr.msk.f32.gmra.mrb[64].mxu1 %vm1200_vm1, %v6988_v5  ;;  %v2495_v4 = vld [vmem:[%s8850_s7 + $0x8] sm:$0xff] }
 0x215   : > { %6999 = vtanh.f32 %v1645_v1  ;;  %v1655_v7 = vadd.f32 %v6088_v6, %v7909_v22  ;;  %v1649_v8 = vpop.f32.mrb[9].mxu1  ;;  %v8030_v6 = vpack.c.bf16 %v2495_v4, %v2494_v3 }
 0x216   : > { %v6990_v9 = vpop.eup %6989  ;;  %v1650_v10 = vadd.f32 %v7909_v22, %v1649_v8 }
 0x217   : > { %v6992_v11 = vpop.eup %6991  ;;  %6181 = vmatprep.mubr.msk.f32.mxu1 %vm1200_vm1, %v6990_v9  ;;  %6682 = vmatprep.subr.bf16.mxu0 %v8030_v6 }
 0x218   : > { %7001 = vtanh.f32 %v1650_v10  ;;  %v6091_v12 = vpop.f32.mrb[10].mxu1  ;;  %6182 = vmatmul.mubr.msk.f32.gmra.mrb[66].mxu1 %vm1200_vm1, %v6992_v11 }
 0x219   : > { %7003 = vtanh.f32 %v1655_v7  ;;  %v1665_v31 = vadd.f32 %v6091_v12, %v7909_v22  ;;  %v1659_v14 = vpop.f32.mrb[11].mxu1 }
 0x21a   : > { %v6994_v15 = vpop.eup %6993  ;;  %v1660_v16 = vadd.f32 %v7909_v22, %v1659_v14 }
 0x21b   : > { %v6996_v17 = vpop.eup %6995  ;;  %6184 = vmatprep.mubr.msk.f32.mxu1 %vm1200_vm1, %v6994_v15 }
 0x21c   : > { %7005 = vtanh.f32 %v1660_v16  ;;  %v6094_v18 = vpop.f32.mrb[12].mxu1  ;;  %6185 = vmatmul.mubr.msk.f32.gmra.mrb[68].mxu1 %vm1200_vm1, %v6996_v17 }
 0x21d   : > { %7007 = vtanh.f32 %v1665_v31  ;;  %v1675_v19 = vadd.f32 %v6094_v18, %v7909_v22  ;;  %v1669_v20 = vpop.f32.mrb[13].mxu1 }
 0x21e   : > { %v6998_v13 = vpop.eup %6997  ;;  %v1670_v21 = vadd.f32 %v7909_v22, %v1669_v20 }
 0x21f   : > { %v7000_v23 = vpop.eup %6999  ;;  %6187 = vmatprep.mubr.msk.f32.mxu1 %vm1200_vm1, %v6998_v13 }
 0x220   : > { %7009 = vtanh.f32 %v1670_v21  ;;  %v6097_v24 = vpop.f32.mrb[14].mxu1  ;;  %6188 = vmatmul.mubr.msk.f32.gmra.mrb[70].mxu1 %vm1200_vm1, %v7000_v23 }
 0x221   : > { %7011 = vtanh.f32 %v1675_v19  ;;  %v1685_v25 = vadd.f32 %v6097_v24, %v7909_v22  ;;  %v1679_v26 = vpop.f32.mrb[15].mxu1 }
 0x222   : > { %v7002_v27 = vpop.eup %7001  ;;  %v1680_v28 = vadd.f32 %v7909_v22, %v1679_v26 }
 0x223   : > { %v7004_v29 = vpop.eup %7003  ;;  %6190 = vmatprep.mubr.msk.f32.mxu1 %vm1200_vm1, %v7002_v27 }
 0x224   : > { %7013 = vtanh.f32 %v1680_v28  ;;  %v6100_v30 = vpop.f32.mrb[16].mxu1  ;;  %6191 = vmatmul.mubr.msk.f32.gmra.mrb[72].mxu1 %vm1200_vm1, %v7004_v29  ;;  %v8054_v29 = vld [vmem:[%s8849_s6] ss:$0 sm:$0xff] }
 0x225   : > { %7015 = vtanh.f32 %v1685_v25  ;;  %v1695_v32 = vadd.f32 %v6100_v30, %v7909_v22  ;;  %v1689_v33 = vpop.f32.mrb[17].mxu1 }
 0x226   : > { %v7006_v34 = vpop.eup %7005  ;;  %v1690_v35 = vadd.f32 %v7909_v22, %v1689_v33 }
 0x227   : > { %v7008_v36 = vpop.eup %7007  ;;  %6193 = vmatprep.mubr.msk.f32.mxu1 %vm1200_vm1, %v7006_v34 }
 0x228   : > { %7017 = vtanh.f32 %v1690_v35  ;;  %v6103_v37 = vpop.f32.mrb[18].mxu1  ;;  %6194 = vmatmul.mubr.msk.f32.gmra.mrb[74].mxu1 %vm1200_vm1, %v7008_v36 }
 0x229   : > { %7019 = vtanh.f32 %v1695_v32  ;;  %v1705_v38 = vadd.f32 %v6103_v37, %v7909_v22  ;;  %v1699_v39 = vpop.f32.mrb[19].mxu1 }
 0x22a   : > { %v7010_v40 = vpop.eup %7009  ;;  %v1700_v41 = vadd.f32 %v7909_v22, %v1699_v39 }
 0x22b   : > { %v7012_v42 = vpop.eup %7011  ;;  %6196 = vmatprep.mubr.msk.f32.mxu1 %vm1200_vm1, %v7010_v40 }
 0x22c   : > { %7021 = vtanh.f32 %v1700_v41  ;;  %v6106_v43 = vpop.f32.mrb[20].mxu1  ;;  %6197 = vmatmul.mubr.msk.f32.gmra.mrb[76].mxu1 %vm1200_vm1, %v7012_v42 }
 0x22d   : > { %7023 = vtanh.f32 %v1705_v38  ;;  %v1715_v44 = vadd.f32 %v6106_v43, %v7909_v22  ;;  %v1709_v45 = vpop.f32.mrb[21].mxu1  ;;  %v2496_v43 = vld [vmem:[%s8850_s7 + $0x10] sm:$0xff] }
 0x22e   : > { %v7014_v46 = vpop.eup %7013  ;;  %v1710_v47 = vadd.f32 %v7909_v22, %v1709_v45 }
 0x22f   : > { %v7016_v48 = vpop.eup %7015  ;;  %6199 = vmatprep.mubr.msk.f32.mxu1 %vm1200_vm1, %v7014_v46 }
 0x230   : > { %7025 = vtanh.f32 %v1710_v47  ;;  %v6109_v49 = vpop.f32.mrb[22].mxu1  ;;  %6200 = vmatmul.mubr.msk.f32.gmra.mrb[78].mxu1 %vm1200_vm1, %v7016_v48 }
 0x231   : > { %7027 = vtanh.f32 %v1715_v44  ;;  %v1725_v50 = vadd.f32 %v6109_v49, %v7909_v22  ;;  %v1719_v51 = vpop.f32.mrb[23].mxu1  ;;  %v2497_v44 = vld [vmem:[%s8850_s7 + $0x18] sm:$0xff] }
 0x232   : > { %v7018_v52 = vpop.eup %7017  ;;  %v1720_v53 = vadd.f32 %v7909_v22, %v1719_v51 }
 0x233   : > { %v7020_v54 = vpop.eup %7019  ;;  %6202 = vmatprep.mubr.msk.f32.mxu1 %vm1200_vm1, %v7018_v52 }
 0x234   : > { %7029 = vtanh.f32 %v1720_v53  ;;  %v6112_v55 = vpop.f32.mrb[24].mxu1  ;;  %6203 = vmatmul.mubr.msk.f32.gmra.mrb[80].mxu1 %vm1200_vm1, %v7020_v54 }
 0x235   : > { %7031 = vtanh.f32 %v1725_v50  ;;  %v1735_v56 = vadd.f32 %v6112_v55, %v7909_v22  ;;  %v1729_v57 = vpop.f32.mrb[25].mxu1  ;;  %v6685_v50 = vpack.c.bf16 %v2497_v44, %v2496_v43 }
 0x236   : > { %v7022_v58 = vpop.eup %7021  ;;  %v1730_v59 = vadd.f32 %v7909_v22, %v1729_v57 }
 0x237   : > { %v7024_v60 = vpop.eup %7023  ;;  %6205 = vmatprep.mubr.msk.f32.mxu1 %vm1200_vm1, %v7022_v58  ;;  %v2498_v58 = vld [vmem:[%s8850_s7 + $0x20] sm:$0xff] }
 0x238   : > { %7033 = vtanh.f32 %v1730_v59  ;;  %v6115_v61 = vpop.f32.mrb[26].mxu1  ;;  %6206 = vmatmul.mubr.msk.f32.gmra.mrb[82].mxu1 %vm1200_vm1, %v7024_v60 }
 0x239   : > { %7035 = vtanh.f32 %v1735_v56  ;;  %v1745_v62 = vadd.f32 %v6115_v61, %v7909_v22  ;;  %v1739_v63 = vpop.f32.mrb[27].mxu1 }
 0x23a   : > { %v7026_v0 = vpop.eup %7025  ;;  %v1740_v1 = vadd.f32 %v7909_v22, %v1739_v63 }
 0x23b   : > { %v7028_v2 = vpop.eup %7027  ;;  %6208 = vmatprep.mubr.msk.f32.mxu1 %vm1200_vm1, %v7026_v0 }
 0x23c   : > { %7037 = vtanh.f32 %v1740_v1  ;;  %v6118_v5 = vpop.f32.mrb[28].mxu1  ;;  %6209 = vmatmul.mubr.msk.f32.gmra.mrb[84].mxu1 %vm1200_vm1, %v7028_v2 }
 0x23d   : > { %7039 = vtanh.f32 %v1745_v62  ;;  %v1755_v7 = vadd.f32 %v6118_v5, %v7909_v22  ;;  %v1749_v8 = vpop.f32.mrb[29].mxu1 }
 0x23e   : > { %v7030_v9 = vpop.eup %7029  ;;  %v1750_v10 = vadd.f32 %v7909_v22, %v1749_v8 }
 0x23f   : > { %v7032_v11 = vpop.eup %7031  ;;  %6211 = vmatprep.mubr.msk.f32.mxu1 %vm1200_vm1, %v7030_v9 }
 0x240   : > { %7041 = vtanh.f32 %v1750_v10  ;;  %v6121_v12 = vpop.f32.mrb[30].mxu1  ;;  %6212 = vmatmul.mubr.msk.f32.gmra.mrb[86].mxu1 %vm1200_vm1, %v7032_v11 }
 0x241   : > { %7043 = vtanh.f32 %v1755_v7  ;;  %v1765_v31 = vadd.f32 %v6121_v12, %v7909_v22  ;;  %v1759_v14 = vpop.f32.mrb[31].mxu1 }
 0x242   : > { %v7034_v15 = vpop.eup %7033  ;;  %v1760_v16 = vadd.f32 %v7909_v22, %v1759_v14 }
 0x243   : > { %v7036_v17 = vpop.eup %7035  ;;  %6214 = vmatprep.mubr.msk.f32.mxu1 %vm1200_vm1, %v7034_v15 }
 0x244   : > { %7045 = vtanh.f32 %v1760_v16  ;;  %v6124_v18 = vpop.f32.mrb[32].mxu1  ;;  %6215 = vmatmul.mubr.msk.f32.gmra.mrb[88].mxu1 %vm1200_vm1, %v7036_v17 }
 0x245   : > { %7047 = vtanh.f32 %v1765_v31  ;;  %v1775_v19 = vadd.f32 %v6124_v18, %v7909_v22  ;;  %v1769_v20 = vpop.f32.mrb[33].mxu1 }
 0x246   : > { %v7038_v13 = vpop.eup %7037  ;;  %v1770_v21 = vadd.f32 %v7909_v22, %v1769_v20 }
 0x247   : > { %v7040_v23 = vpop.eup %7039  ;;  %6217 = vmatprep.mubr.msk.f32.mxu1 %vm1200_vm1, %v7038_v13 }
 0x248   : > { %7049 = vtanh.f32 %v1770_v21  ;;  %6218 = vmatmul.mubr.msk.f32.gmra.mrb[90].mxu1 %vm1200_vm1, %v7040_v23 }
 0x249   : > { %7051 = vtanh.f32 %v1775_v19 }
 0x24a   : > { %v7042_v24 = vpop.eup %7041 }
 0x24b   : > { %v7044_v25 = vpop.eup %7043  ;;  %6220 = vmatprep.mubr.msk.f32.mxu1 %vm1200_vm1, %v7042_v24 }
 0x24c   : > { %6221 = vmatmul.mubr.msk.f32.gmra.mrb[92].mxu1 %vm1200_vm1, %v7044_v25 }
 0x24e   : > { %v7046_v26 = vpop.eup %7045 }
 0x24f   : > { %v7048_v27 = vpop.eup %7047  ;;  %6223 = vmatprep.mubr.msk.f32.mxu1 %vm1200_vm1, %v7046_v26 }
 0x250   : > { %6224 = vmatmul.mubr.msk.f32.gmra.mrb[94].mxu1 %vm1200_vm1, %v7048_v27 }
 0x252   : > { %v7050_v22 = vpop.eup %7049 }
 0x253   : > { %v7052_v28 = vpop.eup %7051  ;;  %6226 = vmatprep.mubr.msk.f32.mxu1 %vm1200_vm1, %v7050_v22 }
 0x254   : > { %6227 = vmatmul.mubr.msk.f32.gmra.mrb[96].mxu1 %vm1200_vm1, %v7052_v28 }
 0x2ab   : > { %v6135_v30 = vpop.f32.mrb[34].mxu1 }
 0x2ac   : > { %v2117_v32 = vadd.f32 %v6135_v30, %v8054_v29  ;;  %v2111_v33 = vpop.f32.mrb[35].mxu1 }
 0x2ad   : > { %v2112_v34 = vadd.f32 %v8054_v29, %v2111_v33 }
 0x2af   : > { %7053 = vtanh.f32 %v2112_v34  ;;  %v6138_v35 = vpop.f32.mrb[36].mxu1 }
 0x2b0   : > { %7055 = vtanh.f32 %v2117_v32  ;;  %v2127_v36 = vadd.f32 %v6138_v35, %v8054_v29  ;;  %v2121_v37 = vpop.f32.mrb[37].mxu1 }
 0x2b1   : > { %v2122_v38 = vadd.f32 %v8054_v29, %v2121_v37 }
 0x2b3   : > { %7057 = vtanh.f32 %v2122_v38  ;;  %v6141_v39 = vpop.f32.mrb[38].mxu1 }
 0x2b4   : > { %7059 = vtanh.f32 %v2127_v36  ;;  %v2137_v40 = vadd.f32 %v6141_v39, %v8054_v29  ;;  %v2131_v41 = vpop.f32.mrb[39].mxu1 }
 0x2b5   : > { %v2132_v42 = vadd.f32 %v8054_v29, %v2131_v41 }
 0x2b7   : > { %7061 = vtanh.f32 %v2132_v42  ;;  %v6144_v45 = vpop.f32.mrb[40].mxu1 }
 0x2b8   : > { %7063 = vtanh.f32 %v2137_v40  ;;  %v2147_v46 = vadd.f32 %v6144_v45, %v8054_v29  ;;  %v2141_v47 = vpop.f32.mrb[41].mxu1 }
 0x2b9   : > { %v7054_v48 = vpop.eup %7053  ;;  %v2142_v49 = vadd.f32 %v8054_v29, %v2141_v47 }
 0x2ba   : > { %v7056_v51 = vpop.eup %7055  ;;  %6231 = vmatprep.mubr.msk.f32.mxu0 %vm2500_vm2, %v7054_v48 }
 0x2bb   : > { %7065 = vtanh.f32 %v2142_v49  ;;  %v6147_v52 = vpop.f32.mrb[42].mxu1  ;;  %6232 = vmatmul.mubr.msk.f32.vlgmr.msra.gmra.mrb[94].mxu0 %vm2500_vm2, %v7056_v51 }
 0x2bc   : > { %7067 = vtanh.f32 %v2147_v46  ;;  %v2157_v53 = vadd.f32 %v6147_v52, %v8054_v29  ;;  %6684 = vmatpush3.bf16.msra.mxu0 %v8030_v6  ;;  %v2151_v54 = vpop.f32.mrb[43].mxu1 }
 0x2bd   : > { %v7058_v55 = vpop.eup %7057  ;;  %v2152_v56 = vadd.f32 %v8054_v29, %v2151_v54  ;;  %6686 = vmatprep.subr.bf16.mxu0 %v6685_v50 }
 0x2be   : > { %v7060_v57 = vpop.eup %7059  ;;  %6234 = vmatprep.mubr.msk.f32.mxu0 %vm2500_vm2, %v7058_v55 }
 0x2bf   : > { %7069 = vtanh.f32 %v2152_v56  ;;  %v6150_v59 = vpop.f32.mrb[44].mxu1  ;;  %6235 = vmatmul.mubr.msk.f32.gmra.mrb[96].mxu0 %vm2500_vm2, %v7060_v57 }
 0x2c0   : > { %7071 = vtanh.f32 %v2157_v53  ;;  %v2167_v60 = vadd.f32 %v6150_v59, %v8054_v29  ;;  %v2161_v61 = vpop.f32.mrb[45].mxu1  ;;  %6688 = vmatpush3.bf16.msra.mxu0 %v6685_v50 }
 0x2c1   : > { %v7062_v62 = vpop.eup %7061  ;;  %v2162_v63 = vadd.f32 %v8054_v29, %v2161_v61  ;;  %6335 = vmatprep.subr.mxu0 %v2498_v58 }
 0x2c2   : > { %v7064_v0 = vpop.eup %7063  ;;  %6237 = vmatprep.mubr.msk.f32.mxu0 %vm2500_vm2, %v7062_v62 }
 0x2c3   : > { %7073 = vtanh.f32 %v2162_v63  ;;  %v6153_v1 = vpop.f32.mrb[46].mxu1  ;;  %6238 = vmatmul.mubr.msk.f32.gmra.mrb[98].mxu0 %vm2500_vm2, %v7064_v0 }
 0x2c4   : > { %7075 = vtanh.f32 %v2167_v60  ;;  %v2177_v2 = vadd.f32 %v6153_v1, %v8054_v29  ;;  %v2171_v3 = vpop.f32.mrb[47].mxu1  ;;  %6336 = vmatpush3.msra.mxu0 %v2498_v58 }
 0x2c5   : > { %v7066_v4 = vpop.eup %7065  ;;  %v2172_v5 = vadd.f32 %v8054_v29, %v2171_v3 }
 0x2c6   : > { %v7068_v6 = vpop.eup %7067  ;;  %6240 = vmatprep.mubr.msk.f32.mxu0 %vm2500_vm2, %v7066_v4 }
 0x2c7   : > { %7077 = vtanh.f32 %v2172_v5  ;;  %v6156_v7 = vpop.f32.mrb[48].mxu1  ;;  %6241 = vmatmul.mubr.msk.f32.gmra.mrb[100].mxu0 %vm2500_vm2, %v7068_v6 }
 0x2c8   : > { %7079 = vtanh.f32 %v2177_v2  ;;  %v2187_v8 = vadd.f32 %v6156_v7, %v8054_v29  ;;  %v2181_v9 = vpop.f32.mrb[49].mxu1 }
 0x2c9   : > { %v7070_v10 = vpop.eup %7069  ;;  %v2182_v11 = vadd.f32 %v8054_v29, %v2181_v9 }
 0x2ca   : > { %v7072_v12 = vpop.eup %7071  ;;  %6243 = vmatprep.mubr.msk.f32.mxu0 %vm2500_vm2, %v7070_v10 }
 0x2cb   : > { %7081 = vtanh.f32 %v2182_v11  ;;  %v6159_v31 = vpop.f32.mrb[50].mxu1  ;;  %6244 = vmatmul.mubr.msk.f32.gmra.mrb[102].mxu0 %vm2500_vm2, %v7072_v12 }
 0x2cc   : > { %7083 = vtanh.f32 %v2187_v8  ;;  %v2197_v14 = vadd.f32 %v6159_v31, %v8054_v29  ;;  %v2191_v15 = vpop.f32.mrb[51].mxu1 }
 0x2cd   : > { %v7074_v16 = vpop.eup %7073  ;;  %v2192_v17 = vadd.f32 %v8054_v29, %v2191_v15 }
 0x2ce   : > { %v7076_v18 = vpop.eup %7075  ;;  %6246 = vmatprep.mubr.msk.f32.mxu0 %vm2500_vm2, %v7074_v16 }
 0x2cf   : > { %7085 = vtanh.f32 %v2192_v17  ;;  %v6162_v19 = vpop.f32.mrb[52].mxu1  ;;  %6247 = vmatmul.mubr.msk.f32.gmra.mrb[104].mxu0 %vm2500_vm2, %v7076_v18 }
 0x2d0   : > { %7087 = vtanh.f32 %v2197_v14  ;;  %v2207_v20 = vadd.f32 %v6162_v19, %v8054_v29  ;;  %v2201_v13 = vpop.f32.mrb[53].mxu1 }
 0x2d1   : > { %v7078_v21 = vpop.eup %7077  ;;  %v2202_v23 = vadd.f32 %v8054_v29, %v2201_v13 }
 0x2d2   : > { %v7080_v24 = vpop.eup %7079  ;;  %6249 = vmatprep.mubr.msk.f32.mxu0 %vm2500_vm2, %v7078_v21 }
 0x2d3   : > { %7089 = vtanh.f32 %v2202_v23  ;;  %v6165_v25 = vpop.f32.mrb[54].mxu1  ;;  %6250 = vmatmul.mubr.msk.f32.gmra.mrb[106].mxu0 %vm2500_vm2, %v7080_v24 }
 0x2d4   : > { %7091 = vtanh.f32 %v2207_v20  ;;  %v2217_v26 = vadd.f32 %v6165_v25, %v8054_v29  ;;  %v2211_v27 = vpop.f32.mrb[55].mxu1 }
 0x2d5   : > { %v7082_v22 = vpop.eup %7081  ;;  %v2212_v28 = vadd.f32 %v8054_v29, %v2211_v27 }
 0x2d6   : > { %v7084_v30 = vpop.eup %7083  ;;  %6252 = vmatprep.mubr.msk.f32.mxu0 %vm2500_vm2, %v7082_v22 }
 0x2d7   : > { %7093 = vtanh.f32 %v2212_v28  ;;  %v6168_v32 = vpop.f32.mrb[56].mxu1  ;;  %6253 = vmatmul.mubr.msk.f32.gmra.mrb[108].mxu0 %vm2500_vm2, %v7084_v30 }
 0x2d8   : > { %7095 = vtanh.f32 %v2217_v26  ;;  %v2227_v33 = vadd.f32 %v6168_v32, %v8054_v29  ;;  %v2221_v34 = vpop.f32.mrb[57].mxu1 }
 0x2d9   : > { %v7086_v35 = vpop.eup %7085  ;;  %v2222_v36 = vadd.f32 %v8054_v29, %v2221_v34 }
 0x2da   : > { %v7088_v37 = vpop.eup %7087  ;;  %6255 = vmatprep.mubr.msk.f32.mxu0 %vm2500_vm2, %v7086_v35 }
 0x2db   : > { %7097 = vtanh.f32 %v2222_v36  ;;  %v6171_v38 = vpop.f32.mrb[58].mxu1  ;;  %6256 = vmatmul.mubr.msk.f32.gmra.mrb[110].mxu0 %vm2500_vm2, %v7088_v37 }
 0x2dc   : > { %7099 = vtanh.f32 %v2227_v33  ;;  %v2237_v39 = vadd.f32 %v6171_v38, %v8054_v29  ;;  %v2231_v40 = vpop.f32.mrb[59].mxu1 }
 0x2dd   : > { %v7090_v41 = vpop.eup %7089  ;;  %v2232_v42 = vadd.f32 %v8054_v29, %v2231_v40 }
 0x2de   : > { %v7092_v43 = vpop.eup %7091  ;;  %6258 = vmatprep.mubr.msk.f32.mxu0 %vm2500_vm2, %v7090_v41 }
 0x2df   : > { %7101 = vtanh.f32 %v2232_v42  ;;  %v6174_v44 = vpop.f32.mrb[60].mxu1  ;;  %6259 = vmatmul.mubr.msk.f32.gmra.mrb[112].mxu0 %vm2500_vm2, %v7092_v43 }
 0x2e0   : > { %7103 = vtanh.f32 %v2237_v39  ;;  %v2247_v45 = vadd.f32 %v6174_v44, %v8054_v29  ;;  %v2241_v46 = vpop.f32.mrb[61].mxu1 }
 0x2e1   : > { %v7094_v47 = vpop.eup %7093  ;;  %v2242_v48 = vadd.f32 %v8054_v29, %v2241_v46 }
 0x2e2   : > { %v7096_v49 = vpop.eup %7095  ;;  %6261 = vmatprep.mubr.msk.f32.mxu0 %vm2500_vm2, %v7094_v47 }
 0x2e3   : > { %7105 = vtanh.f32 %v2242_v48  ;;  %v6177_v50 = vpop.f32.mrb[62].mxu1  ;;  %6262 = vmatmul.mubr.msk.f32.gmra.mrb[114].mxu0 %vm2500_vm2, %v7096_v49 }
 0x2e4   : > { %7107 = vtanh.f32 %v2247_v45  ;;  %v2257_v51 = vadd.f32 %v6177_v50, %v8054_v29  ;;  %v2251_v52 = vpop.f32.mrb[63].mxu1 }
 0x2e5   : > { %v7098_v53 = vpop.eup %7097  ;;  %v2252_v54 = vadd.f32 %v8054_v29, %v2251_v52 }
 0x2e6   : > { %v7100_v55 = vpop.eup %7099  ;;  %6264 = vmatprep.mubr.msk.f32.mxu0 %vm2500_vm2, %v7098_v53 }
 0x2e7   : > { %7109 = vtanh.f32 %v2252_v54  ;;  %v6180_v56 = vpop.f32.mrb[64].mxu1  ;;  %6265 = vmatmul.mubr.msk.f32.gmra.mrb[116].mxu0 %vm2500_vm2, %v7100_v55 }
 0x2e8   : > { %7111 = vtanh.f32 %v2257_v51  ;;  %v2267_v57 = vadd.f32 %v6180_v56, %v8054_v29  ;;  %v2261_v58 = vpop.f32.mrb[65].mxu1 }
 0x2e9   : > { %v7102_v59 = vpop.eup %7101  ;;  %v2262_v60 = vadd.f32 %v8054_v29, %v2261_v58 }
 0x2ea   : > { %v7104_v61 = vpop.eup %7103  ;;  %6267 = vmatprep.mubr.msk.f32.mxu0 %vm2500_vm2, %v7102_v59 }
 0x2eb   : > { %7113 = vtanh.f32 %v2262_v60  ;;  %v6183_v62 = vpop.f32.mrb[66].mxu1  ;;  %6268 = vmatmul.mubr.msk.f32.gmra.mrb[118].mxu0 %vm2500_vm2, %v7104_v61 }
 0x2ec   : > { %7115 = vtanh.f32 %v2267_v57  ;;  %v2277_v63 = vadd.f32 %v6183_v62, %v8054_v29  ;;  %v2271_v0 = vpop.f32.mrb[67].mxu1 }
 0x2ed   : > { %v7106_v1 = vpop.eup %7105  ;;  %v2272_v2 = vadd.f32 %v8054_v29, %v2271_v0 }
 0x2ee   : > { %v7108_v3 = vpop.eup %7107  ;;  %6270 = vmatprep.mubr.msk.f32.mxu0 %vm2500_vm2, %v7106_v1 }
 0x2ef   : > { %7117 = vtanh.f32 %v2272_v2  ;;  %v6186_v4 = vpop.f32.mrb[68].mxu1  ;;  %6271 = vmatmul.mubr.msk.f32.gmra.mrb[120].mxu0 %vm2500_vm2, %v7108_v3 }
 0x2f0   : > { %7119 = vtanh.f32 %v2277_v63  ;;  %v2287_v5 = vadd.f32 %v6186_v4, %v8054_v29  ;;  %v2281_v6 = vpop.f32.mrb[69].mxu1 }
 0x2f1   : > { %v7110_v7 = vpop.eup %7109  ;;  %v2282_v8 = vadd.f32 %v8054_v29, %v2281_v6 }
 0x2f2   : > { %v7112_v9 = vpop.eup %7111  ;;  %6273 = vmatprep.mubr.msk.f32.mxu0 %vm2500_vm2, %v7110_v7 }
 0x2f3   : > { %7121 = vtanh.f32 %v2282_v8  ;;  %v6189_v10 = vpop.f32.mrb[70].mxu1  ;;  %6274 = vmatmul.mubr.msk.f32.gmra.mrb[122].mxu0 %vm2500_vm2, %v7112_v9  ;;  %v3598_v8 = vld [vmem:[%s8853_s10] sm:$0xff]  ;;  %v3599_v9 = vld [vmem:[%s8853_s10 + $0x8] sm:$0xff] }
 0x2f4   : > { %7123 = vtanh.f32 %v2287_v5  ;;  %v2297_v11 = vadd.f32 %v6189_v10, %v8054_v29  ;;  %v2291_v12 = vpop.f32.mrb[71].mxu1 }
 0x2f5   : > { %v7114_v31 = vpop.eup %7113  ;;  %v2292_v14 = vadd.f32 %v8054_v29, %v2291_v12  ;;  %v6689_v12 = vpack.c.bf16 %v3599_v9, %v3598_v8  ;;  %v7460_v8 = vld [vmem:[%s7621_s18 + $0xb8] sm:$0xff]  ;;  %v7461_v9 = vld [vmem:[%s7621_s18 + $0xc0] sm:$0xff] }
 0x2f6   : > { %v7116_v15 = vpop.eup %7115  ;;  %6276 = vmatprep.mubr.msk.f32.mxu0 %vm2500_vm2, %v7114_v31 }
 0x2f7   : > { %7125 = vtanh.f32 %v2292_v14  ;;  %v6192_v16 = vpop.f32.mrb[72].mxu1  ;;  %6277 = vmatmul.mubr.msk.f32.gmra.mrb[124].mxu0 %vm2500_vm2, %v7116_v15  ;;  %6690 = vmatprep.subr.bf16.mxu1 %v6689_v12 }
 0x2f8   : > { %7127 = vtanh.f32 %v2297_v11  ;;  %v2307_v17 = vadd.f32 %v6192_v16, %v8054_v29  ;;  %v2301_v18 = vpop.f32.mrb[73].mxu1  ;;  %6692 = vmatpush3.bf16.msra.mxu1 %v6689_v12  ;;  %v7464_v12 = vld [vmem:[%s7621_s18 + $0xd8] sm:$0xff] }
 0x2f9   : > { %v7118_v19 = vpop.eup %7117  ;;  %v2302_v20 = vadd.f32 %v8054_v29, %v2301_v18 }
 0x2fa   : > { %v7120_v13 = vpop.eup %7119  ;;  %6279 = vmatprep.mubr.msk.f32.mxu0 %vm2500_vm2, %v7118_v19 }
 0x2fb   : > { %7129 = vtanh.f32 %v2302_v20  ;;  %v6195_v21 = vpop.f32.mrb[74].mxu1  ;;  %6280 = vmatmul.mubr.msk.f32.gmra.mrb[126].mxu0 %vm2500_vm2, %v7120_v13 }
 0x2fc   : > { %7131 = vtanh.f32 %v2307_v17  ;;  %v2317_v23 = vadd.f32 %v6195_v21, %v8054_v29  ;;  %v2311_v24 = vpop.f32.mrb[75].mxu1 }
 0x2fd   : > { %v7122_v25 = vpop.eup %7121  ;;  %v2312_v26 = vadd.f32 %v8054_v29, %v2311_v24 }
 0x2fe   : > { %v7124_v27 = vpop.eup %7123  ;;  %6282 = vmatprep.mubr.msk.f32.mxu0 %vm2500_vm2, %v7122_v25 }
 0x2ff   : > { %7133 = vtanh.f32 %v2312_v26  ;;  %v6198_v22 = vpop.f32.mrb[76].mxu1  ;;  %6283 = vmatmul.mubr.msk.f32.gmra.mrb[128].mxu0 %vm2500_vm2, %v7124_v27 }
 0x300   : > { %7135 = vtanh.f32 %v2317_v23  ;;  %v2327_v28 = vadd.f32 %v6198_v22, %v8054_v29  ;;  %v2321_v30 = vpop.f32.mrb[77].mxu1 }
 0x301   : > { %v7126_v32 = vpop.eup %7125  ;;  %v2322_v33 = vadd.f32 %v8054_v29, %v2321_v30 }
 0x302   : > { %v7128_v34 = vpop.eup %7127  ;;  %6285 = vmatprep.mubr.msk.f32.mxu0 %vm2500_vm2, %v7126_v32 }
 0x303   : > { %7137 = vtanh.f32 %v2322_v33  ;;  %v6201_v35 = vpop.f32.mrb[78].mxu1  ;;  %6286 = vmatmul.mubr.msk.f32.gmra.mrb[130].mxu0 %vm2500_vm2, %v7128_v34 }
 0x304   : > { %7139 = vtanh.f32 %v2327_v28  ;;  %v2337_v36 = vadd.f32 %v6201_v35, %v8054_v29  ;;  %v2331_v37 = vpop.f32.mrb[79].mxu1 }
 0x305   : > { %v7130_v38 = vpop.eup %7129  ;;  %v2332_v39 = vadd.f32 %v8054_v29, %v2331_v37 }
 0x306   : > { %v7132_v40 = vpop.eup %7131  ;;  %6288 = vmatprep.mubr.msk.f32.mxu0 %vm2500_vm2, %v7130_v38 }
 0x307   : > { %7141 = vtanh.f32 %v2332_v39  ;;  %v6204_v41 = vpop.f32.mrb[80].mxu1  ;;  %6289 = vmatmul.mubr.msk.f32.gmra.mrb[132].mxu0 %vm2500_vm2, %v7132_v40  ;;  %v3600_v40 = vld [vmem:[%s8853_s10 + $0x10] sm:$0xff] }
 0x308   : > { %7143 = vtanh.f32 %v2337_v36  ;;  %v2347_v42 = vadd.f32 %v6204_v41, %v8054_v29  ;;  %v2341_v43 = vpop.f32.mrb[81].mxu1  ;;  %v3601_v41 = vld [vmem:[%s8853_s10 + $0x18] sm:$0xff] }
 0x309   : > { %v7134_v44 = vpop.eup %7133  ;;  %v2342_v45 = vadd.f32 %v8054_v29, %v2341_v43  ;;  %v7437_v43 = vld [vmem:[%s7621_s18] sm:$0xff] }
 0x30a   : > { %v7136_v46 = vpop.eup %7135  ;;  %6291 = vmatprep.mubr.msk.f32.mxu0 %vm2500_vm2, %v7134_v44  ;;  %v6693_v44 = vpack.c.bf16 %v3601_v41, %v3600_v40  ;;  %v7492_v40 = vld [vmem:[%s7621_s18 + $0x1b8] sm:$0xff]  ;;  %v7493_v41 = vld [vmem:[%s7621_s18 + $0x1c0] sm:$0xff] }
 0x30b   : > { %7145 = vtanh.f32 %v2342_v45  ;;  %v6207_v47 = vpop.f32.mrb[82].mxu1  ;;  %6292 = vmatmul.mubr.msk.f32.gmra.mrb[134].mxu0 %vm2500_vm2, %v7136_v46  ;;  %v3603_v45 = vld [vmem:[%s8853_s10 + $0x28] sm:$0xff] }
 0x30c   : > { %7147 = vtanh.f32 %v2347_v42  ;;  %v2357_v48 = vadd.f32 %v6207_v47, %v8054_v29  ;;  %v2351_v49 = vpop.f32.mrb[83].mxu1  ;;  %v3602_v42 = vld [vmem:[%s8853_s10 + $0x20] sm:$0xff]  ;;  %v3604_v47 = vld [vmem:[%s8853_s10 + $0x30] sm:$0xff]  ;;  %6694 = vmatprep.subr.bf16.mxu1 %v6693_v44 }
 0x30d   : > { %v7138_v50 = vpop.eup %7137  ;;  %v2352_v51 = vadd.f32 %v8054_v29, %v2351_v49  ;;  %v6697_v46 = vpack.c.bf16 %v3603_v45, %v3602_v42  ;;  %v7438_v49 = vld [vmem:[%s7621_s18 + $0x8] sm:$0xff]  ;;  %6696 = vmatpush3.bf16.msra.mxu1 %v6693_v44  ;;  %v7496_v44 = vld [vmem:[%s7621_s18 + $0x1d8] sm:$0xff]  ;;  %v7497_v45 = vld [vmem:[%s7621_s18 + $0x1e0] sm:$0xff] }
 0x30e   : > { %v7140_v52 = vpop.eup %7139  ;;  %6294 = vmatprep.mubr.msk.f32.mxu0 %vm2500_vm2, %v7138_v50  ;;  %v7439_v50 = vld [vmem:[%s7621_s18 + $0x10] sm:$0xff]  ;;  %v7494_v42 = vld [vmem:[%s7621_s18 + $0x1c8] sm:$0xff] }
 0x30f   : > { %7149 = vtanh.f32 %v2352_v51  ;;  %v6210_v53 = vpop.f32.mrb[84].mxu1  ;;  %6295 = vmatmul.mubr.msk.f32.gmra.mrb[136].mxu0 %vm2500_vm2, %v7140_v52  ;;  %6698 = vmatprep.subr.bf16.mxu1 %v6697_v46  ;;  %v7440_v52 = vld [vmem:[%s7621_s18 + $0x18] sm:$0xff] }
 0x310   : > { %7151 = vtanh.f32 %v2357_v48  ;;  %v2367_v54 = vadd.f32 %v6210_v53, %v8054_v29  ;;  %v2361_v55 = vpop.f32.mrb[85].mxu1  ;;  %v3605_v48 = vld [vmem:[%s8853_s10 + $0x38] sm:$0xff]  ;;  %v7441_v53 = vld [vmem:[%s7621_s18 + $0x20] sm:$0xff] }
 0x311   : > { %v7142_v56 = vpop.eup %7141  ;;  %v2362_v57 = vadd.f32 %v8054_v29, %v2361_v55  ;;  %v6701_v51 = vpack.c.bf16 %v3605_v48, %v3604_v47  ;;  %6700 = vmatpush3.bf16.msra.mxu1 %v6697_v46  ;;  %v7443_v55 = vld [vmem:[%s7621_s18 + $0x30] sm:$0xff]  ;;  %v7498_v46 = vld [vmem:[%s7621_s18 + $0x1e8] sm:$0xff]  ;;  %v7500_v48 = vld [vmem:[%s7621_s18 + $0x1f8] sm:$0xff] }
 0x312   : > { %v7144_v58 = vpop.eup %7143  ;;  %6297 = vmatprep.mubr.msk.f32.mxu0 %vm2500_vm2, %v7142_v56  ;;  %v7444_v56 = vld [vmem:[%s7621_s18 + $0x38] sm:$0xff]  ;;  %v7499_v47 = vld [vmem:[%s7621_s18 + $0x1f0] sm:$0xff] }
 0x313   : > { %7153 = vtanh.f32 %v2362_v57  ;;  %v6213_v59 = vpop.f32.mrb[86].mxu1  ;;  %6298 = vmatmul.mubr.msk.f32.gmra.mrb[138].mxu0 %vm2500_vm2, %v7144_v58  ;;  %6702 = vmatprep.subr.bf16.mxu1 %v6701_v51  ;;  %v7445_v57 = vld [vmem:[%s7621_s18 + $0x40] sm:$0xff]  ;;  %v7446_v58 = vld [vmem:[%s7621_s18 + $0x48] sm:$0xff] }
 0x314   : > { %7155 = vtanh.f32 %v2367_v54  ;;  %v2377_v60 = vadd.f32 %v6213_v59, %v8054_v29  ;;  %v2371_v61 = vpop.f32.mrb[87].mxu1  ;;  %v7442_v54 = vld [vmem:[%s7621_s18 + $0x28] sm:$0xff]  ;;  %v7447_v59 = vld [vmem:[%s7621_s18 + $0x50] sm:$0xff] }
 0x315   : > { %v7146_v62 = vpop.eup %7145  ;;  %v2372_v63 = vadd.f32 %v8054_v29, %v2371_v61  ;;  %6704 = vmatpush3.bf16.msra.mxu1 %v6701_v51  ;;  %v7449_v61 = vld [vmem:[%s7621_s18 + $0x60] sm:$0xff] }
 0x316   : > { %v7148_v0 = vpop.eup %7147  ;;  %6300 = vmatprep.mubr.msk.f32.mxu0 %vm2500_vm2, %v7146_v62  ;;  %v7450_v62 = vld [vmem:[%s7621_s18 + $0x68] sm:$0xff] }
 0x317   : > { %7157 = vtanh.f32 %v2372_v63  ;;  %v6216_v1 = vpop.f32.mrb[88].mxu1  ;;  %6301 = vmatmul.mubr.msk.f32.gmra.mrb[140].mxu0 %vm2500_vm2, %v7148_v0  ;;  %v7451_v63 = vld [vmem:[%s7621_s18 + $0x70] sm:$0xff]  ;;  %v7452_v0 = vld [vmem:[%s7621_s18 + $0x78] sm:$0xff] }
 0x318   : > { %7159 = vtanh.f32 %v2377_v60  ;;  %v2387_v2 = vadd.f32 %v6216_v1, %v8054_v29  ;;  %v2381_v3 = vpop.f32.mrb[89].mxu1  ;;  %v7448_v60 = vld [vmem:[%s7621_s18 + $0x58] sm:$0xff]  ;;  %v7453_v1 = vld [vmem:[%s7621_s18 + $0x80] sm:$0xff] }
 0x319   : > { %v7150_v4 = vpop.eup %7149  ;;  %v2382_v5 = vadd.f32 %v8054_v29, %v2381_v3  ;;  %v7455_v3 = vld [vmem:[%s7621_s18 + $0x90] sm:$0xff] }
 0x31a   : > { %v7152_v6 = vpop.eup %7151  ;;  %6303 = vmatprep.mubr.msk.f32.mxu0 %vm2500_vm2, %v7150_v4  ;;  %v7456_v4 = vld [vmem:[%s7621_s18 + $0x98] sm:$0xff] }
 0x31b   : > { %7161 = vtanh.f32 %v2382_v5  ;;  %v6219_v7 = vpop.f32.mrb[90].mxu1  ;;  %6304 = vmatmul.mubr.msk.f32.gmra.mrb[142].mxu0 %vm2500_vm2, %v7152_v6  ;;  %v7457_v5 = vld [vmem:[%s7621_s18 + $0xa0] sm:$0xff]  ;;  %v7458_v6 = vld [vmem:[%s7621_s18 + $0xa8] sm:$0xff] }
 0x31c   : > { %7163 = vtanh.f32 %v2387_v2  ;;  %v2397_v10 = vadd.f32 %v6219_v7, %v8054_v29  ;;  %v2391_v11 = vpop.f32.mrb[91].mxu1  ;;  %v7454_v2 = vld [vmem:[%s7621_s18 + $0x88] sm:$0xff]  ;;  %v7459_v7 = vld [vmem:[%s7621_s18 + $0xb0] sm:$0xff] }
 0x31d   : > { %v7154_v31 = vpop.eup %7153  ;;  %v2392_v14 = vadd.f32 %v8054_v29, %v2391_v11  ;;  %v7463_v11 = vld [vmem:[%s7621_s18 + $0xd0] sm:$0xff] }
 0x31e   : > { %v7156_v15 = vpop.eup %7155  ;;  %6306 = vmatprep.mubr.msk.f32.mxu0 %vm2500_vm2, %v7154_v31  ;;  %v7465_v31 = vld [vmem:[%s7621_s18 + $0xe0] sm:$0xff] }
 0x31f   : > { %7165 = vtanh.f32 %v2392_v14  ;;  %v6222_v16 = vpop.f32.mrb[92].mxu1  ;;  %6307 = vmatmul.mubr.msk.f32.gmra.mrb[144].mxu0 %vm2500_vm2, %v7156_v15  ;;  %v7466_v14 = vld [vmem:[%s7621_s18 + $0xe8] sm:$0xff]  ;;  %v7467_v15 = vld [vmem:[%s7621_s18 + $0xf0] sm:$0xff] }
 0x320   : > { %7167 = vtanh.f32 %v2397_v10  ;;  %v2407_v17 = vadd.f32 %v6222_v16, %v8054_v29  ;;  %v2401_v18 = vpop.f32.mrb[93].mxu1  ;;  %v7462_v10 = vld [vmem:[%s7621_s18 + $0xc8] sm:$0xff]  ;;  %v7468_v16 = vld [vmem:[%s7621_s18 + $0xf8] sm:$0xff] }
 0x321   : > { %v7158_v19 = vpop.eup %7157  ;;  %v2402_v20 = vadd.f32 %v8054_v29, %v2401_v18  ;;  %v7470_v18 = vld [vmem:[%s7621_s18 + $0x108] sm:$0xff] }
 0x322   : > { %v7160_v13 = vpop.eup %7159  ;;  %6309 = vmatprep.mubr.msk.f32.mxu0 %vm2500_vm2, %v7158_v19  ;;  %v7471_v19 = vld [vmem:[%s7621_s18 + $0x110] sm:$0xff] }
 0x323   : > { %7169 = vtanh.f32 %v2402_v20  ;;  %v6225_v21 = vpop.f32.mrb[94].mxu1  ;;  %6310 = vmatmul.mubr.msk.f32.gmra.mrb[146].mxu0 %vm2500_vm2, %v7160_v13  ;;  %v7472_v20 = vld [vmem:[%s7621_s18 + $0x118] sm:$0xff]  ;;  %v7473_v13 = vld [vmem:[%s7621_s18 + $0x120] sm:$0xff] }
 0x324   : > { %7171 = vtanh.f32 %v2407_v17  ;;  %v2417_v23 = vadd.f32 %v6225_v21, %v8054_v29  ;;  %v2411_v24 = vpop.f32.mrb[95].mxu1  ;;  %v7469_v17 = vld [vmem:[%s7621_s18 + $0x100] sm:$0xff]  ;;  %v7474_v21 = vld [vmem:[%s7621_s18 + $0x128] sm:$0xff] }
 0x325   : > { %v7162_v25 = vpop.eup %7161  ;;  %v2412_v26 = vadd.f32 %v8054_v29, %v2411_v24  ;;  %v7476_v24 = vld [vmem:[%s7621_s18 + $0x138] sm:$0xff] }
 0x326   : > { %v7164_v27 = vpop.eup %7163  ;;  %6312 = vmatprep.mubr.msk.f32.mxu0 %vm2500_vm2, %v7162_v25  ;;  %v7477_v25 = vld [vmem:[%s7621_s18 + $0x140] sm:$0xff] }
 0x327   : > { %7173 = vtanh.f32 %v2412_v26  ;;  %v6228_v22 = vpop.f32.mrb[96].mxu1  ;;  %6313 = vmatmul.mubr.msk.f32.gmra.mrb[148].mxu0 %vm2500_vm2, %v7164_v27  ;;  %v7478_v26 = vld [vmem:[%s7621_s18 + $0x148] sm:$0xff]  ;;  %v7479_v27 = vld [vmem:[%s7621_s18 + $0x150] sm:$0xff] }
 0x328   : > { %7175 = vtanh.f32 %v2417_v23  ;;  %v2427_v28 = vadd.f32 %v6228_v22, %v8054_v29  ;;  %v2421_v30 = vpop.f32.mrb[97].mxu1  ;;  %v7475_v23 = vld [vmem:[%s7621_s18 + $0x130] sm:$0xff]  ;;  %v7480_v22 = vld [vmem:[%s7621_s18 + $0x158] sm:$0xff] }
 0x329   : > { %v7166_v32 = vpop.eup %7165  ;;  %v2422_v33 = vadd.f32 %v8054_v29, %v2421_v30  ;;  %v7482_v30 = vld [vmem:[%s7621_s18 + $0x168] sm:$0xff] }
 0x32a   : > { %v7168_v34 = vpop.eup %7167  ;;  %6315 = vmatprep.mubr.msk.f32.mxu0 %vm2500_vm2, %v7166_v32  ;;  %v7483_v32 = vld [vmem:[%s7621_s18 + $0x170] sm:$0xff] }
 0x32b   : > { %7177 = vtanh.f32 %v2422_v33  ;;  %6316 = vmatmul.mubr.msk.f32.gmra.mrb[150].mxu0 %vm2500_vm2, %v7168_v34  ;;  %v7484_v33 = vld [vmem:[%s7621_s18 + $0x178] sm:$0xff]  ;;  %v7485_v34 = vld [vmem:[%s7621_s18 + $0x180] sm:$0xff] }
 0x32c   : > { %7179 = vtanh.f32 %v2427_v28  ;;  %v7481_v28 = vld [vmem:[%s7621_s18 + $0x160] sm:$0xff] }
 0x32d   : > { %v7170_v35 = vpop.eup %7169 }
 0x32e   : > { %v7172_v36 = vpop.eup %7171  ;;  %6318 = vmatprep.mubr.msk.f32.mxu0 %vm2500_vm2, %v7170_v35  ;;  %v7486_v35 = vld [vmem:[%s7621_s18 + $0x188] sm:$0xff] }
 0x32f   : > { %6319 = vmatmul.mubr.msk.f32.gmra.mrb[152].mxu0 %vm2500_vm2, %v7172_v36  ;;  %v7487_v36 = vld [vmem:[%s7621_s18 + $0x190] sm:$0xff] }
 0x331   : > { %v7174_v37 = vpop.eup %7173 }
 0x332   : > { %v7176_v38 = vpop.eup %7175  ;;  %6321 = vmatprep.mubr.msk.f32.mxu0 %vm2500_vm2, %v7174_v37  ;;  %v7488_v37 = vld [vmem:[%s7621_s18 + $0x198] sm:$0xff] }
 0x333   : > { %6322 = vmatmul.mubr.msk.f32.gmra.mrb[154].mxu0 %vm2500_vm2, %v7176_v38  ;;  %v7489_v38 = vld [vmem:[%s7621_s18 + $0x1a0] sm:$0xff] }
 0x335   : > { %v7178_v29 = vpop.eup %7177 }
 0x336   : > { %v7180_v39 = vpop.eup %7179  ;;  %6324 = vmatprep.mubr.msk.f32.mxu0 %vm2500_vm2, %v7178_v29  ;;  %v7490_v29 = vld [vmem:[%s7621_s18 + $0x1a8] sm:$0xff] }
 0x337   : > { %6325 = vmatmul.mubr.msk.f32.gmra.mrb[156].mxu0 %vm2500_vm2, %v7180_v39  ;;  %v7491_v39 = vld [vmem:[%s7621_s18 + $0x1b0] sm:$0xff] }
 0x338   : > { %6337 = vmatprep.mubr.msk.f32.mxu0 %vm547_vm0, %v7437_v43  ;;  %v7495_v43 = vld [vmem:[%s7621_s18 + $0x1d0] sm:$0xff] }
 0x33b   : > { %6338 = vmatmul.mubr.msk.f32.vlgmr.msra.gmra.mrb[94].mxu0 %vm547_vm0, %v7438_v49  ;;  %v4255_v49 = vld [vmem:[%s8855_s12] sm:$0xff] }
 0x33c   : > { %6340 = vmatprep.mubr.msk.f32.mxu0 %vm547_vm0, %v7439_v50  ;;  %v4256_v50 = vld [vmem:[%s8855_s12 + $0x8] sm:$0xff] }
 0x33d   : > { %v6705_v51 = vpack.c.bf16 %v4256_v50, %v4255_v49 }
 0x33f   : > { %6341 = vmatmul.mubr.msk.f32.gmra.mrb[96].mxu0 %vm547_vm0, %v7440_v52  ;;  %6706 = vmatprep.subr.bf16.mxu1 %v6705_v51  ;;  %v8355_v52 = vld [vmem:[%s8852_s9] ss:$0 sm:$0xff] }
 0x340   : > { %6343 = vmatprep.mubr.msk.f32.mxu0 %vm547_vm0, %v7441_v53 }
 0x343   : > { %6344 = vmatmul.mubr.msk.f32.gmra.mrb[98].mxu0 %vm547_vm0, %v7442_v54 }
 0x344   : > { %6346 = vmatprep.mubr.msk.f32.mxu0 %vm547_vm0, %v7443_v55 }
 0x347   : > { %6347 = vmatmul.mubr.msk.f32.gmra.mrb[100].mxu0 %vm547_vm0, %v7444_v56 }
 0x348   : > { %6349 = vmatprep.mubr.msk.f32.mxu0 %vm547_vm0, %v7445_v57 }
 0x34b   : > { %6350 = vmatmul.mubr.msk.f32.gmra.mrb[102].mxu0 %vm547_vm0, %v7446_v58 }
 0x34c   : > { %6352 = vmatprep.mubr.msk.f32.mxu0 %vm547_vm0, %v7447_v59 }
 0x34f   : > { %6353 = vmatmul.mubr.msk.f32.gmra.mrb[104].mxu0 %vm547_vm0, %v7448_v60 }
 0x350   : > { %6355 = vmatprep.mubr.msk.f32.mxu0 %vm547_vm0, %v7449_v61 }
 0x353   : > { %6356 = vmatmul.mubr.msk.f32.gmra.mrb[106].mxu0 %vm547_vm0, %v7450_v62 }
 0x354   : > { %6358 = vmatprep.mubr.msk.f32.mxu0 %vm547_vm0, %v7451_v63 }
 0x357   : > { %6359 = vmatmul.mubr.msk.f32.gmra.mrb[108].mxu0 %vm547_vm0, %v7452_v0 }
 0x358   : > { %6361 = vmatprep.mubr.msk.f32.mxu0 %vm547_vm0, %v7453_v1 }
 0x35b   : > { %6362 = vmatmul.mubr.msk.f32.gmra.mrb[110].mxu0 %vm547_vm0, %v7454_v2  ;;  %v4257_v2 = vld [vmem:[%s8855_s12 + $0x10] sm:$0xff] }
 0x35c   : > { %6364 = vmatprep.mubr.msk.f32.mxu0 %vm547_vm0, %v7455_v3  ;;  %v4258_v3 = vld [vmem:[%s8855_s12 + $0x18] sm:$0xff] }
 0x35f   : > { %6365 = vmatmul.mubr.msk.f32.gmra.mrb[112].mxu0 %vm547_vm0, %v7456_v4 }
 0x360   : > { %6367 = vmatprep.mubr.msk.f32.mxu0 %vm547_vm0, %v7457_v5 }
 0x363   : > { %6368 = vmatmul.mubr.msk.f32.gmra.mrb[114].mxu0 %vm547_vm0, %v7458_v6 }
 0x364   : > { %6370 = vmatprep.mubr.msk.f32.mxu0 %vm547_vm0, %v7459_v7 }
 0x367   : > { %6371 = vmatmul.mubr.msk.f32.gmra.mrb[116].mxu0 %vm547_vm0, %v7460_v8  ;;  %v6709_v8 = vpack.c.bf16 %v4258_v3, %v4257_v2 }
 0x368   : > { %6373 = vmatprep.mubr.msk.f32.mxu0 %vm547_vm0, %v7461_v9 }
 0x36b   : > { %6374 = vmatmul.mubr.msk.f32.gmra.mrb[118].mxu0 %vm547_vm0, %v7462_v10  ;;  %v4259_v10 = vld [vmem:[%s8855_s12 + $0x20] sm:$0xff] }
 0x36c   : > { %6376 = vmatprep.mubr.msk.f32.mxu0 %vm547_vm0, %v7463_v11  ;;  %v4260_v11 = vld [vmem:[%s8855_s12 + $0x28] sm:$0xff] }
 0x36f   : > { %6377 = vmatmul.mubr.msk.f32.gmra.mrb[120].mxu0 %vm547_vm0, %v7464_v12 }
 0x370   : > { %6379 = vmatprep.mubr.msk.f32.mxu0 %vm547_vm0, %v7465_v31 }
 0x373   : > { %6380 = vmatmul.mubr.msk.f32.gmra.mrb[122].mxu0 %vm547_vm0, %v7466_v14 }
 0x374   : > { %6382 = vmatprep.mubr.msk.f32.mxu0 %vm547_vm0, %v7467_v15 }
 0x377   : > { %6383 = vmatmul.mubr.msk.f32.gmra.mrb[124].mxu0 %vm547_vm0, %v7468_v16 }
 0x378   : > { %6385 = vmatprep.mubr.msk.f32.mxu0 %vm547_vm0, %v7469_v17  ;;  %v6713_v17 = vpack.c.bf16 %v4260_v11, %v4259_v10 }
 0x37b   : > { %6386 = vmatmul.mubr.msk.f32.gmra.mrb[126].mxu0 %vm547_vm0, %v7470_v18 }
 0x37c   : > { %6388 = vmatprep.mubr.msk.f32.mxu0 %vm547_vm0, %v7471_v19  ;;  %v4261_v19 = vld [vmem:[%s8855_s12 + $0x30] sm:$0xff] }
 0x37f   : > { %6389 = vmatmul.mubr.msk.f32.gmra.mrb[128].mxu0 %vm547_vm0, %v7472_v20  ;;  %v4262_v20 = vld [vmem:[%s8855_s12 + $0x38] sm:$0xff] }
 0x380   : > { %6391 = vmatprep.mubr.msk.f32.mxu0 %vm547_vm0, %v7473_v13 }
 0x383   : > { %6392 = vmatmul.mubr.msk.f32.gmra.mrb[130].mxu0 %vm547_vm0, %v7474_v21 }
 0x384   : > { %6394 = vmatprep.mubr.msk.f32.mxu0 %vm547_vm0, %v7475_v23 }
 0x387   : > { %6395 = vmatmul.mubr.msk.f32.gmra.mrb[132].mxu0 %vm547_vm0, %v7476_v24 }
 0x388   : > { %6397 = vmatprep.mubr.msk.f32.mxu0 %vm547_vm0, %v7477_v25 }
 0x38b   : > { %6398 = vmatmul.mubr.msk.f32.gmra.mrb[134].mxu0 %vm547_vm0, %v7478_v26  ;;  %v6717_v26 = vpack.c.bf16 %v4262_v20, %v4261_v19 }
 0x38c   : > { %6400 = vmatprep.mubr.msk.f32.mxu0 %vm547_vm0, %v7479_v27 }
 0x38f   : > { %6401 = vmatmul.mubr.msk.f32.gmra.mrb[136].mxu0 %vm547_vm0, %v7480_v22 }
 0x390   : > { %6403 = vmatprep.mubr.msk.f32.mxu0 %vm547_vm0, %v7481_v28 }
 0x393   : > { %6404 = vmatmul.mubr.msk.f32.gmra.mrb[138].mxu0 %vm547_vm0, %v7482_v30 }
 0x394   : > { %6406 = vmatprep.mubr.msk.f32.mxu0 %vm547_vm0, %v7483_v32 }
 0x397   : > { %6407 = vmatmul.mubr.msk.f32.gmra.mrb[140].mxu0 %vm547_vm0, %v7484_v33 }
 0x398   : > { %6409 = vmatprep.mubr.msk.f32.mxu0 %vm547_vm0, %v7485_v34 }
 0x39b   : > { %6410 = vmatmul.mubr.msk.f32.gmra.mrb[142].mxu0 %vm547_vm0, %v7486_v35 }
 0x39c   : > { %6412 = vmatprep.mubr.msk.f32.mxu0 %vm547_vm0, %v7487_v36 }
 0x39f   : > { %6413 = vmatmul.mubr.msk.f32.gmra.mrb[144].mxu0 %vm547_vm0, %v7488_v37 }
 0x3a0   : > { %6415 = vmatprep.mubr.msk.f32.mxu0 %vm547_vm0, %v7489_v38 }
 0x3a3   : > { %6416 = vmatmul.mubr.msk.f32.gmra.mrb[146].mxu0 %vm547_vm0, %v7490_v29 }
 0x3a4   : > { %6418 = vmatprep.mubr.msk.f32.mxu0 %vm547_vm0, %v7491_v39 }
 0x3a7   : > { %6419 = vmatmul.mubr.msk.f32.gmra.mrb[148].mxu0 %vm547_vm0, %v7492_v40 }
 0x3a8   : > { %6421 = vmatprep.mubr.msk.f32.mxu0 %vm547_vm0, %v7493_v41 }
 0x3ab   : > { %6422 = vmatmul.mubr.msk.f32.gmra.mrb[150].mxu0 %vm547_vm0, %v7494_v42 }
 0x3ac   : > { %6424 = vmatprep.mubr.msk.f32.mxu0 %vm547_vm0, %v7495_v43 }
 0x3af   : > { %6425 = vmatmul.mubr.msk.f32.gmra.mrb[152].mxu0 %vm547_vm0, %v7496_v44 }
 0x3b0   : > { %6427 = vmatprep.mubr.msk.f32.mxu0 %vm547_vm0, %v7497_v45 }
 0x3b3   : > { %6428 = vmatmul.mubr.msk.f32.gmra.mrb[154].mxu0 %vm547_vm0, %v7498_v46 }
 0x3b4   : > { %6430 = vmatprep.mubr.msk.f32.mxu0 %vm547_vm0, %v7499_v47 }
 0x3b7   : > { %6431 = vmatmul.mubr.msk.f32.gmra.mrb[156].mxu0 %vm547_vm0, %v7500_v48 }
 0x40e   : > { %v6339_v53 = vpop.f32.mrb[94].mxu0 }
 0x40f   : > { %v3471_v54 = vadd.f32 %v6339_v53, %v8355_v52  ;;  %v3144_v55 = vpop.f32.mrb[95].mxu0 }
 0x410   : > { %v3470_v56 = vadd.f32 %v8355_v52, %v3144_v55 }
 0x412   : > { %7181 = vtanh.f32 %v3470_v56  ;;  %v6342_v57 = vpop.f32.mrb[96].mxu0 }
 0x413   : > { %7183 = vtanh.f32 %v3471_v54  ;;  %v3473_v58 = vadd.f32 %v6342_v57, %v8355_v52  ;;  %v3154_v59 = vpop.f32.mrb[97].mxu0 }
 0x414   : > { %v3472_v60 = vadd.f32 %v8355_v52, %v3154_v59 }
 0x416   : > { %7185 = vtanh.f32 %v3472_v60  ;;  %v6345_v61 = vpop.f32.mrb[98].mxu0 }
 0x417   : > { %7187 = vtanh.f32 %v3473_v58  ;;  %v3475_v62 = vadd.f32 %v6345_v61, %v8355_v52  ;;  %v3164_v63 = vpop.f32.mrb[99].mxu0 }
 0x418   : > { %v3474_v0 = vadd.f32 %v8355_v52, %v3164_v63 }
 0x41a   : > { %7189 = vtanh.f32 %v3474_v0  ;;  %v6348_v1 = vpop.f32.mrb[100].mxu0 }
 0x41b   : > { %7191 = vtanh.f32 %v3475_v62  ;;  %v3477_v4 = vadd.f32 %v6348_v1, %v8355_v52  ;;  %v3174_v5 = vpop.f32.mrb[101].mxu0 }
 0x41c   : > { %v7182_v6 = vpop.eup %7181  ;;  %v3476_v7 = vadd.f32 %v8355_v52, %v3174_v5 }
 0x41d   : > { %v7184_v9 = vpop.eup %7183  ;;  %6449 = vmatprep.mubr.msk.f32.mxu1 %vm3613_vm3, %v7182_v6 }
 0x41e   : > { %7193 = vtanh.f32 %v3476_v7  ;;  %v6351_v12 = vpop.f32.mrb[102].mxu0  ;;  %6450 = vmatmul.mubr.msk.f32.vlgmr.msra.gmra.mrb[98].mxu1 %vm3613_vm3, %v7184_v9 }
 0x41f   : > { %7195 = vtanh.f32 %v3477_v4  ;;  %v3479_v31 = vadd.f32 %v6351_v12, %v8355_v52  ;;  %v3184_v14 = vpop.f32.mrb[103].mxu0  ;;  %6708 = vmatpush3.bf16.msra.mxu1 %v6705_v51 }
 0x420   : > { %v7186_v15 = vpop.eup %7185  ;;  %v3478_v16 = vadd.f32 %v8355_v52, %v3184_v14  ;;  %6710 = vmatprep.subr.bf16.mxu1 %v6709_v8 }
 0x421   : > { %v7188_v18 = vpop.eup %7187  ;;  %6452 = vmatprep.mubr.msk.f32.mxu1 %vm3613_vm3, %v7186_v15 }
 0x422   : > { %7197 = vtanh.f32 %v3478_v16  ;;  %v6354_v13 = vpop.f32.mrb[104].mxu0  ;;  %6453 = vmatmul.mubr.msk.f32.gmra.mrb[100].mxu1 %vm3613_vm3, %v7188_v18 }
 0x423   : > { %7199 = vtanh.f32 %v3479_v31  ;;  %v3481_v21 = vadd.f32 %v6354_v13, %v8355_v52  ;;  %v3194_v23 = vpop.f32.mrb[105].mxu0  ;;  %6712 = vmatpush3.bf16.msra.mxu1 %v6709_v8 }
 0x424   : > { %v7190_v24 = vpop.eup %7189  ;;  %v3480_v25 = vadd.f32 %v8355_v52, %v3194_v23  ;;  %6714 = vmatprep.subr.bf16.mxu1 %v6713_v17 }
 0x425   : > { %v7192_v27 = vpop.eup %7191  ;;  %6455 = vmatprep.mubr.msk.f32.mxu1 %vm3613_vm3, %v7190_v24 }
 0x426   : > { %7201 = vtanh.f32 %v3480_v25  ;;  %v6357_v22 = vpop.f32.mrb[106].mxu0  ;;  %6456 = vmatmul.mubr.msk.f32.gmra.mrb[102].mxu1 %vm3613_vm3, %v7192_v27 }
 0x427   : > { %7203 = vtanh.f32 %v3481_v21  ;;  %v3483_v28 = vadd.f32 %v6357_v22, %v8355_v52  ;;  %v3204_v30 = vpop.f32.mrb[107].mxu0  ;;  %6716 = vmatpush3.bf16.msra.mxu1 %v6713_v17 }
 0x428   : > { %v7194_v32 = vpop.eup %7193  ;;  %v3482_v33 = vadd.f32 %v8355_v52, %v3204_v30  ;;  %6718 = vmatprep.subr.bf16.mxu1 %v6717_v26 }
 0x429   : > { %v7196_v34 = vpop.eup %7195  ;;  %6458 = vmatprep.mubr.msk.f32.mxu1 %vm3613_vm3, %v7194_v32 }
 0x42a   : > { %7205 = vtanh.f32 %v3482_v33  ;;  %v6360_v35 = vpop.f32.mrb[108].mxu0  ;;  %6459 = vmatmul.mubr.msk.f32.gmra.mrb[104].mxu1 %vm3613_vm3, %v7196_v34 }
 0x42b   : > { %7207 = vtanh.f32 %v3483_v28  ;;  %v3485_v36 = vadd.f32 %v6360_v35, %v8355_v52  ;;  %v3214_v37 = vpop.f32.mrb[109].mxu0  ;;  %6720 = vmatpush3.bf16.msra.mxu1 %v6717_v26 }
 0x42c   : > { %v7198_v38 = vpop.eup %7197  ;;  %v3484_v29 = vadd.f32 %v8355_v52, %v3214_v37 }
 0x42d   : > { %v7200_v39 = vpop.eup %7199  ;;  %6461 = vmatprep.mubr.msk.f32.mxu1 %vm3613_vm3, %v7198_v38 }
 0x42e   : > { %7209 = vtanh.f32 %v3484_v29  ;;  %v6363_v40 = vpop.f32.mrb[110].mxu0  ;;  %6462 = vmatmul.mubr.msk.f32.gmra.mrb[106].mxu1 %vm3613_vm3, %v7200_v39 }
 0x42f   : > { %7211 = vtanh.f32 %v3485_v36  ;;  %v3487_v41 = vadd.f32 %v6363_v40, %v8355_v52  ;;  %v3224_v42 = vpop.f32.mrb[111].mxu0 }
 0x430   : > { %v7202_v43 = vpop.eup %7201  ;;  %v3486_v44 = vadd.f32 %v8355_v52, %v3224_v42 }
 0x431   : > { %v7204_v45 = vpop.eup %7203  ;;  %6464 = vmatprep.mubr.msk.f32.mxu1 %vm3613_vm3, %v7202_v43 }
 0x432   : > { %7213 = vtanh.f32 %v3486_v44  ;;  %v6366_v46 = vpop.f32.mrb[112].mxu0  ;;  %6465 = vmatmul.mubr.msk.f32.gmra.mrb[108].mxu1 %vm3613_vm3, %v7204_v45 }
 0x433   : > { %7215 = vtanh.f32 %v3487_v41  ;;  %v3489_v47 = vadd.f32 %v6366_v46, %v8355_v52  ;;  %v3234_v48 = vpop.f32.mrb[113].mxu0 }
 0x434   : > { %v7206_v49 = vpop.eup %7205  ;;  %v3488_v50 = vadd.f32 %v8355_v52, %v3234_v48 }
 0x435   : > { %v7208_v51 = vpop.eup %7207  ;;  %6467 = vmatprep.mubr.msk.f32.mxu1 %vm3613_vm3, %v7206_v49 }
 0x436   : > { %7217 = vtanh.f32 %v3488_v50  ;;  %v6369_v53 = vpop.f32.mrb[114].mxu0  ;;  %6468 = vmatmul.mubr.msk.f32.gmra.mrb[110].mxu1 %vm3613_vm3, %v7208_v51 }
 0x437   : > { %7219 = vtanh.f32 %v3489_v47  ;;  %v3491_v54 = vadd.f32 %v6369_v53, %v8355_v52  ;;  %v3244_v55 = vpop.f32.mrb[115].mxu0 }
 0x438   : > { %v7210_v56 = vpop.eup %7209  ;;  %v3490_v57 = vadd.f32 %v8355_v52, %v3244_v55 }
 0x439   : > { %v7212_v58 = vpop.eup %7211  ;;  %6470 = vmatprep.mubr.msk.f32.mxu1 %vm3613_vm3, %v7210_v56 }
 0x43a   : > { %7221 = vtanh.f32 %v3490_v57  ;;  %v6372_v59 = vpop.f32.mrb[116].mxu0  ;;  %6471 = vmatmul.mubr.msk.f32.gmra.mrb[112].mxu1 %vm3613_vm3, %v7212_v58 }
 0x43b   : > { %7223 = vtanh.f32 %v3491_v54  ;;  %v3493_v60 = vadd.f32 %v6372_v59, %v8355_v52  ;;  %v3254_v61 = vpop.f32.mrb[117].mxu0 }
 0x43c   : > { %v7214_v62 = vpop.eup %7213  ;;  %v3492_v63 = vadd.f32 %v8355_v52, %v3254_v61 }
 0x43d   : > { %v7216_v0 = vpop.eup %7215  ;;  %6473 = vmatprep.mubr.msk.f32.mxu1 %vm3613_vm3, %v7214_v62 }
 0x43e   : > { %7225 = vtanh.f32 %v3492_v63  ;;  %v6375_v1 = vpop.f32.mrb[118].mxu0  ;;  %6474 = vmatmul.mubr.msk.f32.gmra.mrb[114].mxu1 %vm3613_vm3, %v7216_v0 }
 0x43f   : > { %7227 = vtanh.f32 %v3493_v60  ;;  %v3495_v2 = vadd.f32 %v6375_v1, %v8355_v52  ;;  %v3264_v3 = vpop.f32.mrb[119].mxu0 }
 0x440   : > { %v7218_v4 = vpop.eup %7217  ;;  %v3494_v5 = vadd.f32 %v8355_v52, %v3264_v3 }
 0x441   : > { %v7220_v6 = vpop.eup %7219  ;;  %6476 = vmatprep.mubr.msk.f32.mxu1 %vm3613_vm3, %v7218_v4 }
 0x442   : > { %7229 = vtanh.f32 %v3494_v5  ;;  %v6378_v7 = vpop.f32.mrb[120].mxu0  ;;  %6477 = vmatmul.mubr.msk.f32.gmra.mrb[116].mxu1 %vm3613_vm3, %v7220_v6 }
 0x443   : > { %7231 = vtanh.f32 %v3495_v2  ;;  %v3497_v8 = vadd.f32 %v6378_v7, %v8355_v52  ;;  %v3274_v9 = vpop.f32.mrb[121].mxu0 }
 0x444   : > { %v7222_v10 = vpop.eup %7221  ;;  %v3496_v11 = vadd.f32 %v8355_v52, %v3274_v9 }
 0x445   : > { %v7224_v12 = vpop.eup %7223  ;;  %6479 = vmatprep.mubr.msk.f32.mxu1 %vm3613_vm3, %v7222_v10 }
 0x446   : > { %7233 = vtanh.f32 %v3496_v11  ;;  %v6381_v31 = vpop.f32.mrb[122].mxu0  ;;  %6480 = vmatmul.mubr.msk.f32.gmra.mrb[118].mxu1 %vm3613_vm3, %v7224_v12 }
 0x447   : > { %7235 = vtanh.f32 %v3497_v8  ;;  %v3499_v14 = vadd.f32 %v6381_v31, %v8355_v52  ;;  %v3284_v15 = vpop.f32.mrb[123].mxu0 }
 0x448   : > { %v7226_v16 = vpop.eup %7225  ;;  %v3498_v17 = vadd.f32 %v8355_v52, %v3284_v15 }
 0x449   : > { %v7228_v18 = vpop.eup %7227  ;;  %6482 = vmatprep.mubr.msk.f32.mxu1 %vm3613_vm3, %v7226_v16 }
 0x44a   : > { %7237 = vtanh.f32 %v3498_v17  ;;  %v6384_v19 = vpop.f32.mrb[124].mxu0  ;;  %6483 = vmatmul.mubr.msk.f32.gmra.mrb[120].mxu1 %vm3613_vm3, %v7228_v18 }
 0x44b   : > { %7239 = vtanh.f32 %v3499_v14  ;;  %v3501_v20 = vadd.f32 %v6384_v19, %v8355_v52  ;;  %v3294_v13 = vpop.f32.mrb[125].mxu0 }
 0x44c   : > { %v7230_v21 = vpop.eup %7229  ;;  %v3500_v23 = vadd.f32 %v8355_v52, %v3294_v13 }
 0x44d   : > { %v7232_v24 = vpop.eup %7231  ;;  %6485 = vmatprep.mubr.msk.f32.mxu1 %vm3613_vm3, %v7230_v21 }
 0x44e   : > { %7241 = vtanh.f32 %v3500_v23  ;;  %v6387_v25 = vpop.f32.mrb[126].mxu0  ;;  %6486 = vmatmul.mubr.msk.f32.gmra.mrb[122].mxu1 %vm3613_vm3, %v7232_v24 }
 0x44f   : > { %7243 = vtanh.f32 %v3501_v20  ;;  %v3503_v26 = vadd.f32 %v6387_v25, %v8355_v52  ;;  %v3304_v27 = vpop.f32.mrb[127].mxu0 }
 0x450   : > { %v7234_v22 = vpop.eup %7233  ;;  %v3502_v28 = vadd.f32 %v8355_v52, %v3304_v27 }
 0x451   : > { %v7236_v30 = vpop.eup %7235  ;;  %6488 = vmatprep.mubr.msk.f32.mxu1 %vm3613_vm3, %v7234_v22 }
 0x452   : > { %7245 = vtanh.f32 %v3502_v28  ;;  %v6390_v32 = vpop.f32.mrb[128].mxu0  ;;  %6489 = vmatmul.mubr.msk.f32.gmra.mrb[124].mxu1 %vm3613_vm3, %v7236_v30 }
 0x453   : > { %7247 = vtanh.f32 %v3503_v26  ;;  %v3505_v33 = vadd.f32 %v6390_v32, %v8355_v52  ;;  %v3314_v34 = vpop.f32.mrb[129].mxu0 }
 0x454   : > { %v7238_v35 = vpop.eup %7237  ;;  %v3504_v36 = vadd.f32 %v8355_v52, %v3314_v34 }
 0x455   : > { %v7240_v37 = vpop.eup %7239  ;;  %6491 = vmatprep.mubr.msk.f32.mxu1 %vm3613_vm3, %v7238_v35 }
 0x456   : > { %7249 = vtanh.f32 %v3504_v36  ;;  %v6393_v38 = vpop.f32.mrb[130].mxu0  ;;  %6492 = vmatmul.mubr.msk.f32.gmra.mrb[126].mxu1 %vm3613_vm3, %v7240_v37 }
 0x457   : > { %7251 = vtanh.f32 %v3505_v33  ;;  %v3507_v29 = vadd.f32 %v6393_v38, %v8355_v52  ;;  %v3324_v39 = vpop.f32.mrb[131].mxu0 }
 0x458   : > { %v7242_v40 = vpop.eup %7241  ;;  %v3506_v41 = vadd.f32 %v8355_v52, %v3324_v39 }
 0x459   : > { %v7244_v42 = vpop.eup %7243  ;;  %6494 = vmatprep.mubr.msk.f32.mxu1 %vm3613_vm3, %v7242_v40 }
 0x45a   : > { %7253 = vtanh.f32 %v3506_v41  ;;  %v6396_v43 = vpop.f32.mrb[132].mxu0  ;;  %6495 = vmatmul.mubr.msk.f32.gmra.mrb[128].mxu1 %vm3613_vm3, %v7244_v42 }
 0x45b   : > { %7255 = vtanh.f32 %v3507_v29  ;;  %v3509_v44 = vadd.f32 %v6396_v43, %v8355_v52  ;;  %v3334_v45 = vpop.f32.mrb[133].mxu0 }
 0x45c   : > { %v7246_v46 = vpop.eup %7245  ;;  %v3508_v47 = vadd.f32 %v8355_v52, %v3334_v45 }
 0x45d   : > { %v7248_v48 = vpop.eup %7247  ;;  %6497 = vmatprep.mubr.msk.f32.mxu1 %vm3613_vm3, %v7246_v46 }
 0x45e   : > { %7257 = vtanh.f32 %v3508_v47  ;;  %v6399_v49 = vpop.f32.mrb[134].mxu0  ;;  %6498 = vmatmul.mubr.msk.f32.gmra.mrb[130].mxu1 %vm3613_vm3, %v7248_v48 }
 0x45f   : > { %7259 = vtanh.f32 %v3509_v44  ;;  %v3511_v50 = vadd.f32 %v6399_v49, %v8355_v52  ;;  %v3344_v51 = vpop.f32.mrb[135].mxu0 }
 0x460   : > { %v7250_v53 = vpop.eup %7249  ;;  %v3510_v54 = vadd.f32 %v8355_v52, %v3344_v51 }
 0x461   : > { %v7252_v55 = vpop.eup %7251  ;;  %6500 = vmatprep.mubr.msk.f32.mxu1 %vm3613_vm3, %v7250_v53 }
 0x462   : > { %7261 = vtanh.f32 %v3510_v54  ;;  %v6402_v56 = vpop.f32.mrb[136].mxu0  ;;  %6501 = vmatmul.mubr.msk.f32.gmra.mrb[132].mxu1 %vm3613_vm3, %v7252_v55 }
 0x463   : > { %7263 = vtanh.f32 %v3511_v50  ;;  %v3513_v57 = vadd.f32 %v6402_v56, %v8355_v52  ;;  %v3354_v58 = vpop.f32.mrb[137].mxu0 }
 0x464   : > { %v7254_v59 = vpop.eup %7253  ;;  %v3512_v60 = vadd.f32 %v8355_v52, %v3354_v58 }
 0x465   : > { %v7256_v61 = vpop.eup %7255  ;;  %6503 = vmatprep.mubr.msk.f32.mxu1 %vm3613_vm3, %v7254_v59 }
 0x466   : > { %7265 = vtanh.f32 %v3512_v60  ;;  %v6405_v62 = vpop.f32.mrb[138].mxu0  ;;  %6504 = vmatmul.mubr.msk.f32.gmra.mrb[134].mxu1 %vm3613_vm3, %v7256_v61 }
 0x467   : > { %7267 = vtanh.f32 %v3513_v57  ;;  %v3515_v63 = vadd.f32 %v6405_v62, %v8355_v52  ;;  %v3364_v0 = vpop.f32.mrb[139].mxu0 }
 0x468   : > { %v7258_v1 = vpop.eup %7257  ;;  %v3514_v2 = vadd.f32 %v8355_v52, %v3364_v0  ;;  %v8506_v0 = vld [vmem:[%s8854_s11] ss:$0 sm:$0xff] }
 0x469   : > { %v7260_v3 = vpop.eup %7259  ;;  %6506 = vmatprep.mubr.msk.f32.mxu1 %vm3613_vm3, %v7258_v1 }
 0x46a   : > { %7269 = vtanh.f32 %v3514_v2  ;;  %v6408_v4 = vpop.f32.mrb[140].mxu0  ;;  %6507 = vmatmul.mubr.msk.f32.gmra.mrb[136].mxu1 %vm3613_vm3, %v7260_v3 }
 0x46b   : > { %7271 = vtanh.f32 %v3515_v63  ;;  %v3517_v5 = vadd.f32 %v6408_v4, %v8355_v52  ;;  %v3374_v6 = vpop.f32.mrb[141].mxu0 }
 0x46c   : > { %v7262_v7 = vpop.eup %7261  ;;  %v3516_v8 = vadd.f32 %v8355_v52, %v3374_v6 }
 0x46d   : > { %v7264_v9 = vpop.eup %7263  ;;  %6509 = vmatprep.mubr.msk.f32.mxu1 %vm3613_vm3, %v7262_v7 }
 0x46e   : > { %7273 = vtanh.f32 %v3516_v8  ;;  %v6411_v10 = vpop.f32.mrb[142].mxu0  ;;  %6510 = vmatmul.mubr.msk.f32.gmra.mrb[138].mxu1 %vm3613_vm3, %v7264_v9 }
 0x46f   : > { %7275 = vtanh.f32 %v3517_v5  ;;  %v3519_v11 = vadd.f32 %v6411_v10, %v8355_v52  ;;  %v3384_v12 = vpop.f32.mrb[143].mxu0 }
 0x470   : > { %v7266_v31 = vpop.eup %7265  ;;  %v3518_v14 = vadd.f32 %v8355_v52, %v3384_v12 }
 0x471   : > { %v7268_v15 = vpop.eup %7267  ;;  %6512 = vmatprep.mubr.msk.f32.mxu1 %vm3613_vm3, %v7266_v31 }
 0x472   : > { %7277 = vtanh.f32 %v3518_v14  ;;  %v6414_v16 = vpop.f32.mrb[144].mxu0  ;;  %6513 = vmatmul.mubr.msk.f32.gmra.mrb[140].mxu1 %vm3613_vm3, %v7268_v15 }
 0x473   : > { %7279 = vtanh.f32 %v3519_v11  ;;  %v3521_v17 = vadd.f32 %v6414_v16, %v8355_v52  ;;  %v3394_v18 = vpop.f32.mrb[145].mxu0 }
 0x474   : > { %v7270_v19 = vpop.eup %7269  ;;  %v3520_v20 = vadd.f32 %v8355_v52, %v3394_v18 }
 0x475   : > { %v7272_v13 = vpop.eup %7271  ;;  %6515 = vmatprep.mubr.msk.f32.mxu1 %vm3613_vm3, %v7270_v19 }
 0x476   : > { %7281 = vtanh.f32 %v3520_v20  ;;  %v6417_v21 = vpop.f32.mrb[146].mxu0  ;;  %6516 = vmatmul.mubr.msk.f32.gmra.mrb[142].mxu1 %vm3613_vm3, %v7272_v13 }
 0x477   : > { %7283 = vtanh.f32 %v3521_v17  ;;  %v3523_v23 = vadd.f32 %v6417_v21, %v8355_v52  ;;  %v3404_v24 = vpop.f32.mrb[147].mxu0 }
 0x478   : > { %v7274_v25 = vpop.eup %7273  ;;  %v3522_v26 = vadd.f32 %v8355_v52, %v3404_v24 }
 0x479   : > { %v7276_v27 = vpop.eup %7275  ;;  %6518 = vmatprep.mubr.msk.f32.mxu1 %vm3613_vm3, %v7274_v25 }
 0x47a   : > { %7285 = vtanh.f32 %v3522_v26  ;;  %v6420_v22 = vpop.f32.mrb[148].mxu0  ;;  %6519 = vmatmul.mubr.msk.f32.gmra.mrb[144].mxu1 %vm3613_vm3, %v7276_v27 }
 0x47b   : > { %7287 = vtanh.f32 %v3523_v23  ;;  %v3525_v28 = vadd.f32 %v6420_v22, %v8355_v52  ;;  %v3414_v30 = vpop.f32.mrb[149].mxu0 }
 0x47c   : > { %v7278_v32 = vpop.eup %7277  ;;  %v3524_v33 = vadd.f32 %v8355_v52, %v3414_v30 }
 0x47d   : > { %v7280_v34 = vpop.eup %7279  ;;  %6521 = vmatprep.mubr.msk.f32.mxu1 %vm3613_vm3, %v7278_v32 }
 0x47e   : > { %7289 = vtanh.f32 %v3524_v33  ;;  %v6423_v35 = vpop.f32.mrb[150].mxu0  ;;  %6522 = vmatmul.mubr.msk.f32.gmra.mrb[146].mxu1 %vm3613_vm3, %v7280_v34 }
 0x47f   : > { %7291 = vtanh.f32 %v3525_v28  ;;  %v3527_v36 = vadd.f32 %v6423_v35, %v8355_v52  ;;  %v3424_v37 = vpop.f32.mrb[151].mxu0 }
 0x480   : > { %v7282_v38 = vpop.eup %7281  ;;  %v3526_v29 = vadd.f32 %v8355_v52, %v3424_v37 }
 0x481   : > { %v7284_v39 = vpop.eup %7283  ;;  %6524 = vmatprep.mubr.msk.f32.mxu1 %vm3613_vm3, %v7282_v38 }
 0x482   : > { %7293 = vtanh.f32 %v3526_v29  ;;  %v6426_v40 = vpop.f32.mrb[152].mxu0  ;;  %6525 = vmatmul.mubr.msk.f32.gmra.mrb[148].mxu1 %vm3613_vm3, %v7284_v39 }
 0x483   : > { %7295 = vtanh.f32 %v3527_v36  ;;  %v3529_v41 = vadd.f32 %v6426_v40, %v8355_v52  ;;  %v3434_v42 = vpop.f32.mrb[153].mxu0 }
 0x484   : > { %v7286_v43 = vpop.eup %7285  ;;  %v3528_v44 = vadd.f32 %v8355_v52, %v3434_v42 }
 0x485   : > { %v7288_v45 = vpop.eup %7287  ;;  %6527 = vmatprep.mubr.msk.f32.mxu1 %vm3613_vm3, %v7286_v43 }
 0x486   : > { %7297 = vtanh.f32 %v3528_v44  ;;  %v6429_v46 = vpop.f32.mrb[154].mxu0  ;;  %6528 = vmatmul.mubr.msk.f32.gmra.mrb[150].mxu1 %vm3613_vm3, %v7288_v45 }
 0x487   : > { %7299 = vtanh.f32 %v3529_v41  ;;  %v3531_v47 = vadd.f32 %v6429_v46, %v8355_v52  ;;  %v3444_v48 = vpop.f32.mrb[155].mxu0 }
 0x488   : > { %v7290_v49 = vpop.eup %7289  ;;  %v3530_v50 = vadd.f32 %v8355_v52, %v3444_v48 }
 0x489   : > { %v7292_v51 = vpop.eup %7291  ;;  %6530 = vmatprep.mubr.msk.f32.mxu1 %vm3613_vm3, %v7290_v49 }
 0x48a   : > { %7301 = vtanh.f32 %v3530_v50  ;;  %v6432_v53 = vpop.f32.mrb[156].mxu0  ;;  %6531 = vmatmul.mubr.msk.f32.gmra.mrb[152].mxu1 %vm3613_vm3, %v7292_v51 }
 0x48b   : > { %7303 = vtanh.f32 %v3531_v47  ;;  %v3533_v54 = vadd.f32 %v6432_v53, %v8355_v52  ;;  %v3454_v55 = vpop.f32.mrb[157].mxu0 }
 0x48c   : > { %v7294_v56 = vpop.eup %7293  ;;  %v3532_v57 = vadd.f32 %v8355_v52, %v3454_v55 }
 0x48d   : > { %v7296_v58 = vpop.eup %7295  ;;  %6533 = vmatprep.mubr.msk.f32.mxu1 %vm3613_vm3, %v7294_v56 }
 0x48e   : > { %7305 = vtanh.f32 %v3532_v57  ;;  %6534 = vmatmul.mubr.msk.f32.gmra.mrb[154].mxu1 %vm3613_vm3, %v7296_v58 }
 0x48f   : > { %7307 = vtanh.f32 %v3533_v54 }
 0x490   : > { %v7298_v59 = vpop.eup %7297 }
 0x491   : > { %v7300_v60 = vpop.eup %7299  ;;  %6536 = vmatprep.mubr.msk.f32.mxu1 %vm3613_vm3, %v7298_v59 }
 0x492   : > { %6537 = vmatmul.mubr.msk.f32.gmra.mrb[156].mxu1 %vm3613_vm3, %v7300_v60 }
 0x494   : > { %v7302_v61 = vpop.eup %7301 }
 0x495   : > { %v7304_v62 = vpop.eup %7303  ;;  %6539 = vmatprep.mubr.msk.f32.mxu1 %vm3613_vm3, %v7302_v61 }
 0x496   : > { %6540 = vmatmul.mubr.msk.f32.gmra.mrb[158].mxu1 %vm3613_vm3, %v7304_v62 }
 0x498   : > { %v7306_v52 = vpop.eup %7305 }
 0x499   : > { %v7308_v63 = vpop.eup %7307  ;;  %6542 = vmatprep.mubr.msk.f32.mxu1 %vm3613_vm3, %v7306_v52 }
 0x49a   : > { %6543 = vmatmul.mubr.msk.f32.gmra.mrb[160].mxu1 %vm3613_vm3, %v7308_v63 }
 0x4f1   : > { %v6451_v1 = vpop.f32.mrb[98].mxu1 }
 0x4f2   : > { %v3878_v2 = vadd.f32 %v6451_v1, %v8506_v0  ;;  %v3872_v3 = vpop.f32.mrb[99].mxu1 }
 0x4f3   : > { %v3873_v4 = vadd.f32 %v8506_v0, %v3872_v3 }
 0x4f5   : > { %7309 = vtanh.f32 %v3873_v4  ;;  %v6454_v5 = vpop.f32.mrb[100].mxu1 }
 0x4f6   : > { %7311 = vtanh.f32 %v3878_v2  ;;  %v3888_v6 = vadd.f32 %v6454_v5, %v8506_v0  ;;  %v3882_v7 = vpop.f32.mrb[101].mxu1 }
 0x4f7   : > { %v3883_v8 = vadd.f32 %v8506_v0, %v3882_v7 }
 0x4f9   : > { %7313 = vtanh.f32 %v3883_v8  ;;  %v6457_v9 = vpop.f32.mrb[102].mxu1 }
 0x4fa   : > { %7315 = vtanh.f32 %v3888_v6  ;;  %v3898_v10 = vadd.f32 %v6457_v9, %v8506_v0  ;;  %v3892_v11 = vpop.f32.mrb[103].mxu1 }
 0x4fb   : > { %v3893_v12 = vadd.f32 %v8506_v0, %v3892_v11 }
 0x4fd   : > { %7317 = vtanh.f32 %v3893_v12  ;;  %v6460_v31 = vpop.f32.mrb[104].mxu1 }
 0x4fe   : > { %7319 = vtanh.f32 %v3898_v10  ;;  %v3908_v14 = vadd.f32 %v6460_v31, %v8506_v0  ;;  %v3902_v15 = vpop.f32.mrb[105].mxu1 }
 0x4ff   : > { %v7310_v16 = vpop.eup %7309  ;;  %v3903_v17 = vadd.f32 %v8506_v0, %v3902_v15 }
 0x500   : > { %v7312_v18 = vpop.eup %7311  ;;  %6561 = vmatprep.mubr.msk.f32.mxu1 %vm3613_vm3, %v7310_v16 }
 0x501   : > { %7321 = vtanh.f32 %v3903_v17  ;;  %v6463_v19 = vpop.f32.mrb[106].mxu1  ;;  %6562 = vmatmul.mubr.msk.f32.vlgmr.msra.gmra.mrb[162].mxu1 %vm3613_vm3, %v7312_v18 }
 0x502   : > { %7323 = vtanh.f32 %v3908_v14  ;;  %v3918_v20 = vadd.f32 %v6463_v19, %v8506_v0  ;;  %v3912_v13 = vpop.f32.mrb[107].mxu1 }
 0x503   : > { %v7314_v21 = vpop.eup %7313  ;;  %v3913_v23 = vadd.f32 %v8506_v0, %v3912_v13 }
 0x504   : > { %v7316_v24 = vpop.eup %7315  ;;  %6564 = vmatprep.mubr.msk.f32.mxu1 %vm3613_vm3, %v7314_v21 }
 0x505   : > { %7325 = vtanh.f32 %v3913_v23  ;;  %v6466_v25 = vpop.f32.mrb[108].mxu1  ;;  %6565 = vmatmul.mubr.msk.f32.gmra.mrb[164].mxu1 %vm3613_vm3, %v7316_v24 }
 0x506   : > { %7327 = vtanh.f32 %v3918_v20  ;;  %v3928_v26 = vadd.f32 %v6466_v25, %v8506_v0  ;;  %v3922_v27 = vpop.f32.mrb[109].mxu1 }
 0x507   : > { %v7318_v22 = vpop.eup %7317  ;;  %v3923_v28 = vadd.f32 %v8506_v0, %v3922_v27 }
 0x508   : > { %v7320_v30 = vpop.eup %7319  ;;  %6567 = vmatprep.mubr.msk.f32.mxu1 %vm3613_vm3, %v7318_v22 }
 0x509   : > { %7329 = vtanh.f32 %v3923_v28  ;;  %v6469_v32 = vpop.f32.mrb[110].mxu1  ;;  %6568 = vmatmul.mubr.msk.f32.gmra.mrb[166].mxu1 %vm3613_vm3, %v7320_v30 }
 0x50a   : > { %7331 = vtanh.f32 %v3928_v26  ;;  %v3938_v33 = vadd.f32 %v6469_v32, %v8506_v0  ;;  %v3932_v34 = vpop.f32.mrb[111].mxu1 }
 0x50b   : > { %v7322_v35 = vpop.eup %7321  ;;  %v3933_v36 = vadd.f32 %v8506_v0, %v3932_v34 }
 0x50c   : > { %v7324_v37 = vpop.eup %7323  ;;  %6570 = vmatprep.mubr.msk.f32.mxu1 %vm3613_vm3, %v7322_v35 }
 0x50d   : > { %7333 = vtanh.f32 %v3933_v36  ;;  %v6472_v38 = vpop.f32.mrb[112].mxu1  ;;  %6571 = vmatmul.mubr.msk.f32.gmra.mrb[168].mxu1 %vm3613_vm3, %v7324_v37 }
 0x50e   : > { %7335 = vtanh.f32 %v3938_v33  ;;  %v3948_v29 = vadd.f32 %v6472_v38, %v8506_v0  ;;  %v3942_v39 = vpop.f32.mrb[113].mxu1 }
 0x50f   : > { %v7326_v40 = vpop.eup %7325  ;;  %v3943_v41 = vadd.f32 %v8506_v0, %v3942_v39 }
 0x510   : > { %v7328_v42 = vpop.eup %7327  ;;  %6573 = vmatprep.mubr.msk.f32.mxu1 %vm3613_vm3, %v7326_v40 }
 0x511   : > { %7337 = vtanh.f32 %v3943_v41  ;;  %v6475_v43 = vpop.f32.mrb[114].mxu1  ;;  %6574 = vmatmul.mubr.msk.f32.gmra.mrb[170].mxu1 %vm3613_vm3, %v7328_v42 }
 0x512   : > { %7339 = vtanh.f32 %v3948_v29  ;;  %v3958_v44 = vadd.f32 %v6475_v43, %v8506_v0  ;;  %v3952_v45 = vpop.f32.mrb[115].mxu1 }
 0x513   : > { %v7330_v46 = vpop.eup %7329  ;;  %v3953_v47 = vadd.f32 %v8506_v0, %v3952_v45 }
 0x514   : > { %v7332_v48 = vpop.eup %7331  ;;  %6576 = vmatprep.mubr.msk.f32.mxu1 %vm3613_vm3, %v7330_v46 }
 0x515   : > { %7341 = vtanh.f32 %v3953_v47  ;;  %v6478_v49 = vpop.f32.mrb[116].mxu1  ;;  %6577 = vmatmul.mubr.msk.f32.gmra.mrb[172].mxu1 %vm3613_vm3, %v7332_v48 }
 0x516   : > { %7343 = vtanh.f32 %v3958_v44  ;;  %v3968_v50 = vadd.f32 %v6478_v49, %v8506_v0  ;;  %v3962_v51 = vpop.f32.mrb[117].mxu1 }
 0x517   : > { %v7334_v53 = vpop.eup %7333  ;;  %v3963_v54 = vadd.f32 %v8506_v0, %v3962_v51 }
 0x518   : > { %v7336_v55 = vpop.eup %7335  ;;  %6579 = vmatprep.mubr.msk.f32.mxu1 %vm3613_vm3, %v7334_v53 }
 0x519   : > { %7345 = vtanh.f32 %v3963_v54  ;;  %v6481_v56 = vpop.f32.mrb[118].mxu1  ;;  %6580 = vmatmul.mubr.msk.f32.gmra.mrb[174].mxu1 %vm3613_vm3, %v7336_v55 }
 0x51a   : > { %7347 = vtanh.f32 %v3968_v50  ;;  %v3978_v57 = vadd.f32 %v6481_v56, %v8506_v0  ;;  %v3972_v58 = vpop.f32.mrb[119].mxu1 }
 0x51b   : > { %v7338_v59 = vpop.eup %7337  ;;  %v3973_v60 = vadd.f32 %v8506_v0, %v3972_v58 }
 0x51c   : > { %v7340_v61 = vpop.eup %7339  ;;  %6582 = vmatprep.mubr.msk.f32.mxu1 %vm3613_vm3, %v7338_v59 }
 0x51d   : > { %7349 = vtanh.f32 %v3973_v60  ;;  %v6484_v62 = vpop.f32.mrb[120].mxu1  ;;  %6583 = vmatmul.mubr.msk.f32.gmra.mrb[176].mxu1 %vm3613_vm3, %v7340_v61 }
 0x51e   : > { %7351 = vtanh.f32 %v3978_v57  ;;  %v3988_v52 = vadd.f32 %v6484_v62, %v8506_v0  ;;  %v3982_v63 = vpop.f32.mrb[121].mxu1 }
 0x51f   : > { %v7342_v1 = vpop.eup %7341  ;;  %v3983_v2 = vadd.f32 %v8506_v0, %v3982_v63 }
 0x520   : > { %v7344_v3 = vpop.eup %7343  ;;  %6585 = vmatprep.mubr.msk.f32.mxu1 %vm3613_vm3, %v7342_v1 }
 0x521   : > { %7353 = vtanh.f32 %v3983_v2  ;;  %v6487_v4 = vpop.f32.mrb[122].mxu1  ;;  %6586 = vmatmul.mubr.msk.f32.gmra.mrb[178].mxu1 %vm3613_vm3, %v7344_v3 }
 0x522   : > { %7355 = vtanh.f32 %v3988_v52  ;;  %v3998_v5 = vadd.f32 %v6487_v4, %v8506_v0  ;;  %v3992_v6 = vpop.f32.mrb[123].mxu1 }
 0x523   : > { %v7346_v7 = vpop.eup %7345  ;;  %v3993_v8 = vadd.f32 %v8506_v0, %v3992_v6 }
 0x524   : > { %v7348_v9 = vpop.eup %7347  ;;  %6588 = vmatprep.mubr.msk.f32.mxu1 %vm3613_vm3, %v7346_v7 }
 0x525   : > { %7357 = vtanh.f32 %v3993_v8  ;;  %v6490_v10 = vpop.f32.mrb[124].mxu1  ;;  %6589 = vmatmul.mubr.msk.f32.gmra.mrb[180].mxu1 %vm3613_vm3, %v7348_v9 }
 0x526   : > { %7359 = vtanh.f32 %v3998_v5  ;;  %v4008_v11 = vadd.f32 %v6490_v10, %v8506_v0  ;;  %v4002_v12 = vpop.f32.mrb[125].mxu1 }
 0x527   : > { %v7350_v31 = vpop.eup %7349  ;;  %v4003_v14 = vadd.f32 %v8506_v0, %v4002_v12 }
 0x528   : > { %v7352_v15 = vpop.eup %7351  ;;  %6591 = vmatprep.mubr.msk.f32.mxu1 %vm3613_vm3, %v7350_v31 }
 0x529   : > { %7361 = vtanh.f32 %v4003_v14  ;;  %v6493_v16 = vpop.f32.mrb[126].mxu1  ;;  %6592 = vmatmul.mubr.msk.f32.gmra.mrb[182].mxu1 %vm3613_vm3, %v7352_v15 }
 0x52a   : > { %7363 = vtanh.f32 %v4008_v11  ;;  %v4018_v17 = vadd.f32 %v6493_v16, %v8506_v0  ;;  %v4012_v18 = vpop.f32.mrb[127].mxu1 }
 0x52b   : > { %v7354_v19 = vpop.eup %7353  ;;  %v4013_v20 = vadd.f32 %v8506_v0, %v4012_v18 }
 0x52c   : > { %v7356_v13 = vpop.eup %7355  ;;  %6594 = vmatprep.mubr.msk.f32.mxu1 %vm3613_vm3, %v7354_v19 }
 0x52d   : > { %7365 = vtanh.f32 %v4013_v20  ;;  %v6496_v21 = vpop.f32.mrb[128].mxu1  ;;  %6595 = vmatmul.mubr.msk.f32.gmra.mrb[184].mxu1 %vm3613_vm3, %v7356_v13 }
 0x52e   : > { %7367 = vtanh.f32 %v4018_v17  ;;  %v4028_v23 = vadd.f32 %v6496_v21, %v8506_v0  ;;  %v4022_v24 = vpop.f32.mrb[129].mxu1 }
 0x52f   : > { %v7358_v25 = vpop.eup %7357  ;;  %v4023_v26 = vadd.f32 %v8506_v0, %v4022_v24 }
 0x530   : > { %v7360_v27 = vpop.eup %7359  ;;  %6597 = vmatprep.mubr.msk.f32.mxu1 %vm3613_vm3, %v7358_v25 }
 0x531   : > { %7369 = vtanh.f32 %v4023_v26  ;;  %v6499_v22 = vpop.f32.mrb[130].mxu1  ;;  %6598 = vmatmul.mubr.msk.f32.gmra.mrb[186].mxu1 %vm3613_vm3, %v7360_v27 }
 0x532   : > { %7371 = vtanh.f32 %v4028_v23  ;;  %v4038_v28 = vadd.f32 %v6499_v22, %v8506_v0  ;;  %v4032_v30 = vpop.f32.mrb[131].mxu1 }
 0x533   : > { %v7362_v32 = vpop.eup %7361  ;;  %v4033_v33 = vadd.f32 %v8506_v0, %v4032_v30 }
 0x534   : > { %v7364_v34 = vpop.eup %7363  ;;  %6600 = vmatprep.mubr.msk.f32.mxu1 %vm3613_vm3, %v7362_v32 }
 0x535   : > { %7373 = vtanh.f32 %v4033_v33  ;;  %v6502_v35 = vpop.f32.mrb[132].mxu1  ;;  %6601 = vmatmul.mubr.msk.f32.gmra.mrb[188].mxu1 %vm3613_vm3, %v7364_v34 }
 0x536   : > { %7375 = vtanh.f32 %v4038_v28  ;;  %v4048_v36 = vadd.f32 %v6502_v35, %v8506_v0  ;;  %v4042_v37 = vpop.f32.mrb[133].mxu1 }
 0x537   : > { %v7366_v38 = vpop.eup %7365  ;;  %v4043_v29 = vadd.f32 %v8506_v0, %v4042_v37 }
 0x538   : > { %v7368_v39 = vpop.eup %7367  ;;  %6603 = vmatprep.mubr.msk.f32.mxu1 %vm3613_vm3, %v7366_v38 }
 0x539   : > { %7377 = vtanh.f32 %v4043_v29  ;;  %v6505_v40 = vpop.f32.mrb[134].mxu1  ;;  %6604 = vmatmul.mubr.msk.f32.gmra.mrb[190].mxu1 %vm3613_vm3, %v7368_v39 }
 0x53a   : > { %7379 = vtanh.f32 %v4048_v36  ;;  %v4058_v41 = vadd.f32 %v6505_v40, %v8506_v0  ;;  %v4052_v42 = vpop.f32.mrb[135].mxu1 }
 0x53b   : > { %v7370_v43 = vpop.eup %7369  ;;  %v4053_v44 = vadd.f32 %v8506_v0, %v4052_v42 }
 0x53c   : > { %v7372_v45 = vpop.eup %7371  ;;  %6606 = vmatprep.mubr.msk.f32.mxu1 %vm3613_vm3, %v7370_v43 }
 0x53d   : > { %7381 = vtanh.f32 %v4053_v44  ;;  %v6508_v46 = vpop.f32.mrb[136].mxu1  ;;  %6607 = vmatmul.mubr.msk.f32.gmra.mrb[192].mxu1 %vm3613_vm3, %v7372_v45 }
 0x53e   : > { %7383 = vtanh.f32 %v4058_v41  ;;  %v4068_v47 = vadd.f32 %v6508_v46, %v8506_v0  ;;  %v4062_v48 = vpop.f32.mrb[137].mxu1 }
 0x53f   : > { %v7374_v49 = vpop.eup %7373  ;;  %v4063_v50 = vadd.f32 %v8506_v0, %v4062_v48 }
 0x540   : > { %v7376_v51 = vpop.eup %7375  ;;  %6609 = vmatprep.mubr.msk.f32.mxu1 %vm3613_vm3, %v7374_v49 }
 0x541   : > { %7385 = vtanh.f32 %v4063_v50  ;;  %v6511_v53 = vpop.f32.mrb[138].mxu1  ;;  %6610 = vmatmul.mubr.msk.f32.gmra.mrb[194].mxu1 %vm3613_vm3, %v7376_v51 }
 0x542   : > { %7387 = vtanh.f32 %v4068_v47  ;;  %v4078_v54 = vadd.f32 %v6511_v53, %v8506_v0  ;;  %v4072_v55 = vpop.f32.mrb[139].mxu1 }
 0x543   : > { %v7378_v56 = vpop.eup %7377  ;;  %v4073_v57 = vadd.f32 %v8506_v0, %v4072_v55 }
 0x544   : > { %v7380_v58 = vpop.eup %7379  ;;  %6612 = vmatprep.mubr.msk.f32.mxu1 %vm3613_vm3, %v7378_v56 }
 0x545   : > { %7389 = vtanh.f32 %v4073_v57  ;;  %v6514_v59 = vpop.f32.mrb[140].mxu1  ;;  %6613 = vmatmul.mubr.msk.f32.gmra.mrb[196].mxu1 %vm3613_vm3, %v7380_v58 }
 0x546   : > { %7391 = vtanh.f32 %v4078_v54  ;;  %v4088_v60 = vadd.f32 %v6514_v59, %v8506_v0  ;;  %v4082_v61 = vpop.f32.mrb[141].mxu1 }
 0x547   : > { %v7382_v62 = vpop.eup %7381  ;;  %v4083_v52 = vadd.f32 %v8506_v0, %v4082_v61 }
 0x548   : > { %v7384_v63 = vpop.eup %7383  ;;  %6615 = vmatprep.mubr.msk.f32.mxu1 %vm3613_vm3, %v7382_v62 }
 0x549   : > { %7393 = vtanh.f32 %v4083_v52  ;;  %v6517_v1 = vpop.f32.mrb[142].mxu1  ;;  %6616 = vmatmul.mubr.msk.f32.gmra.mrb[198].mxu1 %vm3613_vm3, %v7384_v63 }
 0x54a   : > { %7395 = vtanh.f32 %v4088_v60  ;;  %v4098_v2 = vadd.f32 %v6517_v1, %v8506_v0  ;;  %v4092_v3 = vpop.f32.mrb[143].mxu1 }
 0x54b   : > { %v7386_v4 = vpop.eup %7385  ;;  %v4093_v5 = vadd.f32 %v8506_v0, %v4092_v3  ;;  %v8639_v3 = vld [vmem:[%s8856_s13] ss:$0 sm:$0xff] }
 0x54c   : > { %v7388_v6 = vpop.eup %7387  ;;  %6618 = vmatprep.mubr.msk.f32.mxu1 %vm3613_vm3, %v7386_v4 }
 0x54d   : > { %7397 = vtanh.f32 %v4093_v5  ;;  %v6520_v7 = vpop.f32.mrb[144].mxu1  ;;  %6619 = vmatmul.mubr.msk.f32.gmra.mrb[200].mxu1 %vm3613_vm3, %v7388_v6 }
 0x54e   : > { %7399 = vtanh.f32 %v4098_v2  ;;  %v4108_v8 = vadd.f32 %v6520_v7, %v8506_v0  ;;  %v4102_v9 = vpop.f32.mrb[145].mxu1 }
 0x54f   : > { %v7390_v10 = vpop.eup %7389  ;;  %v4103_v11 = vadd.f32 %v8506_v0, %v4102_v9 }
 0x550   : > { %v7392_v12 = vpop.eup %7391  ;;  %6621 = vmatprep.mubr.msk.f32.mxu1 %vm3613_vm3, %v7390_v10 }
 0x551   : > { %7401 = vtanh.f32 %v4103_v11  ;;  %v6523_v31 = vpop.f32.mrb[146].mxu1  ;;  %6622 = vmatmul.mubr.msk.f32.gmra.mrb[202].mxu1 %vm3613_vm3, %v7392_v12 }
 0x552   : > { %7403 = vtanh.f32 %v4108_v8  ;;  %v4118_v14 = vadd.f32 %v6523_v31, %v8506_v0  ;;  %v4112_v15 = vpop.f32.mrb[147].mxu1 }
 0x553   : > { %v7394_v16 = vpop.eup %7393  ;;  %v4113_v17 = vadd.f32 %v8506_v0, %v4112_v15 }
 0x554   : > { %v7396_v18 = vpop.eup %7395  ;;  %6624 = vmatprep.mubr.msk.f32.mxu1 %vm3613_vm3, %v7394_v16 }
 0x555   : > { %7405 = vtanh.f32 %v4113_v17  ;;  %v6526_v19 = vpop.f32.mrb[148].mxu1  ;;  %6625 = vmatmul.mubr.msk.f32.gmra.mrb[204].mxu1 %vm3613_vm3, %v7396_v18 }
 0x556   : > { %7407 = vtanh.f32 %v4118_v14  ;;  %v4128_v20 = vadd.f32 %v6526_v19, %v8506_v0  ;;  %v4122_v13 = vpop.f32.mrb[149].mxu1 }
 0x557   : > { %v7398_v21 = vpop.eup %7397  ;;  %v4123_v23 = vadd.f32 %v8506_v0, %v4122_v13 }
 0x558   : > { %v7400_v24 = vpop.eup %7399  ;;  %6627 = vmatprep.mubr.msk.f32.mxu1 %vm3613_vm3, %v7398_v21 }
 0x559   : > { %7409 = vtanh.f32 %v4123_v23  ;;  %v6529_v25 = vpop.f32.mrb[150].mxu1  ;;  %6628 = vmatmul.mubr.msk.f32.gmra.mrb[206].mxu1 %vm3613_vm3, %v7400_v24 }
 0x55a   : > { %7411 = vtanh.f32 %v4128_v20  ;;  %v4138_v26 = vadd.f32 %v6529_v25, %v8506_v0  ;;  %v4132_v27 = vpop.f32.mrb[151].mxu1 }
 0x55b   : > { %v7402_v22 = vpop.eup %7401  ;;  %v4133_v28 = vadd.f32 %v8506_v0, %v4132_v27 }
 0x55c   : > { %v7404_v30 = vpop.eup %7403  ;;  %6630 = vmatprep.mubr.msk.f32.mxu1 %vm3613_vm3, %v7402_v22 }
 0x55d   : > { %7413 = vtanh.f32 %v4133_v28  ;;  %v6532_v32 = vpop.f32.mrb[152].mxu1  ;;  %6631 = vmatmul.mubr.msk.f32.gmra.mrb[208].mxu1 %vm3613_vm3, %v7404_v30 }
 0x55e   : > { %7415 = vtanh.f32 %v4138_v26  ;;  %v4148_v33 = vadd.f32 %v6532_v32, %v8506_v0  ;;  %v4142_v34 = vpop.f32.mrb[153].mxu1 }
 0x55f   : > { %v7406_v35 = vpop.eup %7405  ;;  %v4143_v36 = vadd.f32 %v8506_v0, %v4142_v34 }
 0x560   : > { %v7408_v37 = vpop.eup %7407  ;;  %6633 = vmatprep.mubr.msk.f32.mxu1 %vm3613_vm3, %v7406_v35 }
 0x561   : > { %7417 = vtanh.f32 %v4143_v36  ;;  %v6535_v38 = vpop.f32.mrb[154].mxu1  ;;  %6634 = vmatmul.mubr.msk.f32.gmra.mrb[210].mxu1 %vm3613_vm3, %v7408_v37 }
 0x562   : > { %7419 = vtanh.f32 %v4148_v33  ;;  %v4158_v29 = vadd.f32 %v6535_v38, %v8506_v0  ;;  %v4152_v39 = vpop.f32.mrb[155].mxu1 }
 0x563   : > { %v7410_v40 = vpop.eup %7409  ;;  %v4153_v41 = vadd.f32 %v8506_v0, %v4152_v39 }
 0x564   : > { %v7412_v42 = vpop.eup %7411  ;;  %6636 = vmatprep.mubr.msk.f32.mxu1 %vm3613_vm3, %v7410_v40 }
 0x565   : > { %7421 = vtanh.f32 %v4153_v41  ;;  %v6538_v43 = vpop.f32.mrb[156].mxu1  ;;  %6637 = vmatmul.mubr.msk.f32.gmra.mrb[212].mxu1 %vm3613_vm3, %v7412_v42 }
 0x566   : > { %7423 = vtanh.f32 %v4158_v29  ;;  %v4168_v44 = vadd.f32 %v6538_v43, %v8506_v0  ;;  %v4162_v45 = vpop.f32.mrb[157].mxu1 }
 0x567   : > { %v7414_v46 = vpop.eup %7413  ;;  %v4163_v47 = vadd.f32 %v8506_v0, %v4162_v45 }
 0x568   : > { %v7416_v48 = vpop.eup %7415  ;;  %6639 = vmatprep.mubr.msk.f32.mxu1 %vm3613_vm3, %v7414_v46 }
 0x569   : > { %7425 = vtanh.f32 %v4163_v47  ;;  %v6541_v49 = vpop.f32.mrb[158].mxu1  ;;  %6640 = vmatmul.mubr.msk.f32.gmra.mrb[214].mxu1 %vm3613_vm3, %v7416_v48 }
 0x56a   : > { %7427 = vtanh.f32 %v4168_v44  ;;  %v4178_v50 = vadd.f32 %v6541_v49, %v8506_v0  ;;  %v4172_v51 = vpop.f32.mrb[159].mxu1 }
 0x56b   : > { %v7418_v53 = vpop.eup %7417  ;;  %v4173_v54 = vadd.f32 %v8506_v0, %v4172_v51 }
 0x56c   : > { %v7420_v55 = vpop.eup %7419  ;;  %6642 = vmatprep.mubr.msk.f32.mxu1 %vm3613_vm3, %v7418_v53 }
 0x56d   : > { %7429 = vtanh.f32 %v4173_v54  ;;  %v6544_v56 = vpop.f32.mrb[160].mxu1  ;;  %6643 = vmatmul.mubr.msk.f32.gmra.mrb[216].mxu1 %vm3613_vm3, %v7420_v55 }
 0x56e   : > { %7431 = vtanh.f32 %v4178_v50  ;;  %v4188_v57 = vadd.f32 %v6544_v56, %v8506_v0  ;;  %v4182_v58 = vpop.f32.mrb[161].mxu1 }
 0x56f   : > { %v7422_v59 = vpop.eup %7421  ;;  %v4183_v60 = vadd.f32 %v8506_v0, %v4182_v58 }
 0x570   : > { %v7424_v61 = vpop.eup %7423  ;;  %6645 = vmatprep.mubr.msk.f32.mxu1 %vm3613_vm3, %v7422_v59 }
 0x571   : > { %7433 = vtanh.f32 %v4183_v60  ;;  %6646 = vmatmul.mubr.msk.f32.gmra.mrb[218].mxu1 %vm3613_vm3, %v7424_v61 }
 0x572   : > { %7435 = vtanh.f32 %v4188_v57 }
 0x573   : > { %v7426_v62 = vpop.eup %7425 }
 0x574   : > { %v7428_v52 = vpop.eup %7427  ;;  %6648 = vmatprep.mubr.msk.f32.mxu1 %vm3613_vm3, %v7426_v62 }
 0x575   : > { %6649 = vmatmul.mubr.msk.f32.gmra.mrb[220].mxu1 %vm3613_vm3, %v7428_v52 }
 0x577   : > { %v7430_v63 = vpop.eup %7429 }
 0x578   : > { %v7432_v1 = vpop.eup %7431  ;;  %6651 = vmatprep.mubr.msk.f32.mxu1 %vm3613_vm3, %v7430_v63 }
 0x579   : > { %6652 = vmatmul.mubr.msk.f32.gmra.mrb[222].mxu1 %vm3613_vm3, %v7432_v1 }
 0x57b   : > { %v7434_v0 = vpop.eup %7433 }
 0x57c   : > { %v7436_v2 = vpop.eup %7435  ;;  %6654 = vmatprep.mubr.msk.f32.mxu1 %vm3613_vm3, %v7434_v0 }
 0x57d   : > { %6655 = vmatmul.mubr.msk.f32.gmra.mrb[224].mxu1 %vm3613_vm3, %v7436_v2 }
 0x5d4   : > { %v6563_v4 = vpop.f32.mrb[162].mxu1 }
 0x5d5   : > { %v4534_v5 = vadd.f32 %v6563_v4, %v8639_v3  ;;  %v4528_v6 = vpop.f32.mrb[163].mxu1 }
 0x5d6   : > { %v4529_v7 = vadd.f32 %v8639_v3, %v4528_v6 }
 0x5d7   : > { %4848 = vst.msk [vmem:[%s8646_s30 + $0x8] sm:$0xff] %vm2500_vm2, %v4534_v5 }
 0x5d8   : > { %4847 = vst.msk [vmem:[%s8646_s30] sm:$0xff] %vm2500_vm2, %v4529_v7  ;;  %v6566_v8 = vpop.f32.mrb[164].mxu1 }
 0x5d9   : > { %v4544_v9 = vadd.f32 %v6566_v8, %v8639_v3  ;;  %v4538_v10 = vpop.f32.mrb[165].mxu1 }
 0x5da   : > { %v4539_v11 = vadd.f32 %v8639_v3, %v4538_v10 }
 0x5db   : > { %4850 = vst.msk [vmem:[%s8646_s30 + $0x18] sm:$0xff] %vm2500_vm2, %v4544_v9 }
 0x5dc   : > { %4849 = vst.msk [vmem:[%s8646_s30 + $0x10] sm:$0xff] %vm2500_vm2, %v4539_v11  ;;  %v6569_v12 = vpop.f32.mrb[166].mxu1 }
 0x5dd   : > { %v4554_v31 = vadd.f32 %v6569_v12, %v8639_v3  ;;  %v4548_v14 = vpop.f32.mrb[167].mxu1 }
 0x5de   : > { %v4549_v15 = vadd.f32 %v8639_v3, %v4548_v14 }
 0x5df   : > { %4852 = vst.msk [vmem:[%s8646_s30 + $0x28] sm:$0xff] %vm2500_vm2, %v4554_v31 }
 0x5e0   : > { %4851 = vst.msk [vmem:[%s8646_s30 + $0x20] sm:$0xff] %vm2500_vm2, %v4549_v15  ;;  %v6572_v16 = vpop.f32.mrb[168].mxu1 }
 0x5e1   : > { %v4564_v17 = vadd.f32 %v6572_v16, %v8639_v3  ;;  %v4558_v18 = vpop.f32.mrb[169].mxu1 }
 0x5e2   : > { %v4559_v19 = vadd.f32 %v8639_v3, %v4558_v18 }
 0x5e3   : > { %4854 = vst.msk [vmem:[%s8646_s30 + $0x38] sm:$0xff] %vm2500_vm2, %v4564_v17 }
 0x5e4   : > { %4853 = vst.msk [vmem:[%s8646_s30 + $0x30] sm:$0xff] %vm2500_vm2, %v4559_v19  ;;  %v6575_v20 = vpop.f32.mrb[170].mxu1 }
 0x5e5   : > { %v4574_v13 = vadd.f32 %v6575_v20, %v8639_v3  ;;  %v4568_v21 = vpop.f32.mrb[171].mxu1 }
 0x5e6   : > { %v4569_v23 = vadd.f32 %v8639_v3, %v4568_v21 }
 0x5e7   : > { %4856 = vst.msk [vmem:[%s8646_s30 + $0x48] sm:$0xff] %vm2500_vm2, %v4574_v13 }
 0x5e8   : > { %4855 = vst.msk [vmem:[%s8646_s30 + $0x40] sm:$0xff] %vm2500_vm2, %v4569_v23  ;;  %v6578_v24 = vpop.f32.mrb[172].mxu1 }
 0x5e9   : > { %v4584_v25 = vadd.f32 %v6578_v24, %v8639_v3  ;;  %v4578_v26 = vpop.f32.mrb[173].mxu1 }
 0x5ea   : > { %v4579_v27 = vadd.f32 %v8639_v3, %v4578_v26 }
 0x5eb   : > { %4858 = vst.msk [vmem:[%s8646_s30 + $0x58] sm:$0xff] %vm2500_vm2, %v4584_v25 }
 0x5ec   : > { %4857 = vst.msk [vmem:[%s8646_s30 + $0x50] sm:$0xff] %vm2500_vm2, %v4579_v27  ;;  %v6581_v22 = vpop.f32.mrb[174].mxu1 }
 0x5ed   : > { %v4594_v28 = vadd.f32 %v6581_v22, %v8639_v3  ;;  %v4588_v30 = vpop.f32.mrb[175].mxu1 }
 0x5ee   : > { %v4589_v32 = vadd.f32 %v8639_v3, %v4588_v30 }
 0x5ef   : > { %4860 = vst.msk [vmem:[%s8646_s30 + $0x68] sm:$0xff] %vm2500_vm2, %v4594_v28 }
 0x5f0   : > { %4859 = vst.msk [vmem:[%s8646_s30 + $0x60] sm:$0xff] %vm2500_vm2, %v4589_v32  ;;  %v6584_v33 = vpop.f32.mrb[176].mxu1 }
 0x5f1   : > { %v4604_v34 = vadd.f32 %v6584_v33, %v8639_v3  ;;  %v4598_v35 = vpop.f32.mrb[177].mxu1 }
 0x5f2   : > { %v4599_v36 = vadd.f32 %v8639_v3, %v4598_v35 }
 0x5f3   : > { %4862 = vst.msk [vmem:[%s8646_s30 + $0x78] sm:$0xff] %vm2500_vm2, %v4604_v34 }
 0x5f4   : > { %4861 = vst.msk [vmem:[%s8646_s30 + $0x70] sm:$0xff] %vm2500_vm2, %v4599_v36  ;;  %v6587_v37 = vpop.f32.mrb[178].mxu1 }
 0x5f5   : > { %v4614_v38 = vadd.f32 %v6587_v37, %v8639_v3  ;;  %v4608_v29 = vpop.f32.mrb[179].mxu1 }
 0x5f6   : > { %v4609_v39 = vadd.f32 %v8639_v3, %v4608_v29 }
 0x5f7   : > { %4864 = vst.msk [vmem:[%s8646_s30 + $0x88] sm:$0xff] %vm2500_vm2, %v4614_v38 }
 0x5f8   : > { %4863 = vst.msk [vmem:[%s8646_s30 + $0x80] sm:$0xff] %vm2500_vm2, %v4609_v39  ;;  %v6590_v40 = vpop.f32.mrb[180].mxu1 }
 0x5f9   : > { %v4624_v41 = vadd.f32 %v6590_v40, %v8639_v3  ;;  %v4618_v42 = vpop.f32.mrb[181].mxu1 }
 0x5fa   : > { %v4619_v43 = vadd.f32 %v8639_v3, %v4618_v42 }
 0x5fb   : > { %4866 = vst.msk [vmem:[%s8646_s30 + $0x98] sm:$0xff] %vm2500_vm2, %v4624_v41 }
 0x5fc   : > { %4865 = vst.msk [vmem:[%s8646_s30 + $0x90] sm:$0xff] %vm2500_vm2, %v4619_v43  ;;  %v6593_v44 = vpop.f32.mrb[182].mxu1 }
 0x5fd   : > { %v4634_v45 = vadd.f32 %v6593_v44, %v8639_v3  ;;  %v4628_v46 = vpop.f32.mrb[183].mxu1 }
 0x5fe   : > { %v4629_v47 = vadd.f32 %v8639_v3, %v4628_v46 }
 0x5ff   : > { %4868 = vst.msk [vmem:[%s8646_s30 + $0xa8] sm:$0xff] %vm2500_vm2, %v4634_v45 }
 0x600   : > { %4867 = vst.msk [vmem:[%s8646_s30 + $0xa0] sm:$0xff] %vm2500_vm2, %v4629_v47  ;;  %v6596_v48 = vpop.f32.mrb[184].mxu1 }
 0x601   : > { %v4644_v49 = vadd.f32 %v6596_v48, %v8639_v3  ;;  %v4638_v50 = vpop.f32.mrb[185].mxu1 }
 0x602   : > { %v4639_v51 = vadd.f32 %v8639_v3, %v4638_v50 }
 0x603   : > { %4870 = vst.msk [vmem:[%s8646_s30 + $0xb8] sm:$0xff] %vm2500_vm2, %v4644_v49 }
 0x604   : > { %4869 = vst.msk [vmem:[%s8646_s30 + $0xb0] sm:$0xff] %vm2500_vm2, %v4639_v51  ;;  %v6599_v53 = vpop.f32.mrb[186].mxu1 }
 0x605   : > { %v4654_v54 = vadd.f32 %v6599_v53, %v8639_v3  ;;  %v4648_v55 = vpop.f32.mrb[187].mxu1 }
 0x606   : > { %v4649_v56 = vadd.f32 %v8639_v3, %v4648_v55 }
 0x607   : > { %4872 = vst.msk [vmem:[%s8646_s30 + $0xc8] sm:$0xff] %vm2500_vm2, %v4654_v54 }
 0x608   : > { %4871 = vst.msk [vmem:[%s8646_s30 + $0xc0] sm:$0xff] %vm2500_vm2, %v4649_v56  ;;  %v6602_v57 = vpop.f32.mrb[188].mxu1 }
 0x609   : > { %v4664_v58 = vadd.f32 %v6602_v57, %v8639_v3  ;;  %v4658_v59 = vpop.f32.mrb[189].mxu1 }
 0x60a   : > { %v4659_v60 = vadd.f32 %v8639_v3, %v4658_v59 }
 0x60b   : > { %4874 = vst.msk [vmem:[%s8646_s30 + $0xd8] sm:$0xff] %vm2500_vm2, %v4664_v58 }
 0x60c   : > { %4873 = vst.msk [vmem:[%s8646_s30 + $0xd0] sm:$0xff] %vm2500_vm2, %v4659_v60  ;;  %v6605_v61 = vpop.f32.mrb[190].mxu1 }
 0x60d   : > { %v4674_v62 = vadd.f32 %v6605_v61, %v8639_v3  ;;  %v4668_v52 = vpop.f32.mrb[191].mxu1 }
 0x60e   : > { %v4669_v63 = vadd.f32 %v8639_v3, %v4668_v52 }
 0x60f   : > { %4876 = vst.msk [vmem:[%s8646_s30 + $0xe8] sm:$0xff] %vm2500_vm2, %v4674_v62 }
 0x610   : > { %4875 = vst.msk [vmem:[%s8646_s30 + $0xe0] sm:$0xff] %vm2500_vm2, %v4669_v63  ;;  %v6608_v1 = vpop.f32.mrb[192].mxu1 }
 0x611   : > { %v4684_v0 = vadd.f32 %v6608_v1, %v8639_v3  ;;  %v4678_v2 = vpop.f32.mrb[193].mxu1 }
 0x612   : > { %v4679_v4 = vadd.f32 %v8639_v3, %v4678_v2 }
 0x613   : > { %4878 = vst.msk [vmem:[%s8646_s30 + $0xf8] sm:$0xff] %vm2500_vm2, %v4684_v0 }
 0x614   : > { %4877 = vst.msk [vmem:[%s8646_s30 + $0xf0] sm:$0xff] %vm2500_vm2, %v4679_v4  ;;  %v6611_v5 = vpop.f32.mrb[194].mxu1 }
 0x615   : > { %v4694_v6 = vadd.f32 %v6611_v5, %v8639_v3  ;;  %v4688_v7 = vpop.f32.mrb[195].mxu1 }
 0x616   : > { %v4689_v8 = vadd.f32 %v8639_v3, %v4688_v7 }
 0x617   : > { %4880 = vst.msk [vmem:[%s8646_s30 + $0x108] sm:$0xff] %vm2500_vm2, %v4694_v6 }
 0x618   : > { %4879 = vst.msk [vmem:[%s8646_s30 + $0x100] sm:$0xff] %vm2500_vm2, %v4689_v8  ;;  %v6614_v9 = vpop.f32.mrb[196].mxu1 }
 0x619   : > { %v4704_v10 = vadd.f32 %v6614_v9, %v8639_v3  ;;  %v4698_v11 = vpop.f32.mrb[197].mxu1 }
 0x61a   : > { %v4699_v12 = vadd.f32 %v8639_v3, %v4698_v11 }
 0x61b   : > { %4882 = vst.msk [vmem:[%s8646_s30 + $0x118] sm:$0xff] %vm2500_vm2, %v4704_v10 }
 0x61c   : > { %4881 = vst.msk [vmem:[%s8646_s30 + $0x110] sm:$0xff] %vm2500_vm2, %v4699_v12  ;;  %v6617_v31 = vpop.f32.mrb[198].mxu1 }
 0x61d   : > { %v4714_v14 = vadd.f32 %v6617_v31, %v8639_v3  ;;  %v4708_v15 = vpop.f32.mrb[199].mxu1 }
 0x61e   : > { %v4709_v16 = vadd.f32 %v8639_v3, %v4708_v15 }
 0x61f   : > { %4884 = vst.msk [vmem:[%s8646_s30 + $0x128] sm:$0xff] %vm2500_vm2, %v4714_v14 }
 0x620   : > { %4883 = vst.msk [vmem:[%s8646_s30 + $0x120] sm:$0xff] %vm2500_vm2, %v4709_v16  ;;  %v6620_v17 = vpop.f32.mrb[200].mxu1 }
 0x621   : > { %v4724_v18 = vadd.f32 %v6620_v17, %v8639_v3  ;;  %v4718_v19 = vpop.f32.mrb[201].mxu1 }
 0x622   : > { %v4719_v20 = vadd.f32 %v8639_v3, %v4718_v19 }
 0x623   : > { %4886 = vst.msk [vmem:[%s8646_s30 + $0x138] sm:$0xff] %vm2500_vm2, %v4724_v18 }
 0x624   : > { %4885 = vst.msk [vmem:[%s8646_s30 + $0x130] sm:$0xff] %vm2500_vm2, %v4719_v20  ;;  %v6623_v13 = vpop.f32.mrb[202].mxu1 }
 0x625   : > { %v4734_v21 = vadd.f32 %v6623_v13, %v8639_v3  ;;  %v4728_v23 = vpop.f32.mrb[203].mxu1 }
 0x626   : > { %v4729_v24 = vadd.f32 %v8639_v3, %v4728_v23 }
 0x627   : > { %4888 = vst.msk [vmem:[%s8646_s30 + $0x148] sm:$0xff] %vm2500_vm2, %v4734_v21 }
 0x628   : > { %4887 = vst.msk [vmem:[%s8646_s30 + $0x140] sm:$0xff] %vm2500_vm2, %v4729_v24  ;;  %v6626_v25 = vpop.f32.mrb[204].mxu1 }
 0x629   : > { %v4744_v26 = vadd.f32 %v6626_v25, %v8639_v3  ;;  %v4738_v27 = vpop.f32.mrb[205].mxu1 }
 0x62a   : > { %v4739_v22 = vadd.f32 %v8639_v3, %v4738_v27 }
 0x62b   : > { %4890 = vst.msk [vmem:[%s8646_s30 + $0x158] sm:$0xff] %vm2500_vm2, %v4744_v26 }
 0x62c   : > { %4889 = vst.msk [vmem:[%s8646_s30 + $0x150] sm:$0xff] %vm2500_vm2, %v4739_v22  ;;  %v6629_v28 = vpop.f32.mrb[206].mxu1 }
 0x62d   : > { %v4754_v30 = vadd.f32 %v6629_v28, %v8639_v3  ;;  %v4748_v32 = vpop.f32.mrb[207].mxu1 }
 0x62e   : > { %v4749_v33 = vadd.f32 %v8639_v3, %v4748_v32 }
 0x62f   : > { %4892 = vst.msk [vmem:[%s8646_s30 + $0x168] sm:$0xff] %vm2500_vm2, %v4754_v30 }
 0x630   : > { %4891 = vst.msk [vmem:[%s8646_s30 + $0x160] sm:$0xff] %vm2500_vm2, %v4749_v33  ;;  %v6632_v34 = vpop.f32.mrb[208].mxu1 }
 0x631   : > { %v4764_v35 = vadd.f32 %v6632_v34, %v8639_v3  ;;  %v4758_v36 = vpop.f32.mrb[209].mxu1 }
 0x632   : > { %v4759_v37 = vadd.f32 %v8639_v3, %v4758_v36 }
 0x633   : > { %4894 = vst.msk [vmem:[%s8646_s30 + $0x178] sm:$0xff] %vm2500_vm2, %v4764_v35 }
 0x634   : > { %4893 = vst.msk [vmem:[%s8646_s30 + $0x170] sm:$0xff] %vm2500_vm2, %v4759_v37  ;;  %v6635_v38 = vpop.f32.mrb[210].mxu1 }
 0x635   : > { %v4774_v29 = vadd.f32 %v6635_v38, %v8639_v3  ;;  %v4768_v39 = vpop.f32.mrb[211].mxu1 }
 0x636   : > { %v4769_v40 = vadd.f32 %v8639_v3, %v4768_v39 }
 0x637   : > { %4896 = vst.msk [vmem:[%s8646_s30 + $0x188] sm:$0xff] %vm2500_vm2, %v4774_v29 }
 0x638   : > { %4895 = vst.msk [vmem:[%s8646_s30 + $0x180] sm:$0xff] %vm2500_vm2, %v4769_v40  ;;  %v6638_v41 = vpop.f32.mrb[212].mxu1 }
 0x639   : > { %v4784_v42 = vadd.f32 %v6638_v41, %v8639_v3  ;;  %v4778_v43 = vpop.f32.mrb[213].mxu1 }
 0x63a   : > { %v4779_v44 = vadd.f32 %v8639_v3, %v4778_v43 }
 0x63b   : > { %4898 = vst.msk [vmem:[%s8646_s30 + $0x198] sm:$0xff] %vm2500_vm2, %v4784_v42 }
 0x63c   : > { %4897 = vst.msk [vmem:[%s8646_s30 + $0x190] sm:$0xff] %vm2500_vm2, %v4779_v44  ;;  %v6641_v45 = vpop.f32.mrb[214].mxu1 }
 0x63d   : > { %v4794_v46 = vadd.f32 %v6641_v45, %v8639_v3  ;;  %v4788_v47 = vpop.f32.mrb[215].mxu1 }
 0x63e   : > { %v4789_v48 = vadd.f32 %v8639_v3, %v4788_v47 }
 0x63f   : > { %4900 = vst.msk [vmem:[%s8646_s30 + $0x1a8] sm:$0xff] %vm2500_vm2, %v4794_v46 }
 0x640   : > { %4899 = vst.msk [vmem:[%s8646_s30 + $0x1a0] sm:$0xff] %vm2500_vm2, %v4789_v48  ;;  %v6644_v49 = vpop.f32.mrb[216].mxu1 }
 0x641   : > { %v4804_v50 = vadd.f32 %v6644_v49, %v8639_v3  ;;  %v4798_v51 = vpop.f32.mrb[217].mxu1 }
 0x642   : > { %v4799_v53 = vadd.f32 %v8639_v3, %v4798_v51 }
 0x643   : > { %4902 = vst.msk [vmem:[%s8646_s30 + $0x1b8] sm:$0xff] %vm2500_vm2, %v4804_v50 }
 0x644   : > { %4901 = vst.msk [vmem:[%s8646_s30 + $0x1b0] sm:$0xff] %vm2500_vm2, %v4799_v53  ;;  %v6647_v54 = vpop.f32.mrb[218].mxu1 }
 0x645   : > { %v4814_v55 = vadd.f32 %v6647_v54, %v8639_v3  ;;  %v4808_v56 = vpop.f32.mrb[219].mxu1 }
 0x646   : > { %v4809_v57 = vadd.f32 %v8639_v3, %v4808_v56 }
 0x647   : > { %4904 = vst.msk [vmem:[%s8646_s30 + $0x1c8] sm:$0xff] %vm2500_vm2, %v4814_v55 }
 0x648   : > { %4903 = vst.msk [vmem:[%s8646_s30 + $0x1c0] sm:$0xff] %vm2500_vm2, %v4809_v57  ;;  %v6650_v58 = vpop.f32.mrb[220].mxu1 }
 0x649   : > { %v4824_v59 = vadd.f32 %v6650_v58, %v8639_v3  ;;  %v4818_v60 = vpop.f32.mrb[221].mxu1 }
 0x64a   : > { %v4819_v61 = vadd.f32 %v8639_v3, %v4818_v60 }
 0x64b   : > { %4906 = vst.msk [vmem:[%s8646_s30 + $0x1d8] sm:$0xff] %vm2500_vm2, %v4824_v59 }
 0x64c   : > { %4905 = vst.msk [vmem:[%s8646_s30 + $0x1d0] sm:$0xff] %vm2500_vm2, %v4819_v61  ;;  %v6653_v62 = vpop.f32.mrb[222].mxu1 }
 0x64d   : > { %v4834_v52 = vadd.f32 %v6653_v62, %v8639_v3  ;;  %v4828_v63 = vpop.f32.mrb[223].mxu1 }
 0x64e   : > { %v4829_v1 = vadd.f32 %v8639_v3, %v4828_v63 }
 0x64f   : > { %4908 = vst.msk [vmem:[%s8646_s30 + $0x1e8] sm:$0xff] %vm2500_vm2, %v4834_v52 }
 0x650   : > { %4907 = vst.msk [vmem:[%s8646_s30 + $0x1e0] sm:$0xff] %vm2500_vm2, %v4829_v1  ;;  %v6656_v0 = vpop.f32.mrb[224].mxu1 }
 0x651   : > { %v4844_v2 = vadd.f32 %v6656_v0, %v8639_v3  ;;  %v4838_v4 = vpop.f32.mrb[225].mxu1 }
 0x652   : > { %v4839_v5 = vadd.f32 %v8639_v3, %v4838_v4 }
 0x653   : > { %4910 = vst.msk [vmem:[%s8646_s30 + $0x1f8] sm:$0xff] %vm2500_vm2, %v4844_v2 }
 0x654   : > { %4909 = vst.msk [vmem:[%s8646_s30 + $0x1f0] sm:$0xff] %vm2500_vm2, %v4839_v5 }
 0x655 PF: > { %s24_s29 = sadd.s32 1, %s7507_s29  }
 0x656   : > { %p21_p4 = scmp.ge.s32.totalorder %s24_s29, 4  }
 0x658   :  { %23 = sbr.rel (!%p21_p4) target bundleno = 1 (0x1), region = 106 }

</bundles_post_ra>
